<compile_context>
chip_gen: v6e
topology: v6e:2x2x1
jax: 0.10.0
libtpu: 0.0.40
codegen_flags: <defaults>
</compile_context>

<pallas_src>
import functools
import math

import jax
import jax.numpy as jnp
from jax import lax
from jax.experimental import pallas as pl
from jax.experimental.pallas import tpu as pltpu


# ------------------------- shared in-kernel helpers ------------------------- #

def _residual_layernorm(delta, residual, gamma, beta, eps):
    """LayerNorm(residual + delta) over the last axis, f32 math."""
    y = residual + delta
    mu = jnp.mean(y, axis=-1, keepdims=True)
    var = jnp.mean(jnp.square(y - mu), axis=-1, keepdims=True)
    return (y - mu) * lax.rsqrt(var + eps) * gamma + beta


def _softmax_rows(s):
    """Row softmax in f32; normalization via EUP approx reciprocal."""
    s = s - jnp.max(s, axis=-1, keepdims=True)
    p = jnp.exp(s)
    return p * pl.reciprocal(jnp.sum(p, axis=-1, keepdims=True), approx=True)


# --------------------------- fused decoder-stack kernel ---------------------- #

def _decoder_stack_kernel(tgt_ref, mem_ref, tmask_ref, *rest, nhead, d_model,
                          s_len, m_len, batch_tile, has_mem_mask, eps):
    if has_mem_mask:
        mmask_ref = rest[0]
        rest = rest[1:]
    else:
        mmask_ref = None
    (wqkv1, bqkv1, wo1, bo1, g1, bn1,
     wq2, bq2, wkv2, bkv2, wo2, bo2, g2, bn2,
     w1, b1, w2, b2, g3, bn3,
     o_ref, attn_sc) = rest

    layer = pl.program_id(1)

    # Layer 0: seed the resident activation block from the kernel input.
    @pl.when(layer == 0)
    def _():
        o_ref[...] = tgt_ref[...]

    f32 = jnp.float32
    bf16 = jnp.bfloat16
    dh = d_model // nhead

    x = o_ref[...]                                   # (batch_tile*S, D) f32 residual

    # ------------------- 1) self-attention sublayer ------------------- #
    qkv = jnp.dot(x.astype(bf16), wqkv1[0],
                  preferred_element_type=f32) + bqkv1[0]           # (rows, 3D)
    tmask = tmask_ref[...]                                          # (S, S) additive
    for b in range(batch_tile):                                     # static unroll
        rq = slice(b * s_len, (b + 1) * s_len)
        for h in range(nhead):
            c0 = h * dh
            qh = qkv[rq, c0:c0 + dh].astype(bf16)                   # scale baked into Wq
            kh = qkv[rq, d_model + c0:d_model + c0 + dh].astype(bf16)
            vh = qkv[rq, 2 * d_model + c0:2 * d_model + c0 + dh].astype(bf16)
            s = lax.dot_general(qh, kh, (((1,), (1,)), ((), ())),
                                preferred_element_type=f32)         # (S, S)
            p = _softmax_rows(s + tmask)
            attn_sc[rq, c0:c0 + dh] = jnp.dot(p.astype(bf16), vh,
                                              preferred_element_type=f32)
    attn = jnp.dot(attn_sc[...].astype(bf16), wo1[0],
                   preferred_element_type=f32) + bo1[0]
    # dropout1 == identity (eval mode)
    x = _residual_layernorm(attn, x, g1[0], bn1[0], eps)

    # ------------------- 2) cross-attention sublayer ------------------- #
    q = jnp.dot(x.astype(bf16), wq2[0],
                preferred_element_type=f32) + bq2[0]                # (rows, D), scale baked in
    kv = jnp.dot(mem_ref[...].astype(bf16), wkv2[0],
                 preferred_element_type=f32) + bkv2[0]              # (batch_tile*M, 2D)
    mmask = mmask_ref[...] if has_mem_mask else None
    for b in range(batch_tile):
        rq = slice(b * s_len, (b + 1) * s_len)
        rk = slice(b * m_len, (b + 1) * m_len)
        for h in range(nhead):
            c0 = h * dh
            qh = q[rq, c0:c0 + dh].astype(bf16)
            kh = kv[rk, c0:c0 + dh].astype(bf16)
            vh = kv[rk, d_model + c0:d_model + c0 + dh].astype(bf16)
            s = lax.dot_general(qh, kh, (((1,), (1,)), ((), ())),
                                preferred_element_type=f32)         # (S, M)
            if has_mem_mask:
                s = s + mmask
            p = _softmax_rows(s)
            attn_sc[rq, c0:c0 + dh] = jnp.dot(p.astype(bf16), vh,
                                              preferred_element_type=f32)
    attn = jnp.dot(attn_sc[...].astype(bf16), wo2[0],
                   preferred_element_type=f32) + bo2[0]
    # dropout2 == identity (eval mode)
    x = _residual_layernorm(attn, x, g2[0], bn2[0], eps)

    # ------------------- 3) feed-forward sublayer ------------------- #
    h1 = jnp.dot(x.astype(bf16), w1[0], preferred_element_type=f32) + b1[0]
    h1 = jnp.maximum(h1, 0.0)                                       # activation == 'relu'
    t = jnp.dot(h1.astype(bf16), w2[0], preferred_element_type=f32) + b2[0]
    # dropout / dropout3 == identity (eval mode)
    x = _residual_layernorm(t, x, g3[0], bn3[0], eps)

    o_ref[...] = x                                                  # carry to next layer


# ------------------------------ Python wrapper ------------------------------ #

_PARAM_ORDER = ('wqkv1', 'bqkv1', 'wo1', 'bo1', 'g1', 'bn1',
                'wq2', 'bq2', 'wkv2', 'bkv2', 'wo2', 'bo2', 'g2', 'bn2',
                'w1', 'b1', 'w2', 'b2', 'g3', 'bn3')


def transformer_decoder_forward(tgt, memory, params, nhead, tgt_mask,
                                mem_mask=None, batch_tile=None, eps=1e-5):
    """Full decoder stack (norm=None) as one fused pallas_call."""
    b_sz, s_len, d_model = tgt.shape
    m_len = memory.shape[1]
    num_layers = params['wqkv1'].shape[0]
    if batch_tile is None:
        batch_tile = b_sz                 # toy shapes: densest rows per MXU tile
    assert b_sz % batch_tile == 0
    nb = b_sz // batch_tile
    n_rows = batch_tile * s_len
    m_rows = batch_tile * m_len

    # Flatten (B,S,D)->(B*S,D) outside the kernel (free in XLA) so all in-kernel
    # projections are 2-D row slabs with no in-kernel reshapes.
    tgt2d = tgt.reshape(b_sz * s_len, d_model)
    mem2d = memory.reshape(b_sz * m_len, d_model)
    has_mem_mask = mem_mask is not None

    act_map = lambda b, l: (b, 0)         # batch-tile dependent, layer-invariant
    inv_map = lambda b, l: (0, 0)         # fully invariant
    par_map = lambda b, l: (l, 0, 0)      # layer-stacked parameters

    in_specs = [pl.BlockSpec((n_rows, d_model), act_map),
                pl.BlockSpec((m_rows, d_model), act_map),
                pl.BlockSpec((s_len, s_len), inv_map)]
    args = [tgt2d, mem2d, tgt_mask]
    if has_mem_mask:
        in_specs.append(pl.BlockSpec((s_len, m_len), inv_map))
        args.append(mem_mask)
    for name in _PARAM_ORDER:
        arr = params[name]
        in_specs.append(pl.BlockSpec((1,) + arr.shape[1:], par_map))
        args.append(arr)

    kern = functools.partial(
        _decoder_stack_kernel, nhead=nhead, d_model=d_model, s_len=s_len,
        m_len=m_len, batch_tile=batch_tile, has_mem_mask=has_mem_mask, eps=eps)

    out = pl.pallas_call(
        kern,
        out_shape=jax.ShapeDtypeStruct((b_sz * s_len, d_model), jnp.float32),
        grid=(nb, num_layers),
        in_specs=in_specs,
        out_specs=pl.BlockSpec((n_rows, d_model), act_map),
        scratch_shapes=[pltpu.VMEM((n_rows, d_model), jnp.float32)],
        compiler_params=pltpu.CompilerParams(
            dimension_semantics=("parallel", "arbitrary")),
    )(*args)
    return out.reshape(b_sz, s_len, d_model)


# ----------------------------- parameter init ------------------------------- #

def _init_linear(key, d_in, d_out):
    k1, k2 = jax.random.split(key)
    bound = 1.0 / math.sqrt(d_in)
    w = jax.random.uniform(k1, (d_in, d_out), jnp.float32, -bound, bound)
    b = jax.random.uniform(k2, (1, d_out), jnp.float32, -bound, bound)
    return w, b


def init_decoder_params(key, num_layers, d_model, nhead, dim_ff):
    dh = d_model // nhead
    qscale = 1.0 / math.sqrt(dh)          # baked into Q projections (zero runtime cost)
    per_layer = []
    for _ in range(num_layers):
        keys = jax.random.split(key, 11)
        key = keys[0]
        p = {}
        wq1, bq1 = _init_linear(keys[1], d_model, d_model)
        wk1, bk1 = _init_linear(keys[2], d_model, d_model)
        wv1, bv1 = _init_linear(keys[3], d_model, d_model)
        p['wqkv1'] = jnp.concatenate([wq1 * qscale, wk1, wv1], axis=1).astype(jnp.bfloat16)
        p['bqkv1'] = jnp.concatenate([bq1 * qscale, bk1, bv1], axis=1)
        wo1, bo1 = _init_linear(keys[4], d_model, d_model)
        p['wo1'] = wo1.astype(jnp.bfloat16)
        p['bo1'] = bo1
        wq2, bq2 = _init_linear(keys[5], d_model, d_model)
        wk2, bk2 = _init_linear(keys[6], d_model, d_model)
        wv2, bv2 = _init_linear(keys[7], d_model, d_model)
        p['wq2'] = (wq2 * qscale).astype(jnp.bfloat16)
        p['bq2'] = bq2 * qscale
        p['wkv2'] = jnp.concatenate([wk2, wv2], axis=1).astype(jnp.bfloat16)
        p['bkv2'] = jnp.concatenate([bk2, bv2], axis=1)
        wo2, bo2 = _init_linear(keys[8], d_model, d_model)
        p['wo2'] = wo2.astype(jnp.bfloat16)
        p['bo2'] = bo2
        w1, b1 = _init_linear(keys[9], d_model, dim_ff)
        w2, b2 = _init_linear(keys[10], dim_ff, d_model)
        p['w1'] = w1.astype(jnp.bfloat16)
        p['b1'] = b1
        p['w2'] = w2.astype(jnp.bfloat16)
        p['b2'] = b2
        for n in ('1', '2', '3'):
            p['g' + n] = jnp.ones((1, d_model), jnp.float32)
            p['bn' + n] = jnp.zeros((1, d_model), jnp.float32)
        per_layer.append(p)
    # Stack along a leading layer axis -> single pallas_call over the whole stack.
    return {k: jnp.stack([p[k] for p in per_layer], axis=0) for k in per_layer[0]}


# ---------------------------------- main ------------------------------------ #

if __name__ == "__main__":
    B, S, M = 2, 8, 10                    # batch, tgt_len, memory_len
    D_MODEL, NHEAD, DIM_FF = 32, 4, 64
    NUM_LAYERS = 2

    key = jax.random.PRNGKey(0)
    k_tgt, k_mem, k_par = jax.random.split(key, 3)
    tgt = jax.random.normal(k_tgt, (B, S, D_MODEL), jnp.float32)
    memory = jax.random.normal(k_mem, (B, M, D_MODEL), jnp.float32)

    # Causal additive mask for self-attention; memory_mask defaults to None in the
    # reference forward, so the cross-attention mask add is skipped entirely.
    causal = jnp.tril(jnp.ones((S, S), jnp.float32))
    tgt_mask = jnp.where(causal > 0, 0.0, -1e9).astype(jnp.float32)

    params = init_decoder_params(k_par, NUM_LAYERS, D_MODEL, NHEAD, DIM_FF)

    fwd = jax.jit(functools.partial(transformer_decoder_forward, nhead=NHEAD))
    out = fwd(tgt, memory, params, tgt_mask=tgt_mask)
    out = jax.block_until_ready(out)

    assert out.shape == (B, S, D_MODEL)
    assert bool(jnp.all(jnp.isfinite(out)))
    print("KERNEL_OK")
</pallas_src>

<mosaic_0001>
module attributes {stable_mosaic.version = 11 : i64} {
  func.func @_decoder_stack_kernel(%arg0: i32, %arg1: i32, %arg2: memref<16x32xf32, #tpu.memory_space<vmem>>, %arg3: memref<20x32xf32, #tpu.memory_space<vmem>>, %arg4: memref<8x8xf32, #tpu.memory_space<vmem>>, %arg5: memref<1x32x96xbf16, #tpu.memory_space<vmem>>, %arg6: memref<1x1x96xf32, #tpu.memory_space<vmem>>, %arg7: memref<1x32x32xbf16, #tpu.memory_space<vmem>>, %arg8: memref<1x1x32xf32, #tpu.memory_space<vmem>>, %arg9: memref<1x1x32xf32, #tpu.memory_space<vmem>>, %arg10: memref<1x1x32xf32, #tpu.memory_space<vmem>>, %arg11: memref<1x32x32xbf16, #tpu.memory_space<vmem>>, %arg12: memref<1x1x32xf32, #tpu.memory_space<vmem>>, %arg13: memref<1x32x64xbf16, #tpu.memory_space<vmem>>, %arg14: memref<1x1x64xf32, #tpu.memory_space<vmem>>, %arg15: memref<1x32x32xbf16, #tpu.memory_space<vmem>>, %arg16: memref<1x1x32xf32, #tpu.memory_space<vmem>>, %arg17: memref<1x1x32xf32, #tpu.memory_space<vmem>>, %arg18: memref<1x1x32xf32, #tpu.memory_space<vmem>>, %arg19: memref<1x32x64xbf16, #tpu.memory_space<vmem>>, %arg20: memref<1x1x64xf32, #tpu.memory_space<vmem>>, %arg21: memref<1x64x32xbf16, #tpu.memory_space<vmem>>, %arg22: memref<1x1x32xf32, #tpu.memory_space<vmem>>, %arg23: memref<1x1x32xf32, #tpu.memory_space<vmem>>, %arg24: memref<1x1x32xf32, #tpu.memory_space<vmem>>, %arg25: memref<16x32xf32, #tpu.memory_space<vmem>>, %arg26: memref<16x32xf32, #tpu.memory_space<vmem>>) attributes {dimension_semantics = [#tpu.dimension_semantics<parallel>, #tpu.dimension_semantics<arbitrary>], iteration_bounds = array<i64: 1, 2>, scalar_prefetch = 0 : i64, scratch_operands = 1 : i64, tpu.core_type = #tpu.core_type<tc>, window_params = [{transform_indices = @transform_0, window_bounds = array<i64: 16, 32>}, {transform_indices = @transform_1, window_bounds = array<i64: 20, 32>}, {pipeline_mode = #tpu.pipeline_mode<synchronous>, transform_indices = @transform_2, window_bounds = array<i64: 8, 8>}, {transform_indices = @transform_3, window_bounds = array<i64: 1, 32, 96>}, {transform_indices = @transform_4, window_bounds = array<i64: 1, 1, 96>}, {transform_indices = @transform_5, window_bounds = array<i64: 1, 32, 32>}, {transform_indices = @transform_6, window_bounds = array<i64: 1, 1, 32>}, {transform_indices = @transform_7, window_bounds = array<i64: 1, 1, 32>}, {transform_indices = @transform_8, window_bounds = array<i64: 1, 1, 32>}, {transform_indices = @transform_9, window_bounds = array<i64: 1, 32, 32>}, {transform_indices = @transform_10, window_bounds = array<i64: 1, 1, 32>}, {transform_indices = @transform_11, window_bounds = array<i64: 1, 32, 64>}, {transform_indices = @transform_12, window_bounds = array<i64: 1, 1, 64>}, {transform_indices = @transform_13, window_bounds = array<i64: 1, 32, 32>}, {transform_indices = @transform_14, window_bounds = array<i64: 1, 1, 32>}, {transform_indices = @transform_15, window_bounds = array<i64: 1, 1, 32>}, {transform_indices = @transform_16, window_bounds = array<i64: 1, 1, 32>}, {transform_indices = @transform_17, window_bounds = array<i64: 1, 32, 64>}, {transform_indices = @transform_18, window_bounds = array<i64: 1, 1, 64>}, {transform_indices = @transform_19, window_bounds = array<i64: 1, 64, 32>}, {transform_indices = @transform_20, window_bounds = array<i64: 1, 1, 32>}, {transform_indices = @transform_21, window_bounds = array<i64: 1, 1, 32>}, {transform_indices = @transform_22, window_bounds = array<i64: 1, 1, 32>}, {transform_indices = @transform_23, window_bounds = array<i64: 16, 32>}]} {
    %c0_i32 = arith.constant 0 : i32
    %0 = arith.cmpi eq, %arg1, %c0_i32 : i32
    %1 = arith.extui %0 : i1 to i32
    %c0_i32_0 = arith.constant 0 : i32
    %2 = arith.cmpi ne, %1, %c0_i32_0 : i32
    scf.if %2 {
      %c0_187 = arith.constant 0 : index
      %c0_188 = arith.constant 0 : index
      %476 = vector.load %arg2[%c0_187, %c0_188] : memref<16x32xf32, #tpu.memory_space<vmem>>, vector<16x32xf32>
      %c0_189 = arith.constant 0 : index
      %c0_190 = arith.constant 0 : index
      %477 = vector.load %arg25[%c0_189, %c0_190] : memref<16x32xf32, #tpu.memory_space<vmem>>, vector<16x32xf32>
      tpu.vector_store %arg25[%c0_189, %c0_190], %476 {strides = array<i32>} : memref<16x32xf32, #tpu.memory_space<vmem>>, vector<16x32xf32>,
    } else {
    }
    %c0 = arith.constant 0 : index
    %c0_1 = arith.constant 0 : index
    %3 = vector.load %arg25[%c0, %c0_1] : memref<16x32xf32, #tpu.memory_space<vmem>>, vector<16x32xf32>
    %4 = arith.truncf %3 : vector<16x32xf32> to vector<16x32xbf16>
    %c0_2 = arith.constant 0 : index
    %c0_3 = arith.constant 0 : index
    %c0_4 = arith.constant 0 : index
    %5 = vector.load %arg5[%c0_2, %c0_3, %c0_4] : memref<1x32x96xbf16, #tpu.memory_space<vmem>>, vector<1x32x96xbf16>
    %6 = vector.shape_cast %5 : vector<1x32x96xbf16> to vector<32x96xbf16>
    %cst = arith.constant dense<0.000000e+00> : vector<16x96xf32>
    %7 = tpu.matmul %4, %6, %cst {dimension_numbers = #tpu.dot_dimension_numbers<[1], [0], [0], [1], [0, 0, 1, 1], [], []>} : vector<16x32xbf16>, vector<32x96xbf16>, vector<16x96xf32> -> vector<16x96xf32>
    %c0_5 = arith.constant 0 : index
    %c0_6 = arith.constant 0 : index
    %c0_7 = arith.constant 0 : index
    %8 = vector.load %arg6[%c0_5, %c0_6, %c0_7] : memref<1x1x96xf32, #tpu.memory_space<vmem>>, vector<1x1x96xf32>
    %9 = vector.shape_cast %8 : vector<1x1x96xf32> to vector<1x96xf32>
    %10 = vector.broadcast %9 : vector<1x96xf32> to vector<16x96xf32>
    %11 = arith.addf %7, %10 : vector<16x96xf32>
    %c0_8 = arith.constant 0 : index
    %c0_9 = arith.constant 0 : index
    %12 = vector.load %arg4[%c0_8, %c0_9] : memref<8x8xf32, #tpu.memory_space<vmem>>, vector<8x8xf32>
    %13 = vector.extract_strided_slice %11 {offsets = [0, 0], sizes = [8, 8], strides = [1, 1]} : vector<16x96xf32> to vector<8x8xf32>
    %14 = arith.truncf %13 : vector<8x8xf32> to vector<8x8xbf16>
    %15 = vector.extract_strided_slice %11 {offsets = [0, 32], sizes = [8, 8], strides = [1, 1]} : vector<16x96xf32> to vector<8x8xf32>
    %16 = arith.truncf %15 : vector<8x8xf32> to vector<8x8xbf16>
    %17 = vector.extract_strided_slice %11 {offsets = [0, 64], sizes = [8, 8], strides = [1, 1]} : vector<16x96xf32> to vector<8x8xf32>
    %18 = arith.truncf %17 : vector<8x8xf32> to vector<8x8xbf16>
    %cst_10 = arith.constant dense<0.000000e+00> : vector<8x8xf32>
    %19 = tpu.matmul %14, %16, %cst_10 {dimension_numbers = #tpu.dot_dimension_numbers<[1], [1], [0], [0], [0, 0, 1, 0], [], []>} : vector<8x8xbf16>, vector<8x8xbf16>, vector<8x8xf32> -> vector<8x8xf32>
    %20 = arith.addf %19, %12 : vector<8x8xf32>
    %cst_11 = arith.constant dense<0xFF800000> : vector<8xf32>
    %21 = vector.multi_reduction <maximumf>, %20, %cst_11 [1] : vector<8x8xf32> to vector<8xf32>
    %22 = vector.shape_cast %21 : vector<8xf32> to vector<8x1xf32>
    %23 = vector.broadcast %22 : vector<8x1xf32> to vector<8x8xf32>
    %24 = arith.subf %20, %23 : vector<8x8xf32>
    %25 = math.exp %24 : vector<8x8xf32>
    %cst_12 = arith.constant dense<0.000000e+00> : vector<8xf32>
    %26 = vector.multi_reduction <add>, %25, %cst_12 [1] : vector<8x8xf32> to vector<8xf32>
    %27 = vector.shape_cast %26 : vector<8xf32> to vector<8x1xf32>
    %28 = tpu.reciprocal %27 {approx = true} : vector<8x1xf32> -> vector<8x1xf32>
    %29 = vector.broadcast %28 : vector<8x1xf32> to vector<8x8xf32>
    %30 = arith.mulf %25, %29 : vector<8x8xf32>
    %31 = arith.truncf %30 : vector<8x8xf32> to vector<8x8xbf16>
    %cst_13 = arith.constant dense<0.000000e+00> : vector<8x8xf32>
    %32 = tpu.matmul %31, %18, %cst_13 {dimension_numbers = #tpu.dot_dimension_numbers<[1], [0], [0], [1], [0, 0, 1, 1], [], []>} : vector<8x8xbf16>, vector<8x8xbf16>, vector<8x8xf32> -> vector<8x8xf32>
    %c0_14 = arith.constant 0 : index
    %c0_15 = arith.constant 0 : index
    %33 = vector.load %arg26[%c0_14, %c0_15] : memref<16x32xf32, #tpu.memory_space<vmem>>, vector<8x8xf32>
    tpu.vector_store %arg26[%c0_14, %c0_15], %32 {strides = array<i32>} : memref<16x32xf32, #tpu.memory_space<vmem>>, vector<8x8xf32>,
    %34 = vector.extract_strided_slice %11 {offsets = [0, 8], sizes = [8, 8], strides = [1, 1]} : vector<16x96xf32> to vector<8x8xf32>
    %35 = arith.truncf %34 : vector<8x8xf32> to vector<8x8xbf16>
    %36 = vector.extract_strided_slice %11 {offsets = [0, 40], sizes = [8, 8], strides = [1, 1]} : vector<16x96xf32> to vector<8x8xf32>
    %37 = arith.truncf %36 : vector<8x8xf32> to vector<8x8xbf16>
    %38 = vector.extract_strided_slice %11 {offsets = [0, 72], sizes = [8, 8], strides = [1, 1]} : vector<16x96xf32> to vector<8x8xf32>
    %39 = arith.truncf %38 : vector<8x8xf32> to vector<8x8xbf16>
    %cst_16 = arith.constant dense<0.000000e+00> : vector<8x8xf32>
    %40 = tpu.matmul %35, %37, %cst_16 {dimension_numbers = #tpu.dot_dimension_numbers<[1], [1], [0], [0], [0, 0, 1, 0], [], []>} : vector<8x8xbf16>, vector<8x8xbf16>, vector<8x8xf32> -> vector<8x8xf32>
    %41 = arith.addf %40, %12 : vector<8x8xf32>
    %cst_17 = arith.constant dense<0xFF800000> : vector<8xf32>
    %42 = vector.multi_reduction <maximumf>, %41, %cst_17 [1] : vector<8x8xf32> to vector<8xf32>
    %43 = vector.shape_cast %42 : vector<8xf32> to vector<8x1xf32>
    %44 = vector.broadcast %43 : vector<8x1xf32> to vector<8x8xf32>
    %45 = arith.subf %41, %44 : vector<8x8xf32>
    %46 = math.exp %45 : vector<8x8xf32>
    %cst_18 = arith.constant dense<0.000000e+00> : vector<8xf32>
    %47 = vector.multi_reduction <add>, %46, %cst_18 [1] : vector<8x8xf32> to vector<8xf32>
    %48 = vector.shape_cast %47 : vector<8xf32> to vector<8x1xf32>
    %49 = tpu.reciprocal %48 {approx = true} : vector<8x1xf32> -> vector<8x1xf32>
    %50 = vector.broadcast %49 : vector<8x1xf32> to vector<8x8xf32>
    %51 = arith.mulf %46, %50 : vector<8x8xf32>
    %52 = arith.truncf %51 : vector<8x8xf32> to vector<8x8xbf16>
    %cst_19 = arith.constant dense<0.000000e+00> : vector<8x8xf32>
    %53 = tpu.matmul %52, %39, %cst_19 {dimension_numbers = #tpu.dot_dimension_numbers<[1], [0], [0], [1], [0, 0, 1, 1], [], []>} : vector<8x8xbf16>, vector<8x8xbf16>, vector<8x8xf32> -> vector<8x8xf32>
    %c0_20 = arith.constant 0 : index
    %c8 = arith.constant 8 : index
    %54 = vector.load %arg26[%c0_20, %c8] : memref<16x32xf32, #tpu.memory_space<vmem>>, vector<8x8xf32>
    tpu.vector_store %arg26[%c0_20, %c8], %53 {strides = array<i32>} : memref<16x32xf32, #tpu.memory_space<vmem>>, vector<8x8xf32>,
    %55 = vector.extract_strided_slice %11 {offsets = [0, 16], sizes = [8, 8], strides = [1, 1]} : vector<16x96xf32> to vector<8x8xf32>
    %56 = arith.truncf %55 : vector<8x8xf32> to vector<8x8xbf16>
    %57 = vector.extract_strided_slice %11 {offsets = [0, 48], sizes = [8, 8], strides = [1, 1]} : vector<16x96xf32> to vector<8x8xf32>
    %58 = arith.truncf %57 : vector<8x8xf32> to vector<8x8xbf16>
    %59 = vector.extract_strided_slice %11 {offsets = [0, 80], sizes = [8, 8], strides = [1, 1]} : vector<16x96xf32> to vector<8x8xf32>
    %60 = arith.truncf %59 : vector<8x8xf32> to vector<8x8xbf16>
    %cst_21 = arith.constant dense<0.000000e+00> : vector<8x8xf32>
    %61 = tpu.matmul %56, %58, %cst_21 {dimension_numbers = #tpu.dot_dimension_numbers<[1], [1], [0], [0], [0, 0, 1, 0], [], []>} : vector<8x8xbf16>, vector<8x8xbf16>, vector<8x8xf32> -> vector<8x8xf32>
    %62 = arith.addf %61, %12 : vector<8x8xf32>
    %cst_22 = arith.constant dense<0xFF800000> : vector<8xf32>
    %63 = vector.multi_reduction <maximumf>, %62, %cst_22 [1] : vector<8x8xf32> to vector<8xf32>
    %64 = vector.shape_cast %63 : vector<8xf32> to vector<8x1xf32>
    %65 = vector.broadcast %64 : vector<8x1xf32> to vector<8x8xf32>
    %66 = arith.subf %62, %65 : vector<8x8xf32>
    %67 = math.exp %66 : vector<8x8xf32>
    %cst_23 = arith.constant dense<0.000000e+00> : vector<8xf32>
    %68 = vector.multi_reduction <add>, %67, %cst_23 [1] : vector<8x8xf32> to vector<8xf32>
    %69 = vector.shape_cast %68 : vector<8xf32> to vector<8x1xf32>
    %70 = tpu.reciprocal %69 {approx = true} : vector<8x1xf32> -> vector<8x1xf32>
    %71 = vector.broadcast %70 : vector<8x1xf32> to vector<8x8xf32>
    %72 = arith.mulf %67, %71 : vector<8x8xf32>
    %73 = arith.truncf %72 : vector<8x8xf32> to vector<8x8xbf16>
    %cst_24 = arith.constant dense<0.000000e+00> : vector<8x8xf32>
    %74 = tpu.matmul %73, %60, %cst_24 {dimension_numbers = #tpu.dot_dimension_numbers<[1], [0], [0], [1], [0, 0, 1, 1], [], []>} : vector<8x8xbf16>, vector<8x8xbf16>, vector<8x8xf32> -> vector<8x8xf32>
    %c0_25 = arith.constant 0 : index
    %c16 = arith.constant 16 : index
    %75 = vector.load %arg26[%c0_25, %c16] : memref<16x32xf32, #tpu.memory_space<vmem>>, vector<8x8xf32>
    tpu.vector_store %arg26[%c0_25, %c16], %74 {strides = array<i32>} : memref<16x32xf32, #tpu.memory_space<vmem>>, vector<8x8xf32>,
    %76 = vector.extract_strided_slice %11 {offsets = [0, 24], sizes = [8, 8], strides = [1, 1]} : vector<16x96xf32> to vector<8x8xf32>
    %77 = arith.truncf %76 : vector<8x8xf32> to vector<8x8xbf16>
    %78 = vector.extract_strided_slice %11 {offsets = [0, 56], sizes = [8, 8], strides = [1, 1]} : vector<16x96xf32> to vector<8x8xf32>
    %79 = arith.truncf %78 : vector<8x8xf32> to vector<8x8xbf16>
    %80 = vector.extract_strided_slice %11 {offsets = [0, 88], sizes = [8, 8], strides = [1, 1]} : vector<16x96xf32> to vector<8x8xf32>
    %81 = arith.truncf %80 : vector<8x8xf32> to vector<8x8xbf16>
    %cst_26 = arith.constant dense<0.000000e+00> : vector<8x8xf32>
    %82 = tpu.matmul %77, %79, %cst_26 {dimension_numbers = #tpu.dot_dimension_numbers<[1], [1], [0], [0], [0, 0, 1, 0], [], []>} : vector<8x8xbf16>, vector<8x8xbf16>, vector<8x8xf32> -> vector<8x8xf32>
    %83 = arith.addf %82, %12 : vector<8x8xf32>
    %cst_27 = arith.constant dense<0xFF800000> : vector<8xf32>
    %84 = vector.multi_reduction <maximumf>, %83, %cst_27 [1] : vector<8x8xf32> to vector<8xf32>
    %85 = vector.shape_cast %84 : vector<8xf32> to vector<8x1xf32>
    %86 = vector.broadcast %85 : vector<8x1xf32> to vector<8x8xf32>
    %87 = arith.subf %83, %86 : vector<8x8xf32>
    %88 = math.exp %87 : vector<8x8xf32>
    %cst_28 = arith.constant dense<0.000000e+00> : vector<8xf32>
    %89 = vector.multi_reduction <add>, %88, %cst_28 [1] : vector<8x8xf32> to vector<8xf32>
    %90 = vector.shape_cast %89 : vector<8xf32> to vector<8x1xf32>
    %91 = tpu.reciprocal %90 {approx = true} : vector<8x1xf32> -> vector<8x1xf32>
    %92 = vector.broadcast %91 : vector<8x1xf32> to vector<8x8xf32>
    %93 = arith.mulf %88, %92 : vector<8x8xf32>
    %94 = arith.truncf %93 : vector<8x8xf32> to vector<8x8xbf16>
    %cst_29 = arith.constant dense<0.000000e+00> : vector<8x8xf32>
    %95 = tpu.matmul %94, %81, %cst_29 {dimension_numbers = #tpu.dot_dimension_numbers<[1], [0], [0], [1], [0, 0, 1, 1], [], []>} : vector<8x8xbf16>, vector<8x8xbf16>, vector<8x8xf32> -> vector<8x8xf32>
    %c0_30 = arith.constant 0 : index
    %c24 = arith.constant 24 : index
    %96 = vector.load %arg26[%c0_30, %c24] : memref<16x32xf32, #tpu.memory_space<vmem>>, vector<8x8xf32>
    tpu.vector_store %arg26[%c0_30, %c24], %95 {strides = array<i32>} : memref<16x32xf32, #tpu.memory_space<vmem>>, vector<8x8xf32>,
    %97 = vector.extract_strided_slice %11 {offsets = [8, 0], sizes = [8, 8], strides = [1, 1]} : vector<16x96xf32> to vector<8x8xf32>
    %98 = arith.truncf %97 : vector<8x8xf32> to vector<8x8xbf16>
    %99 = vector.extract_strided_slice %11 {offsets = [8, 32], sizes = [8, 8], strides = [1, 1]} : vector<16x96xf32> to vector<8x8xf32>
    %100 = arith.truncf %99 : vector<8x8xf32> to vector<8x8xbf16>
    %101 = vector.extract_strided_slice %11 {offsets = [8, 64], sizes = [8, 8], strides = [1, 1]} : vector<16x96xf32> to vector<8x8xf32>
    %102 = arith.truncf %101 : vector<8x8xf32> to vector<8x8xbf16>
    %cst_31 = arith.constant dense<0.000000e+00> : vector<8x8xf32>
    %103 = tpu.matmul %98, %100, %cst_31 {dimension_numbers = #tpu.dot_dimension_numbers<[1], [1], [0], [0], [0, 0, 1, 0], [], []>} : vector<8x8xbf16>, vector<8x8xbf16>, vector<8x8xf32> -> vector<8x8xf32>
    %104 = arith.addf %103, %12 : vector<8x8xf32>
    %cst_32 = arith.constant dense<0xFF800000> : vector<8xf32>
    %105 = vector.multi_reduction <maximumf>, %104, %cst_32 [1] : vector<8x8xf32> to vector<8xf32>
    %106 = vector.shape_cast %105 : vector<8xf32> to vector<8x1xf32>
    %107 = vector.broadcast %106 : vector<8x1xf32> to vector<8x8xf32>
    %108 = arith.subf %104, %107 : vector<8x8xf32>
    %109 = math.exp %108 : vector<8x8xf32>
    %cst_33 = arith.constant dense<0.000000e+00> : vector<8xf32>
    %110 = vector.multi_reduction <add>, %109, %cst_33 [1] : vector<8x8xf32> to vector<8xf32>
    %111 = vector.shape_cast %110 : vector<8xf32> to vector<8x1xf32>
    %112 = tpu.reciprocal %111 {approx = true} : vector<8x1xf32> -> vector<8x1xf32>
    %113 = vector.broadcast %112 : vector<8x1xf32> to vector<8x8xf32>
    %114 = arith.mulf %109, %113 : vector<8x8xf32>
    %115 = arith.truncf %114 : vector<8x8xf32> to vector<8x8xbf16>
    %cst_34 = arith.constant dense<0.000000e+00> : vector<8x8xf32>
    %116 = tpu.matmul %115, %102, %cst_34 {dimension_numbers = #tpu.dot_dimension_numbers<[1], [0], [0], [1], [0, 0, 1, 1], [], []>} : vector<8x8xbf16>, vector<8x8xbf16>, vector<8x8xf32> -> vector<8x8xf32>
    %c8_35 = arith.constant 8 : index
    %c0_36 = arith.constant 0 : index
    %117 = vector.load %arg26[%c8_35, %c0_36] : memref<16x32xf32, #tpu.memory_space<vmem>>, vector<8x8xf32>
    tpu.vector_store %arg26[%c8_35, %c0_36], %116 {strides = array<i32>} : memref<16x32xf32, #tpu.memory_space<vmem>>, vector<8x8xf32>,
    %118 = vector.extract_strided_slice %11 {offsets = [8, 8], sizes = [8, 8], strides = [1, 1]} : vector<16x96xf32> to vector<8x8xf32>
    %119 = arith.truncf %118 : vector<8x8xf32> to vector<8x8xbf16>
    %120 = vector.extract_strided_slice %11 {offsets = [8, 40], sizes = [8, 8], strides = [1, 1]} : vector<16x96xf32> to vector<8x8xf32>
    %121 = arith.truncf %120 : vector<8x8xf32> to vector<8x8xbf16>
    %122 = vector.extract_strided_slice %11 {offsets = [8, 72], sizes = [8, 8], strides = [1, 1]} : vector<16x96xf32> to vector<8x8xf32>
    %123 = arith.truncf %122 : vector<8x8xf32> to vector<8x8xbf16>
    %cst_37 = arith.constant dense<0.000000e+00> : vector<8x8xf32>
    %124 = tpu.matmul %119, %121, %cst_37 {dimension_numbers = #tpu.dot_dimension_numbers<[1], [1], [0], [0], [0, 0, 1, 0], [], []>} : vector<8x8xbf16>, vector<8x8xbf16>, vector<8x8xf32> -> vector<8x8xf32>
    %125 = arith.addf %124, %12 : vector<8x8xf32>
    %cst_38 = arith.constant dense<0xFF800000> : vector<8xf32>
    %126 = vector.multi_reduction <maximumf>, %125, %cst_38 [1] : vector<8x8xf32> to vector<8xf32>
    %127 = vector.shape_cast %126 : vector<8xf32> to vector<8x1xf32>
    %128 = vector.broadcast %127 : vector<8x1xf32> to vector<8x8xf32>
    %129 = arith.subf %125, %128 : vector<8x8xf32>
    %130 = math.exp %129 : vector<8x8xf32>
    %cst_39 = arith.constant dense<0.000000e+00> : vector<8xf32>
    %131 = vector.multi_reduction <add>, %130, %cst_39 [1] : vector<8x8xf32> to vector<8xf32>
    %132 = vector.shape_cast %131 : vector<8xf32> to vector<8x1xf32>
    %133 = tpu.reciprocal %132 {approx = true} : vector<8x1xf32> -> vector<8x1xf32>
    %134 = vector.broadcast %133 : vector<8x1xf32> to vector<8x8xf32>
    %135 = arith.mulf %130, %134 : vector<8x8xf32>
    %136 = arith.truncf %135 : vector<8x8xf32> to vector<8x8xbf16>
    %cst_40 = arith.constant dense<0.000000e+00> : vector<8x8xf32>
    %137 = tpu.matmul %136, %123, %cst_40 {dimension_numbers = #tpu.dot_dimension_numbers<[1], [0], [0], [1], [0, 0, 1, 1], [], []>} : vector<8x8xbf16>, vector<8x8xbf16>, vector<8x8xf32> -> vector<8x8xf32>
    %c8_41 = arith.constant 8 : index
    %c8_42 = arith.constant 8 : index
    %138 = vector.load %arg26[%c8_41, %c8_42] : memref<16x32xf32, #tpu.memory_space<vmem>>, vector<8x8xf32>
    tpu.vector_store %arg26[%c8_41, %c8_42], %137 {strides = array<i32>} : memref<16x32xf32, #tpu.memory_space<vmem>>, vector<8x8xf32>,
    %139 = vector.extract_strided_slice %11 {offsets = [8, 16], sizes = [8, 8], strides = [1, 1]} : vector<16x96xf32> to vector<8x8xf32>
    %140 = arith.truncf %139 : vector<8x8xf32> to vector<8x8xbf16>
    %141 = vector.extract_strided_slice %11 {offsets = [8, 48], sizes = [8, 8], strides = [1, 1]} : vector<16x96xf32> to vector<8x8xf32>
    %142 = arith.truncf %141 : vector<8x8xf32> to vector<8x8xbf16>
    %143 = vector.extract_strided_slice %11 {offsets = [8, 80], sizes = [8, 8], strides = [1, 1]} : vector<16x96xf32> to vector<8x8xf32>
    %144 = arith.truncf %143 : vector<8x8xf32> to vector<8x8xbf16>
    %cst_43 = arith.constant dense<0.000000e+00> : vector<8x8xf32>
    %145 = tpu.matmul %140, %142, %cst_43 {dimension_numbers = #tpu.dot_dimension_numbers<[1], [1], [0], [0], [0, 0, 1, 0], [], []>} : vector<8x8xbf16>, vector<8x8xbf16>, vector<8x8xf32> -> vector<8x8xf32>
    %146 = arith.addf %145, %12 : vector<8x8xf32>
    %cst_44 = arith.constant dense<0xFF800000> : vector<8xf32>
    %147 = vector.multi_reduction <maximumf>, %146, %cst_44 [1] : vector<8x8xf32> to vector<8xf32>
    %148 = vector.shape_cast %147 : vector<8xf32> to vector<8x1xf32>
    %149 = vector.broadcast %148 : vector<8x1xf32> to vector<8x8xf32>
    %150 = arith.subf %146, %149 : vector<8x8xf32>
    %151 = math.exp %150 : vector<8x8xf32>
    %cst_45 = arith.constant dense<0.000000e+00> : vector<8xf32>
    %152 = vector.multi_reduction <add>, %151, %cst_45 [1] : vector<8x8xf32> to vector<8xf32>
    %153 = vector.shape_cast %152 : vector<8xf32> to vector<8x1xf32>
    %154 = tpu.reciprocal %153 {approx = true} : vector<8x1xf32> -> vector<8x1xf32>
    %155 = vector.broadcast %154 : vector<8x1xf32> to vector<8x8xf32>
    %156 = arith.mulf %151, %155 : vector<8x8xf32>
    %157 = arith.truncf %156 : vector<8x8xf32> to vector<8x8xbf16>
    %cst_46 = arith.constant dense<0.000000e+00> : vector<8x8xf32>
    %158 = tpu.matmul %157, %144, %cst_46 {dimension_numbers = #tpu.dot_dimension_numbers<[1], [0], [0], [1], [0, 0, 1, 1], [], []>} : vector<8x8xbf16>, vector<8x8xbf16>, vector<8x8xf32> -> vector<8x8xf32>
    %c8_47 = arith.constant 8 : index
    %c16_48 = arith.constant 16 : index
    %159 = vector.load %arg26[%c8_47, %c16_48] : memref<16x32xf32, #tpu.memory_space<vmem>>, vector<8x8xf32>
    tpu.vector_store %arg26[%c8_47, %c16_48], %158 {strides = array<i32>} : memref<16x32xf32, #tpu.memory_space<vmem>>, vector<8x8xf32>,
    %160 = vector.extract_strided_slice %11 {offsets = [8, 24], sizes = [8, 8], strides = [1, 1]} : vector<16x96xf32> to vector<8x8xf32>
    %161 = arith.truncf %160 : vector<8x8xf32> to vector<8x8xbf16>
    %162 = vector.extract_strided_slice %11 {offsets = [8, 56], sizes = [8, 8], strides = [1, 1]} : vector<16x96xf32> to vector<8x8xf32>
    %163 = arith.truncf %162 : vector<8x8xf32> to vector<8x8xbf16>
    %164 = vector.extract_strided_slice %11 {offsets = [8, 88], sizes = [8, 8], strides = [1, 1]} : vector<16x96xf32> to vector<8x8xf32>
    %165 = arith.truncf %164 : vector<8x8xf32> to vector<8x8xbf16>
    %cst_49 = arith.constant dense<0.000000e+00> : vector<8x8xf32>
    %166 = tpu.matmul %161, %163, %cst_49 {dimension_numbers = #tpu.dot_dimension_numbers<[1], [1], [0], [0], [0, 0, 1, 0], [], []>} : vector<8x8xbf16>, vector<8x8xbf16>, vector<8x8xf32> -> vector<8x8xf32>
    %167 = arith.addf %166, %12 : vector<8x8xf32>
    %cst_50 = arith.constant dense<0xFF800000> : vector<8xf32>
    %168 = vector.multi_reduction <maximumf>, %167, %cst_50 [1] : vector<8x8xf32> to vector<8xf32>
    %169 = vector.shape_cast %168 : vector<8xf32> to vector<8x1xf32>
    %170 = vector.broadcast %169 : vector<8x1xf32> to vector<8x8xf32>
    %171 = arith.subf %167, %170 : vector<8x8xf32>
    %172 = math.exp %171 : vector<8x8xf32>
    %cst_51 = arith.constant dense<0.000000e+00> : vector<8xf32>
    %173 = vector.multi_reduction <add>, %172, %cst_51 [1] : vector<8x8xf32> to vector<8xf32>
    %174 = vector.shape_cast %173 : vector<8xf32> to vector<8x1xf32>
    %175 = tpu.reciprocal %174 {approx = true} : vector<8x1xf32> -> vector<8x1xf32>
    %176 = vector.broadcast %175 : vector<8x1xf32> to vector<8x8xf32>
    %177 = arith.mulf %172, %176 : vector<8x8xf32>
    %178 = arith.truncf %177 : vector<8x8xf32> to vector<8x8xbf16>
    %cst_52 = arith.constant dense<0.000000e+00> : vector<8x8xf32>
    %179 = tpu.matmul %178, %165, %cst_52 {dimension_numbers = #tpu.dot_dimension_numbers<[1], [0], [0], [1], [0, 0, 1, 1], [], []>} : vector<8x8xbf16>, vector<8x8xbf16>, vector<8x8xf32> -> vector<8x8xf32>
    %c8_53 = arith.constant 8 : index
    %c24_54 = arith.constant 24 : index
    %180 = vector.load %arg26[%c8_53, %c24_54] : memref<16x32xf32, #tpu.memory_space<vmem>>, vector<8x8xf32>
    tpu.vector_store %arg26[%c8_53, %c24_54], %179 {strides = array<i32>} : memref<16x32xf32, #tpu.memory_space<vmem>>, vector<8x8xf32>,
    %c0_55 = arith.constant 0 : index
    %c0_56 = arith.constant 0 : index
    %181 = vector.load %arg26[%c0_55, %c0_56] : memref<16x32xf32, #tpu.memory_space<vmem>>, vector<16x32xf32>
    %182 = arith.truncf %181 : vector<16x32xf32> to vector<16x32xbf16>
    %c0_57 = arith.constant 0 : index
    %c0_58 = arith.constant 0 : index
    %c0_59 = arith.constant 0 : index
    %183 = vector.load %arg7[%c0_57, %c0_58, %c0_59] : memref<1x32x32xbf16, #tpu.memory_space<vmem>>, vector<1x32x32xbf16>
    %184 = vector.shape_cast %183 : vector<1x32x32xbf16> to vector<32x32xbf16>
    %cst_60 = arith.constant dense<0.000000e+00> : vector<16x32xf32>
    %185 = tpu.matmul %182, %184, %cst_60 {dimension_numbers = #tpu.dot_dimension_numbers<[1], [0], [0], [1], [0, 0, 1, 1], [], []>} : vector<16x32xbf16>, vector<32x32xbf16>, vector<16x32xf32> -> vector<16x32xf32>
    %c0_61 = arith.constant 0 : index
    %c0_62 = arith.constant 0 : index
    %c0_63 = arith.constant 0 : index
    %186 = vector.load %arg8[%c0_61, %c0_62, %c0_63] : memref<1x1x32xf32, #tpu.memory_space<vmem>>, vector<1x1x32xf32>
    %187 = vector.shape_cast %186 : vector<1x1x32xf32> to vector<1x32xf32>
    %188 = vector.broadcast %187 : vector<1x32xf32> to vector<16x32xf32>
    %189 = arith.addf %185, %188 : vector<16x32xf32>
    %c0_64 = arith.constant 0 : index
    %c0_65 = arith.constant 0 : index
    %c0_66 = arith.constant 0 : index
    %190 = vector.load %arg9[%c0_64, %c0_65, %c0_66] : memref<1x1x32xf32, #tpu.memory_space<vmem>>, vector<1x1x32xf32>
    %191 = vector.shape_cast %190 : vector<1x1x32xf32> to vector<1x32xf32>
    %c0_67 = arith.constant 0 : index
    %c0_68 = arith.constant 0 : index
    %c0_69 = arith.constant 0 : index
    %192 = vector.load %arg10[%c0_67, %c0_68, %c0_69] : memref<1x1x32xf32, #tpu.memory_space<vmem>>, vector<1x1x32xf32>
    %193 = vector.shape_cast %192 : vector<1x1x32xf32> to vector<1x32xf32>
    %194 = arith.addf %3, %189 : vector<16x32xf32>
    %cst_70 = arith.constant dense<0.000000e+00> : vector<16xf32>
    %195 = vector.multi_reduction <add>, %194, %cst_70 [1] : vector<16x32xf32> to vector<16xf32>
    %196 = vector.shape_cast %195 : vector<16xf32> to vector<16x1xf32>
    %cst_71 = arith.constant 3.200000e+01 : f32
    %197 = vector.broadcast %cst_71 : f32 to vector<16x1xf32>
    %198 = arith.divf %196, %197 : vector<16x1xf32>
    %199 = vector.broadcast %198 : vector<16x1xf32> to vector<16x32xf32>
    %200 = arith.subf %194, %199 : vector<16x32xf32>
    %201 = arith.mulf %200, %200 : vector<16x32xf32>
    %cst_72 = arith.constant dense<0.000000e+00> : vector<16xf32>
    %202 = vector.multi_reduction <add>, %201, %cst_72 [1] : vector<16x32xf32> to vector<16xf32>
    %203 = vector.shape_cast %202 : vector<16xf32> to vector<16x1xf32>
    %cst_73 = arith.constant 3.200000e+01 : f32
    %204 = vector.broadcast %cst_73 : f32 to vector<16x1xf32>
    %205 = arith.divf %203, %204 : vector<16x1xf32>
    %206 = vector.broadcast %198 : vector<16x1xf32> to vector<16x32xf32>
    %207 = arith.subf %194, %206 : vector<16x32xf32>
    %cst_74 = arith.constant 9.99999974E-6 : f32
    %208 = vector.broadcast %cst_74 : f32 to vector<16x1xf32>
    %209 = arith.addf %205, %208 : vector<16x1xf32>
    %210 = math.rsqrt %209 : vector<16x1xf32>
    %211 = vector.broadcast %210 : vector<16x1xf32> to vector<16x32xf32>
    %212 = arith.mulf %207, %211 : vector<16x32xf32>
    %213 = vector.broadcast %191 : vector<1x32xf32> to vector<16x32xf32>
    %214 = arith.mulf %212, %213 : vector<16x32xf32>
    %215 = vector.broadcast %193 : vector<1x32xf32> to vector<16x32xf32>
    %216 = arith.addf %214, %215 : vector<16x32xf32>
    %217 = arith.truncf %216 : vector<16x32xf32> to vector<16x32xbf16>
    %c0_75 = arith.constant 0 : index
    %c0_76 = arith.constant 0 : index
    %c0_77 = arith.constant 0 : index
    %218 = vector.load %arg11[%c0_75, %c0_76, %c0_77] : memref<1x32x32xbf16, #tpu.memory_space<vmem>>, vector<1x32x32xbf16>
    %219 = vector.shape_cast %218 : vector<1x32x32xbf16> to vector<32x32xbf16>
    %cst_78 = arith.constant dense<0.000000e+00> : vector<16x32xf32>
    %220 = tpu.matmul %217, %219, %cst_78 {dimension_numbers = #tpu.dot_dimension_numbers<[1], [0], [0], [1], [0, 0, 1, 1], [], []>} : vector<16x32xbf16>, vector<32x32xbf16>, vector<16x32xf32> -> vector<16x32xf32>
    %c0_79 = arith.constant 0 : index
    %c0_80 = arith.constant 0 : index
    %c0_81 = arith.constant 0 : index
    %221 = vector.load %arg12[%c0_79, %c0_80, %c0_81] : memref<1x1x32xf32, #tpu.memory_space<vmem>>, vector<1x1x32xf32>
    %222 = vector.shape_cast %221 : vector<1x1x32xf32> to vector<1x32xf32>
    %223 = vector.broadcast %222 : vector<1x32xf32> to vector<16x32xf32>
    %224 = arith.addf %220, %223 : vector<16x32xf32>
    %c0_82 = arith.constant 0 : index
    %c0_83 = arith.constant 0 : index
    %225 = vector.load %arg3[%c0_82, %c0_83] : memref<20x32xf32, #tpu.memory_space<vmem>>, vector<20x32xf32>
    %226 = arith.truncf %225 : vector<20x32xf32> to vector<20x32xbf16>
    %c0_84 = arith.constant 0 : index
    %c0_85 = arith.constant 0 : index
    %c0_86 = arith.constant 0 : index
    %227 = vector.load %arg13[%c0_84, %c0_85, %c0_86] : memref<1x32x64xbf16, #tpu.memory_space<vmem>>, vector<1x32x64xbf16>
    %228 = vector.shape_cast %227 : vector<1x32x64xbf16> to vector<32x64xbf16>
    %cst_87 = arith.constant dense<0.000000e+00> : vector<20x64xf32>
    %229 = tpu.matmul %226, %228, %cst_87 {dimension_numbers = #tpu.dot_dimension_numbers<[1], [0], [0], [1], [0, 0, 1, 1], [], []>} : vector<20x32xbf16>, vector<32x64xbf16>, vector<20x64xf32> -> vector<20x64xf32>
    %c0_88 = arith.constant 0 : index
    %c0_89 = arith.constant 0 : index
    %c0_90 = arith.constant 0 : index
    %230 = vector.load %arg14[%c0_88, %c0_89, %c0_90] : memref<1x1x64xf32, #tpu.memory_space<vmem>>, vector<1x1x64xf32>
    %231 = vector.shape_cast %230 : vector<1x1x64xf32> to vector<1x64xf32>
    %232 = vector.broadcast %231 : vector<1x64xf32> to vector<20x64xf32>
    %233 = arith.addf %229, %232 : vector<20x64xf32>
    %234 = vector.extract_strided_slice %224 {offsets = [0, 0], sizes = [8, 8], strides = [1, 1]} : vector<16x32xf32> to vector<8x8xf32>
    %235 = arith.truncf %234 : vector<8x8xf32> to vector<8x8xbf16>
    %236 = vector.extract_strided_slice %233 {offsets = [0, 0], sizes = [10, 8], strides = [1, 1]} : vector<20x64xf32> to vector<10x8xf32>
    %237 = arith.truncf %236 : vector<10x8xf32> to vector<10x8xbf16>
    %238 = vector.extract_strided_slice %233 {offsets = [0, 32], sizes = [10, 8], strides = [1, 1]} : vector<20x64xf32> to vector<10x8xf32>
    %239 = arith.truncf %238 : vector<10x8xf32> to vector<10x8xbf16>
    %cst_91 = arith.constant dense<0.000000e+00> : vector<8x10xf32>
    %240 = tpu.matmul %235, %237, %cst_91 {dimension_numbers = #tpu.dot_dimension_numbers<[1], [1], [0], [0], [0, 0, 1, 0], [], []>} : vector<8x8xbf16>, vector<10x8xbf16>, vector<8x10xf32> -> vector<8x10xf32>
    %cst_92 = arith.constant dense<0xFF800000> : vector<8xf32>
    %241 = vector.multi_reduction <maximumf>, %240, %cst_92 [1] : vector<8x10xf32> to vector<8xf32>
    %242 = vector.shape_cast %241 : vector<8xf32> to vector<8x1xf32>
    %243 = vector.broadcast %242 : vector<8x1xf32> to vector<8x10xf32>
    %244 = arith.subf %240, %243 : vector<8x10xf32>
    %245 = math.exp %244 : vector<8x10xf32>
    %cst_93 = arith.constant dense<0.000000e+00> : vector<8xf32>
    %246 = vector.multi_reduction <add>, %245, %cst_93 [1] : vector<8x10xf32> to vector<8xf32>
    %247 = vector.shape_cast %246 : vector<8xf32> to vector<8x1xf32>
    %248 = tpu.reciprocal %247 {approx = true} : vector<8x1xf32> -> vector<8x1xf32>
    %249 = vector.broadcast %248 : vector<8x1xf32> to vector<8x10xf32>
    %250 = arith.mulf %245, %249 : vector<8x10xf32>
    %251 = arith.truncf %250 : vector<8x10xf32> to vector<8x10xbf16>
    %cst_94 = arith.constant dense<0.000000e+00> : vector<8x8xf32>
    %252 = tpu.matmul %251, %239, %cst_94 {dimension_numbers = #tpu.dot_dimension_numbers<[1], [0], [0], [1], [0, 0, 1, 1], [], []>} : vector<8x10xbf16>, vector<10x8xbf16>, vector<8x8xf32> -> vector<8x8xf32>
    %c0_95 = arith.constant 0 : index
    %c0_96 = arith.constant 0 : index
    %253 = vector.load %arg26[%c0_95, %c0_96] : memref<16x32xf32, #tpu.memory_space<vmem>>, vector<8x8xf32>
    tpu.vector_store %arg26[%c0_95, %c0_96], %252 {strides = array<i32>} : memref<16x32xf32, #tpu.memory_space<vmem>>, vector<8x8xf32>,
    %254 = vector.extract_strided_slice %224 {offsets = [0, 8], sizes = [8, 8], strides = [1, 1]} : vector<16x32xf32> to vector<8x8xf32>
    %255 = arith.truncf %254 : vector<8x8xf32> to vector<8x8xbf16>
    %256 = vector.extract_strided_slice %233 {offsets = [0, 8], sizes = [10, 8], strides = [1, 1]} : vector<20x64xf32> to vector<10x8xf32>
    %257 = arith.truncf %256 : vector<10x8xf32> to vector<10x8xbf16>
    %258 = vector.extract_strided_slice %233 {offsets = [0, 40], sizes = [10, 8], strides = [1, 1]} : vector<20x64xf32> to vector<10x8xf32>
    %259 = arith.truncf %258 : vector<10x8xf32> to vector<10x8xbf16>
    %cst_97 = arith.constant dense<0.000000e+00> : vector<8x10xf32>
    %260 = tpu.matmul %255, %257, %cst_97 {dimension_numbers = #tpu.dot_dimension_numbers<[1], [1], [0], [0], [0, 0, 1, 0], [], []>} : vector<8x8xbf16>, vector<10x8xbf16>, vector<8x10xf32> -> vector<8x10xf32>
    %cst_98 = arith.constant dense<0xFF800000> : vector<8xf32>
    %261 = vector.multi_reduction <maximumf>, %260, %cst_98 [1] : vector<8x10xf32> to vector<8xf32>
    %262 = vector.shape_cast %261 : vector<8xf32> to vector<8x1xf32>
    %263 = vector.broadcast %262 : vector<8x1xf32> to vector<8x10xf32>
    %264 = arith.subf %260, %263 : vector<8x10xf32>
    %265 = math.exp %264 : vector<8x10xf32>
    %cst_99 = arith.constant dense<0.000000e+00> : vector<8xf32>
    %266 = vector.multi_reduction <add>, %265, %cst_99 [1] : vector<8x10xf32> to vector<8xf32>
    %267 = vector.shape_cast %266 : vector<8xf32> to vector<8x1xf32>
    %268 = tpu.reciprocal %267 {approx = true} : vector<8x1xf32> -> vector<8x1xf32>
    %269 = vector.broadcast %268 : vector<8x1xf32> to vector<8x10xf32>
    %270 = arith.mulf %265, %269 : vector<8x10xf32>
    %271 = arith.truncf %270 : vector<8x10xf32> to vector<8x10xbf16>
    %cst_100 = arith.constant dense<0.000000e+00> : vector<8x8xf32>
    %272 = tpu.matmul %271, %259, %cst_100 {dimension_numbers = #tpu.dot_dimension_numbers<[1], [0], [0], [1], [0, 0, 1, 1], [], []>} : vector<8x10xbf16>, vector<10x8xbf16>, vector<8x8xf32> -> vector<8x8xf32>
    %c0_101 = arith.constant 0 : index
    %c8_102 = arith.constant 8 : index
    %273 = vector.load %arg26[%c0_101, %c8_102] : memref<16x32xf32, #tpu.memory_space<vmem>>, vector<8x8xf32>
    tpu.vector_store %arg26[%c0_101, %c8_102], %272 {strides = array<i32>} : memref<16x32xf32, #tpu.memory_space<vmem>>, vector<8x8xf32>,
    %274 = vector.extract_strided_slice %224 {offsets = [0, 16], sizes = [8, 8], strides = [1, 1]} : vector<16x32xf32> to vector<8x8xf32>
    %275 = arith.truncf %274 : vector<8x8xf32> to vector<8x8xbf16>
    %276 = vector.extract_strided_slice %233 {offsets = [0, 16], sizes = [10, 8], strides = [1, 1]} : vector<20x64xf32> to vector<10x8xf32>
    %277 = arith.truncf %276 : vector<10x8xf32> to vector<10x8xbf16>
    %278 = vector.extract_strided_slice %233 {offsets = [0, 48], sizes = [10, 8], strides = [1, 1]} : vector<20x64xf32> to vector<10x8xf32>
    %279 = arith.truncf %278 : vector<10x8xf32> to vector<10x8xbf16>
    %cst_103 = arith.constant dense<0.000000e+00> : vector<8x10xf32>
    %280 = tpu.matmul %275, %277, %cst_103 {dimension_numbers = #tpu.dot_dimension_numbers<[1], [1], [0], [0], [0, 0, 1, 0], [], []>} : vector<8x8xbf16>, vector<10x8xbf16>, vector<8x10xf32> -> vector<8x10xf32>
    %cst_104 = arith.constant dense<0xFF800000> : vector<8xf32>
    %281 = vector.multi_reduction <maximumf>, %280, %cst_104 [1] : vector<8x10xf32> to vector<8xf32>
    %282 = vector.shape_cast %281 : vector<8xf32> to vector<8x1xf32>
    %283 = vector.broadcast %282 : vector<8x1xf32> to vector<8x10xf32>
    %284 = arith.subf %280, %283 : vector<8x10xf32>
    %285 = math.exp %284 : vector<8x10xf32>
    %cst_105 = arith.constant dense<0.000000e+00> : vector<8xf32>
    %286 = vector.multi_reduction <add>, %285, %cst_105 [1] : vector<8x10xf32> to vector<8xf32>
    %287 = vector.shape_cast %286 : vector<8xf32> to vector<8x1xf32>
    %288 = tpu.reciprocal %287 {approx = true} : vector<8x1xf32> -> vector<8x1xf32>
    %289 = vector.broadcast %288 : vector<8x1xf32> to vector<8x10xf32>
    %290 = arith.mulf %285, %289 : vector<8x10xf32>
    %291 = arith.truncf %290 : vector<8x10xf32> to vector<8x10xbf16>
    %cst_106 = arith.constant dense<0.000000e+00> : vector<8x8xf32>
    %292 = tpu.matmul %291, %279, %cst_106 {dimension_numbers = #tpu.dot_dimension_numbers<[1], [0], [0], [1], [0, 0, 1, 1], [], []>} : vector<8x10xbf16>, vector<10x8xbf16>, vector<8x8xf32> -> vector<8x8xf32>
    %c0_107 = arith.constant 0 : index
    %c16_108 = arith.constant 16 : index
    %293 = vector.load %arg26[%c0_107, %c16_108] : memref<16x32xf32, #tpu.memory_space<vmem>>, vector<8x8xf32>
    tpu.vector_store %arg26[%c0_107, %c16_108], %292 {strides = array<i32>} : memref<16x32xf32, #tpu.memory_space<vmem>>, vector<8x8xf32>,
    %294 = vector.extract_strided_slice %224 {offsets = [0, 24], sizes = [8, 8], strides = [1, 1]} : vector<16x32xf32> to vector<8x8xf32>
    %295 = arith.truncf %294 : vector<8x8xf32> to vector<8x8xbf16>
    %296 = vector.extract_strided_slice %233 {offsets = [0, 24], sizes = [10, 8], strides = [1, 1]} : vector<20x64xf32> to vector<10x8xf32>
    %297 = arith.truncf %296 : vector<10x8xf32> to vector<10x8xbf16>
    %298 = vector.extract_strided_slice %233 {offsets = [0, 56], sizes = [10, 8], strides = [1, 1]} : vector<20x64xf32> to vector<10x8xf32>
    %299 = arith.truncf %298 : vector<10x8xf32> to vector<10x8xbf16>
    %cst_109 = arith.constant dense<0.000000e+00> : vector<8x10xf32>
    %300 = tpu.matmul %295, %297, %cst_109 {dimension_numbers = #tpu.dot_dimension_numbers<[1], [1], [0], [0], [0, 0, 1, 0], [], []>} : vector<8x8xbf16>, vector<10x8xbf16>, vector<8x10xf32> -> vector<8x10xf32>
    %cst_110 = arith.constant dense<0xFF800000> : vector<8xf32>
    %301 = vector.multi_reduction <maximumf>, %300, %cst_110 [1] : vector<8x10xf32> to vector<8xf32>
    %302 = vector.shape_cast %301 : vector<8xf32> to vector<8x1xf32>
    %303 = vector.broadcast %302 : vector<8x1xf32> to vector<8x10xf32>
    %304 = arith.subf %300, %303 : vector<8x10xf32>
    %305 = math.exp %304 : vector<8x10xf32>
    %cst_111 = arith.constant dense<0.000000e+00> : vector<8xf32>
    %306 = vector.multi_reduction <add>, %305, %cst_111 [1] : vector<8x10xf32> to vector<8xf32>
    %307 = vector.shape_cast %306 : vector<8xf32> to vector<8x1xf32>
    %308 = tpu.reciprocal %307 {approx = true} : vector<8x1xf32> -> vector<8x1xf32>
    %309 = vector.broadcast %308 : vector<8x1xf32> to vector<8x10xf32>
    %310 = arith.mulf %305, %309 : vector<8x10xf32>
    %311 = arith.truncf %310 : vector<8x10xf32> to vector<8x10xbf16>
    %cst_112 = arith.constant dense<0.000000e+00> : vector<8x8xf32>
    %312 = tpu.matmul %311, %299, %cst_112 {dimension_numbers = #tpu.dot_dimension_numbers<[1], [0], [0], [1], [0, 0, 1, 1], [], []>} : vector<8x10xbf16>, vector<10x8xbf16>, vector<8x8xf32> -> vector<8x8xf32>
    %c0_113 = arith.constant 0 : index
    %c24_114 = arith.constant 24 : index
    %313 = vector.load %arg26[%c0_113, %c24_114] : memref<16x32xf32, #tpu.memory_space<vmem>>, vector<8x8xf32>
    tpu.vector_store %arg26[%c0_113, %c24_114], %312 {strides = array<i32>} : memref<16x32xf32, #tpu.memory_space<vmem>>, vector<8x8xf32>,
    %314 = vector.extract_strided_slice %224 {offsets = [8, 0], sizes = [8, 8], strides = [1, 1]} : vector<16x32xf32> to vector<8x8xf32>
    %315 = arith.truncf %314 : vector<8x8xf32> to vector<8x8xbf16>
    %316 = vector.extract_strided_slice %233 {offsets = [10, 0], sizes = [10, 8], strides = [1, 1]} : vector<20x64xf32> to vector<10x8xf32>
    %317 = arith.truncf %316 : vector<10x8xf32> to vector<10x8xbf16>
    %318 = vector.extract_strided_slice %233 {offsets = [10, 32], sizes = [10, 8], strides = [1, 1]} : vector<20x64xf32> to vector<10x8xf32>
    %319 = arith.truncf %318 : vector<10x8xf32> to vector<10x8xbf16>
    %cst_115 = arith.constant dense<0.000000e+00> : vector<8x10xf32>
    %320 = tpu.matmul %315, %317, %cst_115 {dimension_numbers = #tpu.dot_dimension_numbers<[1], [1], [0], [0], [0, 0, 1, 0], [], []>} : vector<8x8xbf16>, vector<10x8xbf16>, vector<8x10xf32> -> vector<8x10xf32>
    %cst_116 = arith.constant dense<0xFF800000> : vector<8xf32>
    %321 = vector.multi_reduction <maximumf>, %320, %cst_116 [1] : vector<8x10xf32> to vector<8xf32>
    %322 = vector.shape_cast %321 : vector<8xf32> to vector<8x1xf32>
    %323 = vector.broadcast %322 : vector<8x1xf32> to vector<8x10xf32>
    %324 = arith.subf %320, %323 : vector<8x10xf32>
    %325 = math.exp %324 : vector<8x10xf32>
    %cst_117 = arith.constant dense<0.000000e+00> : vector<8xf32>
    %326 = vector.multi_reduction <add>, %325, %cst_117 [1] : vector<8x10xf32> to vector<8xf32>
    %327 = vector.shape_cast %326 : vector<8xf32> to vector<8x1xf32>
    %328 = tpu.reciprocal %327 {approx = true} : vector<8x1xf32> -> vector<8x1xf32>
    %329 = vector.broadcast %328 : vector<8x1xf32> to vector<8x10xf32>
    %330 = arith.mulf %325, %329 : vector<8x10xf32>
    %331 = arith.truncf %330 : vector<8x10xf32> to vector<8x10xbf16>
    %cst_118 = arith.constant dense<0.000000e+00> : vector<8x8xf32>
    %332 = tpu.matmul %331, %319, %cst_118 {dimension_numbers = #tpu.dot_dimension_numbers<[1], [0], [0], [1], [0, 0, 1, 1], [], []>} : vector<8x10xbf16>, vector<10x8xbf16>, vector<8x8xf32> -> vector<8x8xf32>
    %c8_119 = arith.constant 8 : index
    %c0_120 = arith.constant 0 : index
    %333 = vector.load %arg26[%c8_119, %c0_120] : memref<16x32xf32, #tpu.memory_space<vmem>>, vector<8x8xf32>
    tpu.vector_store %arg26[%c8_119, %c0_120], %332 {strides = array<i32>} : memref<16x32xf32, #tpu.memory_space<vmem>>, vector<8x8xf32>,
    %334 = vector.extract_strided_slice %224 {offsets = [8, 8], sizes = [8, 8], strides = [1, 1]} : vector<16x32xf32> to vector<8x8xf32>
    %335 = arith.truncf %334 : vector<8x8xf32> to vector<8x8xbf16>
    %336 = vector.extract_strided_slice %233 {offsets = [10, 8], sizes = [10, 8], strides = [1, 1]} : vector<20x64xf32> to vector<10x8xf32>
    %337 = arith.truncf %336 : vector<10x8xf32> to vector<10x8xbf16>
    %338 = vector.extract_strided_slice %233 {offsets = [10, 40], sizes = [10, 8], strides = [1, 1]} : vector<20x64xf32> to vector<10x8xf32>
    %339 = arith.truncf %338 : vector<10x8xf32> to vector<10x8xbf16>
    %cst_121 = arith.constant dense<0.000000e+00> : vector<8x10xf32>
    %340 = tpu.matmul %335, %337, %cst_121 {dimension_numbers = #tpu.dot_dimension_numbers<[1], [1], [0], [0], [0, 0, 1, 0], [], []>} : vector<8x8xbf16>, vector<10x8xbf16>, vector<8x10xf32> -> vector<8x10xf32>
    %cst_122 = arith.constant dense<0xFF800000> : vector<8xf32>
    %341 = vector.multi_reduction <maximumf>, %340, %cst_122 [1] : vector<8x10xf32> to vector<8xf32>
    %342 = vector.shape_cast %341 : vector<8xf32> to vector<8x1xf32>
    %343 = vector.broadcast %342 : vector<8x1xf32> to vector<8x10xf32>
    %344 = arith.subf %340, %343 : vector<8x10xf32>
    %345 = math.exp %344 : vector<8x10xf32>
    %cst_123 = arith.constant dense<0.000000e+00> : vector<8xf32>
    %346 = vector.multi_reduction <add>, %345, %cst_123 [1] : vector<8x10xf32> to vector<8xf32>
    %347 = vector.shape_cast %346 : vector<8xf32> to vector<8x1xf32>
    %348 = tpu.reciprocal %347 {approx = true} : vector<8x1xf32> -> vector<8x1xf32>
    %349 = vector.broadcast %348 : vector<8x1xf32> to vector<8x10xf32>
    %350 = arith.mulf %345, %349 : vector<8x10xf32>
    %351 = arith.truncf %350 : vector<8x10xf32> to vector<8x10xbf16>
    %cst_124 = arith.constant dense<0.000000e+00> : vector<8x8xf32>
    %352 = tpu.matmul %351, %339, %cst_124 {dimension_numbers = #tpu.dot_dimension_numbers<[1], [0], [0], [1], [0, 0, 1, 1], [], []>} : vector<8x10xbf16>, vector<10x8xbf16>, vector<8x8xf32> -> vector<8x8xf32>
    %c8_125 = arith.constant 8 : index
    %c8_126 = arith.constant 8 : index
    %353 = vector.load %arg26[%c8_125, %c8_126] : memref<16x32xf32, #tpu.memory_space<vmem>>, vector<8x8xf32>
    tpu.vector_store %arg26[%c8_125, %c8_126], %352 {strides = array<i32>} : memref<16x32xf32, #tpu.memory_space<vmem>>, vector<8x8xf32>,
    %354 = vector.extract_strided_slice %224 {offsets = [8, 16], sizes = [8, 8], strides = [1, 1]} : vector<16x32xf32> to vector<8x8xf32>
    %355 = arith.truncf %354 : vector<8x8xf32> to vector<8x8xbf16>
    %356 = vector.extract_strided_slice %233 {offsets = [10, 16], sizes = [10, 8], strides = [1, 1]} : vector<20x64xf32> to vector<10x8xf32>
    %357 = arith.truncf %356 : vector<10x8xf32> to vector<10x8xbf16>
    %358 = vector.extract_strided_slice %233 {offsets = [10, 48], sizes = [10, 8], strides = [1, 1]} : vector<20x64xf32> to vector<10x8xf32>
    %359 = arith.truncf %358 : vector<10x8xf32> to vector<10x8xbf16>
    %cst_127 = arith.constant dense<0.000000e+00> : vector<8x10xf32>
    %360 = tpu.matmul %355, %357, %cst_127 {dimension_numbers = #tpu.dot_dimension_numbers<[1], [1], [0], [0], [0, 0, 1, 0], [], []>} : vector<8x8xbf16>, vector<10x8xbf16>, vector<8x10xf32> -> vector<8x10xf32>
    %cst_128 = arith.constant dense<0xFF800000> : vector<8xf32>
    %361 = vector.multi_reduction <maximumf>, %360, %cst_128 [1] : vector<8x10xf32> to vector<8xf32>
    %362 = vector.shape_cast %361 : vector<8xf32> to vector<8x1xf32>
    %363 = vector.broadcast %362 : vector<8x1xf32> to vector<8x10xf32>
    %364 = arith.subf %360, %363 : vector<8x10xf32>
    %365 = math.exp %364 : vector<8x10xf32>
    %cst_129 = arith.constant dense<0.000000e+00> : vector<8xf32>
    %366 = vector.multi_reduction <add>, %365, %cst_129 [1] : vector<8x10xf32> to vector<8xf32>
    %367 = vector.shape_cast %366 : vector<8xf32> to vector<8x1xf32>
    %368 = tpu.reciprocal %367 {approx = true} : vector<8x1xf32> -> vector<8x1xf32>
    %369 = vector.broadcast %368 : vector<8x1xf32> to vector<8x10xf32>
    %370 = arith.mulf %365, %369 : vector<8x10xf32>
    %371 = arith.truncf %370 : vector<8x10xf32> to vector<8x10xbf16>
    %cst_130 = arith.constant dense<0.000000e+00> : vector<8x8xf32>
    %372 = tpu.matmul %371, %359, %cst_130 {dimension_numbers = #tpu.dot_dimension_numbers<[1], [0], [0], [1], [0, 0, 1, 1], [], []>} : vector<8x10xbf16>, vector<10x8xbf16>, vector<8x8xf32> -> vector<8x8xf32>
    %c8_131 = arith.constant 8 : index
    %c16_132 = arith.constant 16 : index
    %373 = vector.load %arg26[%c8_131, %c16_132] : memref<16x32xf32, #tpu.memory_space<vmem>>, vector<8x8xf32>
    tpu.vector_store %arg26[%c8_131, %c16_132], %372 {strides = array<i32>} : memref<16x32xf32, #tpu.memory_space<vmem>>, vector<8x8xf32>,
    %374 = vector.extract_strided_slice %224 {offsets = [8, 24], sizes = [8, 8], strides = [1, 1]} : vector<16x32xf32> to vector<8x8xf32>
    %375 = arith.truncf %374 : vector<8x8xf32> to vector<8x8xbf16>
    %376 = vector.extract_strided_slice %233 {offsets = [10, 24], sizes = [10, 8], strides = [1, 1]} : vector<20x64xf32> to vector<10x8xf32>
    %377 = arith.truncf %376 : vector<10x8xf32> to vector<10x8xbf16>
    %378 = vector.extract_strided_slice %233 {offsets = [10, 56], sizes = [10, 8], strides = [1, 1]} : vector<20x64xf32> to vector<10x8xf32>
    %379 = arith.truncf %378 : vector<10x8xf32> to vector<10x8xbf16>
    %cst_133 = arith.constant dense<0.000000e+00> : vector<8x10xf32>
    %380 = tpu.matmul %375, %377, %cst_133 {dimension_numbers = #tpu.dot_dimension_numbers<[1], [1], [0], [0], [0, 0, 1, 0], [], []>} : vector<8x8xbf16>, vector<10x8xbf16>, vector<8x10xf32> -> vector<8x10xf32>
    %cst_134 = arith.constant dense<0xFF800000> : vector<8xf32>
    %381 = vector.multi_reduction <maximumf>, %380, %cst_134 [1] : vector<8x10xf32> to vector<8xf32>
    %382 = vector.shape_cast %381 : vector<8xf32> to vector<8x1xf32>
    %383 = vector.broadcast %382 : vector<8x1xf32> to vector<8x10xf32>
    %384 = arith.subf %380, %383 : vector<8x10xf32>
    %385 = math.exp %384 : vector<8x10xf32>
    %cst_135 = arith.constant dense<0.000000e+00> : vector<8xf32>
    %386 = vector.multi_reduction <add>, %385, %cst_135 [1] : vector<8x10xf32> to vector<8xf32>
    %387 = vector.shape_cast %386 : vector<8xf32> to vector<8x1xf32>
    %388 = tpu.reciprocal %387 {approx = true} : vector<8x1xf32> -> vector<8x1xf32>
    %389 = vector.broadcast %388 : vector<8x1xf32> to vector<8x10xf32>
    %390 = arith.mulf %385, %389 : vector<8x10xf32>
    %391 = arith.truncf %390 : vector<8x10xf32> to vector<8x10xbf16>
    %cst_136 = arith.constant dense<0.000000e+00> : vector<8x8xf32>
    %392 = tpu.matmul %391, %379, %cst_136 {dimension_numbers = #tpu.dot_dimension_numbers<[1], [0], [0], [1], [0, 0, 1, 1], [], []>} : vector<8x10xbf16>, vector<10x8xbf16>, vector<8x8xf32> -> vector<8x8xf32>
    %c8_137 = arith.constant 8 : index
    %c24_138 = arith.constant 24 : index
    %393 = vector.load %arg26[%c8_137, %c24_138] : memref<16x32xf32, #tpu.memory_space<vmem>>, vector<8x8xf32>
    tpu.vector_store %arg26[%c8_137, %c24_138], %392 {strides = array<i32>} : memref<16x32xf32, #tpu.memory_space<vmem>>, vector<8x8xf32>,
    %c0_139 = arith.constant 0 : index
    %c0_140 = arith.constant 0 : index
    %394 = vector.load %arg26[%c0_139, %c0_140] : memref<16x32xf32, #tpu.memory_space<vmem>>, vector<16x32xf32>
    %395 = arith.truncf %394 : vector<16x32xf32> to vector<16x32xbf16>
    %c0_141 = arith.constant 0 : index
    %c0_142 = arith.constant 0 : index
    %c0_143 = arith.constant 0 : index
    %396 = vector.load %arg15[%c0_141, %c0_142, %c0_143] : memref<1x32x32xbf16, #tpu.memory_space<vmem>>, vector<1x32x32xbf16>
    %397 = vector.shape_cast %396 : vector<1x32x32xbf16> to vector<32x32xbf16>
    %cst_144 = arith.constant dense<0.000000e+00> : vector<16x32xf32>
    %398 = tpu.matmul %395, %397, %cst_144 {dimension_numbers = #tpu.dot_dimension_numbers<[1], [0], [0], [1], [0, 0, 1, 1], [], []>} : vector<16x32xbf16>, vector<32x32xbf16>, vector<16x32xf32> -> vector<16x32xf32>
    %c0_145 = arith.constant 0 : index
    %c0_146 = arith.constant 0 : index
    %c0_147 = arith.constant 0 : index
    %399 = vector.load %arg16[%c0_145, %c0_146, %c0_147] : memref<1x1x32xf32, #tpu.memory_space<vmem>>, vector<1x1x32xf32>
    %400 = vector.shape_cast %399 : vector<1x1x32xf32> to vector<1x32xf32>
    %401 = vector.broadcast %400 : vector<1x32xf32> to vector<16x32xf32>
    %402 = arith.addf %398, %401 : vector<16x32xf32>
    %c0_148 = arith.constant 0 : index
    %c0_149 = arith.constant 0 : index
    %c0_150 = arith.constant 0 : index
    %403 = vector.load %arg17[%c0_148, %c0_149, %c0_150] : memref<1x1x32xf32, #tpu.memory_space<vmem>>, vector<1x1x32xf32>
    %404 = vector.shape_cast %403 : vector<1x1x32xf32> to vector<1x32xf32>
    %c0_151 = arith.constant 0 : index
    %c0_152 = arith.constant 0 : index
    %c0_153 = arith.constant 0 : index
    %405 = vector.load %arg18[%c0_151, %c0_152, %c0_153] : memref<1x1x32xf32, #tpu.memory_space<vmem>>, vector<1x1x32xf32>
    %406 = vector.shape_cast %405 : vector<1x1x32xf32> to vector<1x32xf32>
    %407 = arith.addf %216, %402 : vector<16x32xf32>
    %cst_154 = arith.constant dense<0.000000e+00> : vector<16xf32>
    %408 = vector.multi_reduction <add>, %407, %cst_154 [1] : vector<16x32xf32> to vector<16xf32>
    %409 = vector.shape_cast %408 : vector<16xf32> to vector<16x1xf32>
    %cst_155 = arith.constant 3.200000e+01 : f32
    %410 = vector.broadcast %cst_155 : f32 to vector<16x1xf32>
    %411 = arith.divf %409, %410 : vector<16x1xf32>
    %412 = vector.broadcast %411 : vector<16x1xf32> to vector<16x32xf32>
    %413 = arith.subf %407, %412 : vector<16x32xf32>
    %414 = arith.mulf %413, %413 : vector<16x32xf32>
    %cst_156 = arith.constant dense<0.000000e+00> : vector<16xf32>
    %415 = vector.multi_reduction <add>, %414, %cst_156 [1] : vector<16x32xf32> to vector<16xf32>
    %416 = vector.shape_cast %415 : vector<16xf32> to vector<16x1xf32>
    %cst_157 = arith.constant 3.200000e+01 : f32
    %417 = vector.broadcast %cst_157 : f32 to vector<16x1xf32>
    %418 = arith.divf %416, %417 : vector<16x1xf32>
    %419 = vector.broadcast %411 : vector<16x1xf32> to vector<16x32xf32>
    %420 = arith.subf %407, %419 : vector<16x32xf32>
    %cst_158 = arith.constant 9.99999974E-6 : f32
    %421 = vector.broadcast %cst_158 : f32 to vector<16x1xf32>
    %422 = arith.addf %418, %421 : vector<16x1xf32>
    %423 = math.rsqrt %422 : vector<16x1xf32>
    %424 = vector.broadcast %423 : vector<16x1xf32> to vector<16x32xf32>
    %425 = arith.mulf %420, %424 : vector<16x32xf32>
    %426 = vector.broadcast %404 : vector<1x32xf32> to vector<16x32xf32>
    %427 = arith.mulf %425, %426 : vector<16x32xf32>
    %428 = vector.broadcast %406 : vector<1x32xf32> to vector<16x32xf32>
    %429 = arith.addf %427, %428 : vector<16x32xf32>
    %430 = arith.truncf %429 : vector<16x32xf32> to vector<16x32xbf16>
    %c0_159 = arith.constant 0 : index
    %c0_160 = arith.constant 0 : index
    %c0_161 = arith.constant 0 : index
    %431 = vector.load %arg19[%c0_159, %c0_160, %c0_161] : memref<1x32x64xbf16, #tpu.memory_space<vmem>>, vector<1x32x64xbf16>
    %432 = vector.shape_cast %431 : vector<1x32x64xbf16> to vector<32x64xbf16>
    %cst_162 = arith.constant dense<0.000000e+00> : vector<16x64xf32>
    %433 = tpu.matmul %430, %432, %cst_162 {dimension_numbers = #tpu.dot_dimension_numbers<[1], [0], [0], [1], [0, 0, 1, 1], [], []>} : vector<16x32xbf16>, vector<32x64xbf16>, vector<16x64xf32> -> vector<16x64xf32>
    %c0_163 = arith.constant 0 : index
    %c0_164 = arith.constant 0 : index
    %c0_165 = arith.constant 0 : index
    %434 = vector.load %arg20[%c0_163, %c0_164, %c0_165] : memref<1x1x64xf32, #tpu.memory_space<vmem>>, vector<1x1x64xf32>
    %435 = vector.shape_cast %434 : vector<1x1x64xf32> to vector<1x64xf32>
    %436 = vector.broadcast %435 : vector<1x64xf32> to vector<16x64xf32>
    %437 = arith.addf %433, %436 : vector<16x64xf32>
    %cst_166 = arith.constant 0.000000e+00 : f32
    %438 = vector.broadcast %cst_166 : f32 to vector<16x64xf32>
    %439 = arith.maximumf %437, %438 : vector<16x64xf32>
    %440 = arith.truncf %439 : vector<16x64xf32> to vector<16x64xbf16>
    %c0_167 = arith.constant 0 : index
    %c0_168 = arith.constant 0 : index
    %c0_169 = arith.constant 0 : index
    %441 = vector.load %arg21[%c0_167, %c0_168, %c0_169] : memref<1x64x32xbf16, #tpu.memory_space<vmem>>, vector<1x64x32xbf16>
    %442 = vector.shape_cast %441 : vector<1x64x32xbf16> to vector<64x32xbf16>
    %cst_170 = arith.constant dense<0.000000e+00> : vector<16x32xf32>
    %443 = tpu.matmul %440, %442, %cst_170 {dimension_numbers = #tpu.dot_dimension_numbers<[1], [0], [0], [1], [0, 0, 1, 1], [], []>} : vector<16x64xbf16>, vector<64x32xbf16>, vector<16x32xf32> -> vector<16x32xf32>
    %c0_171 = arith.constant 0 : index
    %c0_172 = arith.constant 0 : index
    %c0_173 = arith.constant 0 : index
    %444 = vector.load %arg22[%c0_171, %c0_172, %c0_173] : memref<1x1x32xf32, #tpu.memory_space<vmem>>, vector<1x1x32xf32>
    %445 = vector.shape_cast %444 : vector<1x1x32xf32> to vector<1x32xf32>
    %446 = vector.broadcast %445 : vector<1x32xf32> to vector<16x32xf32>
    %447 = arith.addf %443, %446 : vector<16x32xf32>
    %c0_174 = arith.constant 0 : index
    %c0_175 = arith.constant 0 : index
    %c0_176 = arith.constant 0 : index
    %448 = vector.load %arg23[%c0_174, %c0_175, %c0_176] : memref<1x1x32xf32, #tpu.memory_space<vmem>>, vector<1x1x32xf32>
    %449 = vector.shape_cast %448 : vector<1x1x32xf32> to vector<1x32xf32>
    %c0_177 = arith.constant 0 : index
    %c0_178 = arith.constant 0 : index
    %c0_179 = arith.constant 0 : index
    %450 = vector.load %arg24[%c0_177, %c0_178, %c0_179] : memref<1x1x32xf32, #tpu.memory_space<vmem>>, vector<1x1x32xf32>
    %451 = vector.shape_cast %450 : vector<1x1x32xf32> to vector<1x32xf32>
    %452 = arith.addf %429, %447 : vector<16x32xf32>
    %cst_180 = arith.constant dense<0.000000e+00> : vector<16xf32>
    %453 = vector.multi_reduction <add>, %452, %cst_180 [1] : vector<16x32xf32> to vector<16xf32>
    %454 = vector.shape_cast %453 : vector<16xf32> to vector<16x1xf32>
    %cst_181 = arith.constant 3.200000e+01 : f32
    %455 = vector.broadcast %cst_181 : f32 to vector<16x1xf32>
    %456 = arith.divf %454, %455 : vector<16x1xf32>
    %457 = vector.broadcast %456 : vector<16x1xf32> to vector<16x32xf32>
    %458 = arith.subf %452, %457 : vector<16x32xf32>
    %459 = arith.mulf %458, %458 : vector<16x32xf32>
    %cst_182 = arith.constant dense<0.000000e+00> : vector<16xf32>
    %460 = vector.multi_reduction <add>, %459, %cst_182 [1] : vector<16x32xf32> to vector<16xf32>
    %461 = vector.shape_cast %460 : vector<16xf32> to vector<16x1xf32>
    %cst_183 = arith.constant 3.200000e+01 : f32
    %462 = vector.broadcast %cst_183 : f32 to vector<16x1xf32>
    %463 = arith.divf %461, %462 : vector<16x1xf32>
    %464 = vector.broadcast %456 : vector<16x1xf32> to vector<16x32xf32>
    %465 = arith.subf %452, %464 : vector<16x32xf32>
    %cst_184 = arith.constant 9.99999974E-6 : f32
    %466 = vector.broadcast %cst_184 : f32 to vector<16x1xf32>
    %467 = arith.addf %463, %466 : vector<16x1xf32>
    %468 = math.rsqrt %467 : vector<16x1xf32>
    %469 = vector.broadcast %468 : vector<16x1xf32> to vector<16x32xf32>
    %470 = arith.mulf %465, %469 : vector<16x32xf32>
    %471 = vector.broadcast %449 : vector<1x32xf32> to vector<16x32xf32>
    %472 = arith.mulf %470, %471 : vector<16x32xf32>
    %473 = vector.broadcast %451 : vector<1x32xf32> to vector<16x32xf32>
    %474 = arith.addf %472, %473 : vector<16x32xf32>
    %c0_185 = arith.constant 0 : index
    %c0_186 = arith.constant 0 : index
    %475 = vector.load %arg25[%c0_185, %c0_186] : memref<16x32xf32, #tpu.memory_space<vmem>>, vector<16x32xf32>
    tpu.vector_store %arg25[%c0_185, %c0_186], %474 {strides = array<i32>} : memref<16x32xf32, #tpu.memory_space<vmem>>, vector<16x32xf32>,
    return
  }
  func.func @transform_0(%arg0: i32, %arg1: i32) -> (i32, i32) {
    %c0_i32 = arith.constant 0 : i32
    %c0_i32_0 = arith.constant 0 : i32
    return %arg0, %c0_i32 : i32, i32
  }
  func.func @transform_1(%arg0: i32, %arg1: i32) -> (i32, i32) {
    %c0_i32 = arith.constant 0 : i32
    %c0_i32_0 = arith.constant 0 : i32
    return %arg0, %c0_i32 : i32, i32
  }
  func.func @transform_2(%arg0: i32, %arg1: i32) -> (i32, i32) {
    %c0_i32 = arith.constant 0 : i32
    %c0_i32_0 = arith.constant 0 : i32
    %c0_i32_1 = arith.constant 0 : i32
    return %c0_i32, %c0_i32_0 : i32, i32
  }
  func.func @transform_3(%arg0: i32, %arg1: i32) -> (i32, i32, i32) {
    %c0_i32 = arith.constant 0 : i32
    %c0_i32_0 = arith.constant 0 : i32
    %c0_i32_1 = arith.constant 0 : i32
    return %arg1, %c0_i32, %c0_i32_0 : i32, i32, i32
  }
  func.func @transform_4(%arg0: i32, %arg1: i32) -> (i32, i32, i32) {
    %c0_i32 = arith.constant 0 : i32
    %c0_i32_0 = arith.constant 0 : i32
    %c0_i32_1 = arith.constant 0 : i32
    return %arg1, %c0_i32, %c0_i32_0 : i32, i32, i32
  }
  func.func @transform_5(%arg0: i32, %arg1: i32) -> (i32, i32, i32) {
    %c0_i32 = arith.constant 0 : i32
    %c0_i32_0 = arith.constant 0 : i32
    %c0_i32_1 = arith.constant 0 : i32
    return %arg1, %c0_i32, %c0_i32_0 : i32, i32, i32
  }
  func.func @transform_6(%arg0: i32, %arg1: i32) -> (i32, i32, i32) {
    %c0_i32 = arith.constant 0 : i32
    %c0_i32_0 = arith.constant 0 : i32
    %c0_i32_1 = arith.constant 0 : i32
    return %arg1, %c0_i32, %c0_i32_0 : i32, i32, i32
  }
  func.func @transform_7(%arg0: i32, %arg1: i32) -> (i32, i32, i32) {
    %c0_i32 = arith.constant 0 : i32
    %c0_i32_0 = arith.constant 0 : i32
    %c0_i32_1 = arith.constant 0 : i32
    return %arg1, %c0_i32, %c0_i32_0 : i32, i32, i32
  }
  func.func @transform_8(%arg0: i32, %arg1: i32) -> (i32, i32, i32) {
    %c0_i32 = arith.constant 0 : i32
    %c0_i32_0 = arith.constant 0 : i32
    %c0_i32_1 = arith.constant 0 : i32
    return %arg1, %c0_i32, %c0_i32_0 : i32, i32, i32
  }
  func.func @transform_9(%arg0: i32, %arg1: i32) -> (i32, i32, i32) {
    %c0_i32 = arith.constant 0 : i32
    %c0_i32_0 = arith.constant 0 : i32
    %c0_i32_1 = arith.constant 0 : i32
    return %arg1, %c0_i32, %c0_i32_0 : i32, i32, i32
  }
  func.func @transform_10(%arg0: i32, %arg1: i32) -> (i32, i32, i32) {
    %c0_i32 = arith.constant 0 : i32
    %c0_i32_0 = arith.constant 0 : i32
    %c0_i32_1 = arith.constant 0 : i32
    return %arg1, %c0_i32, %c0_i32_0 : i32, i32, i32
  }
  func.func @transform_11(%arg0: i32, %arg1: i32) -> (i32, i32, i32) {
    %c0_i32 = arith.constant 0 : i32
    %c0_i32_0 = arith.constant 0 : i32
    %c0_i32_1 = arith.constant 0 : i32
    return %arg1, %c0_i32, %c0_i32_0 : i32, i32, i32
  }
  func.func @transform_12(%arg0: i32, %arg1: i32) -> (i32, i32, i32) {
    %c0_i32 = arith.constant 0 : i32
    %c0_i32_0 = arith.constant 0 : i32
    %c0_i32_1 = arith.constant 0 : i32
    return %arg1, %c0_i32, %c0_i32_0 : i32, i32, i32
  }
  func.func @transform_13(%arg0: i32, %arg1: i32) -> (i32, i32, i32) {
    %c0_i32 = arith.constant 0 : i32
    %c0_i32_0 = arith.constant 0 : i32
    %c0_i32_1 = arith.constant 0 : i32
    return %arg1, %c0_i32, %c0_i32_0 : i32, i32, i32
  }
  func.func @transform_14(%arg0: i32, %arg1: i32) -> (i32, i32, i32) {
    %c0_i32 = arith.constant 0 : i32
    %c0_i32_0 = arith.constant 0 : i32
    %c0_i32_1 = arith.constant 0 : i32
    return %arg1, %c0_i32, %c0_i32_0 : i32, i32, i32
  }
  func.func @transform_15(%arg0: i32, %arg1: i32) -> (i32, i32, i32) {
    %c0_i32 = arith.constant 0 : i32
    %c0_i32_0 = arith.constant 0 : i32
    %c0_i32_1 = arith.constant 0 : i32
    return %arg1, %c0_i32, %c0_i32_0 : i32, i32, i32
  }
  func.func @transform_16(%arg0: i32, %arg1: i32) -> (i32, i32, i32) {
    %c0_i32 = arith.constant 0 : i32
    %c0_i32_0 = arith.constant 0 : i32
    %c0_i32_1 = arith.constant 0 : i32
    return %arg1, %c0_i32, %c0_i32_0 : i32, i32, i32
  }
  func.func @transform_17(%arg0: i32, %arg1: i32) -> (i32, i32, i32) {
    %c0_i32 = arith.constant 0 : i32
    %c0_i32_0 = arith.constant 0 : i32
    %c0_i32_1 = arith.constant 0 : i32
    return %arg1, %c0_i32, %c0_i32_0 : i32, i32, i32
  }
  func.func @transform_18(%arg0: i32, %arg1: i32) -> (i32, i32, i32) {
    %c0_i32 = arith.constant 0 : i32
    %c0_i32_0 = arith.constant 0 : i32
    %c0_i32_1 = arith.constant 0 : i32
    return %arg1, %c0_i32, %c0_i32_0 : i32, i32, i32
  }
  func.func @transform_19(%arg0: i32, %arg1: i32) -> (i32, i32, i32) {
    %c0_i32 = arith.constant 0 : i32
    %c0_i32_0 = arith.constant 0 : i32
    %c0_i32_1 = arith.constant 0 : i32
    return %arg1, %c0_i32, %c0_i32_0 : i32, i32, i32
  }
  func.func @transform_20(%arg0: i32, %arg1: i32) -> (i32, i32, i32) {
    %c0_i32 = arith.constant 0 : i32
    %c0_i32_0 = arith.constant 0 : i32
    %c0_i32_1 = arith.constant 0 : i32
    return %arg1, %c0_i32, %c0_i32_0 : i32, i32, i32
  }
  func.func @transform_21(%arg0: i32, %arg1: i32) -> (i32, i32, i32) {
    %c0_i32 = arith.constant 0 : i32
    %c0_i32_0 = arith.constant 0 : i32
    %c0_i32_1 = arith.constant 0 : i32
    return %arg1, %c0_i32, %c0_i32_0 : i32, i32, i32
  }
  func.func @transform_22(%arg0: i32, %arg1: i32) -> (i32, i32, i32) {
    %c0_i32 = arith.constant 0 : i32
    %c0_i32_0 = arith.constant 0 : i32
    %c0_i32_1 = arith.constant 0 : i32
    return %arg1, %c0_i32, %c0_i32_0 : i32, i32, i32
  }
  func.func @transform_23(%arg0: i32, %arg1: i32) -> (i32, i32) {
    %c0_i32 = arith.constant 0 : i32
    %c0_i32_0 = arith.constant 0 : i32
    return %arg0, %c0_i32 : i32, i32
  }
}

</mosaic_0001>

<bundles_post_ra>
// kernel: transformer_decoder_forward.1
= control target key start
LH: loop header
LB: loop body
LE: loop exit
PB: predicated region body
PF: predicated region fallthrough
CT: control target
= control target key end

     0   :  { %s6445_s0 = inlined_call_operand.hbm [shape: f32[16,32], index: 0, kind: input, shape index: {}]   ;;  %s6446_s1 = inlined_call_operand.vmem [shape: f32[20,32], index: 1, kind: input, shape index: {}]   ;;  %s6447_s2 = inlined_call_operand.vmem [shape: f32[8,8], index: 2, kind: input, shape index: {}]   ;;  %s6448_s3 = inlined_call_operand.vmem [shape: bf16[2,32,96], index: 3, kind: input, shape index: {}]   ;;  %s6449_s4 = inlined_call_operand.hbm [shape: f32[2,1,96], index: 4, kind: input, shape index: {}]   ;;  %s6450_s5 = inlined_call_operand.vmem [shape: bf16[2,32,32], index: 5, kind: input, shape index: {}]   ;;  %s6451_s6 = inlined_call_operand.hbm [shape: f32[2,1,32], index: 6, kind: input, shape index: {}]   ;;  %s6452_s7 = inlined_call_operand.hbm [shape: f32[2,1,32], index: 7, kind: input, shape index: {}]   ;;  %s6453_s8 = inlined_call_operand.hbm [shape: f32[2,1,32], index: 8, kind: input, shape index: {}]   ;;  %s6454_s9 = inlined_call_operand.vmem [shape: bf16[2,32,32], index: 9, kind: input, shape index: {}]   ;;  %s6455_s10 = inlined_call_operand.hbm [shape: f32[2,1,32], index: 10, kind: input, shape index: {}]   ;;  %s6456_s11 = inlined_call_operand.vmem [shape: bf16[2,32,64], index: 11, kind: input, shape index: {}]   ;;  %s6457_s12 = inlined_call_operand.hbm [shape: f32[2,1,64], index: 12, kind: input, shape index: {}]   ;;  %s6458_s13 = inlined_call_operand.vmem [shape: bf16[2,32,32], index: 13, kind: input, shape index: {}]   ;;  %s6459_s14 = inlined_call_operand.hbm [shape: f32[2,1,32], index: 14, kind: input, shape index: {}]   ;;  %s6460_s15 = inlined_call_operand.hbm [shape: f32[2,1,32], index: 15, kind: input, shape index: {}]   ;;  %s6461_s16 = inlined_call_operand.hbm [shape: f32[2,1,32], index: 16, kind: input, shape index: {}]   ;;  %s6462_s17 = inlined_call_operand.vmem [shape: bf16[2,32,64], index: 17, kind: input, shape index: {}]   ;;  %s6463_s18 = inlined_call_operand.hbm [shape: f32[2,1,64], index: 18, kind: input, shape index: {}]   ;;  %s6464_s19 = inlined_call_operand.vmem [shape: bf16[2,64,32], index: 19, kind: input, shape index: {}]   ;;  %s6465_s20 = inlined_call_operand.hbm [shape: f32[2,1,32], index: 20, kind: input, shape index: {}]   ;;  %s6466_s21 = inlined_call_operand.hbm [shape: f32[2,1,32], index: 21, kind: input, shape index: {}]   ;;  %s6467_s22 = inlined_call_operand.hbm [shape: f32[2,1,32], index: 22, kind: input, shape index: {}]   ;;  %s6468_s23 = inlined_call_operand.hbm [shape: f32[16,32], index: 23, kind: output, shape index: {}]  }
   0x1   :  { %6483 = sst [smem:[#allocation41_spill]] %s6445_s0 }
   0x2   :  { %6484 = sst [smem:[#allocation42_spill]] %s6446_s1 }
   0x3   :  { %6485 = sst [smem:[#allocation43_spill]] %s6447_s2 }
   0x4   :  { %6486 = sst [smem:[#allocation44_spill]] %s6448_s3 }
   0x5   :  { %6487 = sst [smem:[#allocation45_spill]] %s6449_s4 }
   0x6   :  { %6488 = sst [smem:[#allocation46_spill]] %s6450_s5 }
   0x7   :  { %6489 = sst [smem:[#allocation47_spill]] %s6451_s6 }
   0x8   :  { %6490 = sst [smem:[#allocation48_spill]] %s6452_s7 }
   0x9   :  { %6491 = sst [smem:[#allocation49_spill]] %s6453_s8 }
   0xa   :  { %6492 = sst [smem:[#allocation50_spill]] %s6454_s9 }
   0xb   :  { %6493 = sst [smem:[#allocation51_spill]] %s6455_s10 }
   0xc   :  { %6494 = sst [smem:[#allocation52_spill]] %s6456_s11 }
   0xd   :  { %6495 = sst [smem:[#allocation53_spill]] %s6457_s12 }
   0xe   :  { %6496 = sst [smem:[#allocation54_spill]] %s6458_s13 }
   0xf   :  { %6497 = sst [smem:[#allocation55_spill]] %s6459_s14 }
  0x10   :  { %6498 = sst [smem:[#allocation56_spill]] %s6460_s15 }
  0x11   :  { %6499 = sst [smem:[#allocation57_spill]] %s6461_s16 }
  0x12   :  { %6500 = sst [smem:[#allocation58_spill]] %s6462_s17 }
  0x13   :  { %6501 = sst [smem:[#allocation59_spill]] %s6464_s19 }
  0x14   :  { %6502 = sst [smem:[#allocation60_spill]] %s6467_s22 }
  0x15   :  { %6503 = sst [smem:[#allocation61_spill]] %s6468_s23 }
  0x16   :  { %28 = vsyncpa [#allocation4], 0 }
  0x17   :  { %29 = vsyncpa [#allocation7], 0 }
  0x18   :  { %31 = vsyncpa [#allocation7 + $0x1], 0 }
  0x19   :  { %32 = vsyncpa [#allocation10], 0 }
  0x1a   :  { %34 = vsyncpa [#allocation10 + $0x1], 0 }
  0x1b   :  { %35 = vsyncpa [#allocation13], 0 }
  0x1c   :  { %37 = vsyncpa [#allocation13 + $0x1], 0 }
  0x1d   :  { %38 = vsyncpa [#allocation16], 0 }
  0x1e   :  { %40 = vsyncpa [#allocation16 + $0x1], 0 }
  0x1f   :  { %41 = vsyncpa [#allocation19], 0 }
  0x20   :  { %43 = vsyncpa [#allocation19 + $0x1], 0 }
  0x21   :  { %44 = vsyncpa [#allocation22], 0 }
  0x22   :  { %46 = vsyncpa [#allocation22 + $0x1], 0 }
  0x23   :  { %47 = vsyncpa [#allocation25], 0 }
  0x24   :  { %49 = vsyncpa [#allocation25 + $0x1], 0 }
  0x25   :  { %50 = vsyncpa [#allocation5], 0  ;;  %s5561_s4 = smov 0   ;;  %s5563_s30 = smov 0  }
  0x26   :  { %s5565_s24 = smov 0   ;;  %s5567_s25 = smov 0  }
  0x27   :  { %s5569_s5 = smov 0   ;;  %s5571_s1 = smov 0  }
  0x28 LB: > { %6504 = sst [smem:[#allocation36_spill]] %s5393_s24  ;;  %s65_s26 = sadd.s32 1, %s5401_s5  ;;  %s5405_s1 = sphi %s5571_s1, %s56_s1   ;;  %s5401_s5 = sphi %s5569_s5, %s6565_s5   ;;  %s5397_s25 = sphi %s5567_s25, %s6561_s25   ;;  %s5393_s24 = sphi %s5565_s24, %s6560_s24   ;;  %s5389_s30 = sphi %s5563_s30, %s6564_s30   ;;  %s5385_s4 = sphi %s5561_s4, %s6563_s4  }
  0x29   : > { %6505 = sst [smem:[#allocation37_spill]] %s5397_s25  ;;  %s174_s2 = sadd.s32 1, %s5393_s24 }
  0x2a   : > { %6506 = sst [smem:[#allocation38_spill]] %s5401_s5  ;;  %p66_p0 = scmp.ge.s32.totalorder %s65_s26, 2 }
  0x2b   : > { %p181_p1 = scmp.ne.s32.totalorder %s5393_s24, %s5389_s30  ;;  %p182_p2 = scmp.eq.s32.totalorder %s5405_s1, 0 }
  0x2c   : > { %s6567_s26 = smov (%p66_p0, %s65_s26), 0  ;;  %p4744_p4 = scmp.lt.s32.totalorder %s5405_s1, 2 }
  0x2d   : > { %6507 = sst [smem:[#allocation39_spill]] %s6567_s26  ;;  %p183_p3 = por %p182_p2, %p181_p1 }
  0x2e   : > { %s171_s6 = ssub.s32 %s5401_s5, %s6567_s26  ;;  %s5602_s27 = sand.u32 1, %s5405_s1  }
  0x2f   : > { %p172_p5 = scmp.eq.s32.totalorder %s171_s6, 0  ;;  %s5605_s7 = sand.u32 1, %s5393_s24  }
  0x30   : > { %s5608_s28 = sshll.u32 %s5401_s5, 4  ;;  %s6509_s23 = sld [smem:[#allocation45_spill]] }
  0x31   : > { %s5611_s29 = scalar_select %p172_p5, %s5393_s24, %s174_s2  }
  0x32   : > { %s744_s17 = scalar_lea.vmem [#allocation6], %s5605_s7  ;;  %p5618_p6 = pnand %p4744_p4, %p183_p3 }
  0x33   : > { %6508 = sst [smem:[#allocation40_spill]] %s5611_s29  ;;  %s751_s13 = sshll.u32 %s744_s17, 4  ;;  %s752_s13 = int_to_ptr.vmem [resolvable:$true] %s751_s13 }
  0x34   : > { %s6482_s6 = scalar_lea.sflag [#allocation7], %s5602_s27  ;;  %p5625_p7 = pneg %p5618_p6 }
  0x35   : > { %s4922_s2 = scalar_lea.vmem %s752_s13, 16 }
  0x36   : > { %s749_s19 = scalar_lea.hbm %s6509_s23, %s5608_s28  ;;  %p4923_p8 = scmp.ne.s32.totalorder %s752_s13, %s4922_s2 }
  0x37   : > { %s5407_s23 = smov [#allocation6]  }
  0x38   : > { %p4925_p9 = pnand %p4923_p8, %p5625_p7  ;;  %s4927_s17 = sshll.u32 %s5407_s23, 4  ;;  %s4928_s17 = int_to_ptr.vmem [resolvable:$false] %s4927_s17 }
  0x39   : > { %s4929_s3 = scalar_lea.vmem %s4928_s17, 32  ;;  %p4930_p11 = scmp.lt.s32.totalorder %s752_s13, %s4928_s17 }
  0x3a   : > { %p4926_p10 = pneg %p4925_p9  ;;  %p4931_p12 = scmp.lt.s32.totalorder %s4929_s3, %s4922_s2 }
  0x3c   : > { %p4932_p13 = por %p4931_p12, %p4930_p11 }
  0x3e   : > { %p4933_p0 = pnand %p4932_p13, %p4926_p10 }
  0x40   : > { %4936 = shalt.err (!%p4933_p0)
}
  0x41   : > { %4706 = dma.hbm_to_vmem [thread:$0]  (!%p5618_p6), %s749_s19, 16, %s752_s13, %s6482_s6  }
  0x42   : > { %s6512_s24 = sld [smem:[#allocation48_spill]]  ;;  %s786_s11 = scalar_lea.vmem [#allocation9], %s5605_s7 }
  0x43   : > { %s793_s9 = sshll.u32 %s786_s11, 4  ;;  %s6475_s2 = scalar_lea.sflag [#allocation10], %s5602_s27  ;;  %s794_s9 = int_to_ptr.vmem [resolvable:$true] %s793_s9 }
  0x44   : > { %s4950_s17 = scalar_lea.vmem %s794_s9, 16  ;;  %s5408_s3 = smov [#allocation9]  }
  0x45   : > { %p4951_p1 = scmp.ne.s32.totalorder %s794_s9, %s4950_s17  ;;  %s4955_s25 = sshll.u32 %s5408_s3, 4  ;;  %s4956_s25 = int_to_ptr.vmem [resolvable:$false] %s4955_s25 }
  0x46   : > { %s4957_s22 = scalar_lea.vmem %s4956_s25, 32  ;;  %p4958_p4 = scmp.lt.s32.totalorder %s794_s9, %s4956_s25 }
  0x47   : > { %p4953_p2 = pnand %p4951_p1, %p5625_p7  ;;  %p4959_p5 = scmp.lt.s32.totalorder %s4957_s22, %s4950_s17 }
  0x48   : > { %s791_s23 = scalar_lea.hbm %s6512_s24, %s5608_s28 }
  0x49   : > { %p4954_p3 = pneg %p4953_p2  ;;  %p4960_p8 = por %p4959_p5, %p4958_p4 }
  0x4b   : > { %p4961_p9 = pnand %p4960_p8, %p4954_p3 }
  0x4d   : > { %4964 = shalt.err (!%p4961_p9)
}
  0x4e   : > { %4712 = dma.hbm_to_vmem [thread:$0]  (!%p5618_p6), %s791_s23, 16, %s794_s9, %s6475_s2  }
  0x4f   : > { %s6513_s10 = sld [smem:[#allocation51_spill]]  ;;  %s828_s24 = scalar_lea.vmem [#allocation12], %s5605_s7 }
  0x50   : > { %s835_s29 = sshll.u32 %s828_s24, 4  ;;  %s6476_s22 = scalar_lea.sflag [#allocation13], %s5602_s27  ;;  %s836_s29 = int_to_ptr.vmem [resolvable:$true] %s835_s29 }
  0x51   : > { %s4978_s25 = scalar_lea.vmem %s836_s29, 16  ;;  %s5409_s0 = smov [#allocation12]  }
  0x52   : > { %p4979_p10 = scmp.ne.s32.totalorder %s836_s29, %s4978_s25  ;;  %s4983_s17 = sshll.u32 %s5409_s0, 4  ;;  %s4984_s17 = int_to_ptr.vmem [resolvable:$false] %s4983_s17 }
  0x53   : > { %s4985_s3 = scalar_lea.vmem %s4984_s17, 32  ;;  %p4986_p13 = scmp.lt.s32.totalorder %s836_s29, %s4984_s17 }
  0x54   : > { %p4981_p11 = pnand %p4979_p10, %p5625_p7  ;;  %p4987_p0 = scmp.lt.s32.totalorder %s4985_s3, %s4978_s25 }
  0x55   : > { %s833_s19 = scalar_lea.hbm %s6513_s10, %s5608_s28 }
  0x56   : > { %p4982_p12 = pneg %p4981_p11  ;;  %p4988_p1 = por %p4987_p0, %p4986_p13 }
  0x58   : > { %p4989_p2 = pnand %p4988_p1, %p4982_p12 }
  0x5a   : > { %4992 = shalt.err (!%p4989_p2)
}
  0x5b   : > { %4718 = dma.hbm_to_vmem [thread:$0]  (!%p5618_p6), %s833_s19, 16, %s836_s29, %s6476_s22  }
  0x5c   : > { %s6514_s14 = sld [smem:[#allocation55_spill]]  ;;  %s878_s13 = scalar_lea.vmem [#allocation15], %s5605_s7 }
  0x5d   : > { %s885_s24 = sshll.u32 %s878_s13, 4  ;;  %s6477_s25 = scalar_lea.sflag [#allocation16], %s5602_s27  ;;  %s886_s24 = int_to_ptr.vmem [resolvable:$true] %s885_s24 }
  0x5e   : > { %s5006_s0 = scalar_lea.vmem %s886_s24, 16  ;;  %s5410_s17 = smov [#allocation15]  }
  0x5f   : > { %p5007_p3 = scmp.ne.s32.totalorder %s886_s24, %s5006_s0  ;;  %s5011_s3 = sshll.u32 %s5410_s17, 4  ;;  %s5012_s3 = int_to_ptr.vmem [resolvable:$false] %s5011_s3 }
  0x60   : > { %s5013_s2 = scalar_lea.vmem %s5012_s3, 32  ;;  %p5014_p8 = scmp.lt.s32.totalorder %s886_s24, %s5012_s3 }
  0x61   : > { %p5009_p4 = pnand %p5007_p3, %p5625_p7  ;;  %p5015_p9 = scmp.lt.s32.totalorder %s5013_s2, %s5006_s0 }
  0x62   : > { %s883_s11 = scalar_lea.hbm %s6514_s14, %s5608_s28 }
  0x63   : > { %p5010_p5 = pneg %p5009_p4  ;;  %p5016_p10 = por %p5015_p9, %p5014_p8 }
  0x65   : > { %p5017_p11 = pnand %p5016_p10, %p5010_p5 }
  0x67   : > { %5020 = shalt.err (!%p5017_p11)
}
  0x68   : > { %4724 = dma.hbm_to_vmem [thread:$0]  (!%p5618_p6), %s883_s11, 16, %s886_s24, %s6477_s25  }
  0x69   : > { %s6515_s16 = sld [smem:[#allocation57_spill]]  ;;  %s912_s23 = scalar_lea.vmem [#allocation18], %s5605_s7 }
  0x6a   : > { %s919_s13 = sshll.u32 %s912_s23, 4  ;;  %s6479_s2 = scalar_lea.sflag [#allocation19], %s5602_s27  ;;  %s920_s13 = int_to_ptr.vmem [resolvable:$true] %s919_s13 }
  0x6b   : > { %s5034_s0 = scalar_lea.vmem %s920_s13, 16  ;;  %s5411_s17 = smov [#allocation18]  }
  0x6c   : > { %p5035_p12 = scmp.ne.s32.totalorder %s920_s13, %s5034_s0  ;;  %s5039_s3 = sshll.u32 %s5411_s17, 4  ;;  %s5040_s3 = int_to_ptr.vmem [resolvable:$false] %s5039_s3 }
  0x6d   : > { %s5041_s22 = scalar_lea.vmem %s5040_s3, 32  ;;  %p5042_p1 = scmp.lt.s32.totalorder %s920_s13, %s5040_s3 }
  0x6e   : > { %p5037_p13 = pnand %p5035_p12, %p5625_p7  ;;  %p5043_p2 = scmp.lt.s32.totalorder %s5041_s22, %s5034_s0 }
  0x6f   : > { %s917_s9 = scalar_lea.hbm %s6515_s16, %s5608_s28 }
  0x70   : > { %p5038_p0 = pneg %p5037_p13  ;;  %p5044_p3 = por %p5043_p2, %p5042_p1 }
  0x72   : > { %p5045_p4 = pnand %p5044_p3, %p5038_p0 }
  0x74   : > { %5048 = shalt.err (!%p5045_p4)
}
  0x75   : > { %4730 = dma.hbm_to_vmem [thread:$0]  (!%p5618_p6), %s917_s9, 16, %s920_s13, %s6479_s2  }
  0x76   : > { %s967_s19 = scalar_lea.hbm %s6465_s20, %s5608_s28  ;;  %s962_s29 = scalar_lea.vmem [#allocation21], %s5605_s7 }
  0x77   : > { %s969_s23 = sshll.u32 %s962_s29, 4  ;;  %s6478_s22 = scalar_lea.sflag [#allocation22], %s5602_s27  ;;  %s970_s23 = int_to_ptr.vmem [resolvable:$true] %s969_s23 }
  0x78   : > { %s5062_s0 = scalar_lea.vmem %s970_s23, 16  ;;  %s5412_s17 = smov [#allocation21]  }
  0x79   : > { %p5063_p5 = scmp.ne.s32.totalorder %s970_s23, %s5062_s0  ;;  %s5067_s3 = sshll.u32 %s5412_s17, 4  ;;  %s5068_s3 = int_to_ptr.vmem [resolvable:$false] %s5067_s3 }
  0x7a   : > { %s5069_s25 = scalar_lea.vmem %s5068_s3, 32  ;;  %p5070_p10 = scmp.lt.s32.totalorder %s970_s23, %s5068_s3 }
  0x7b   : > { %p5065_p8 = pnand %p5063_p5, %p5625_p7  ;;  %p5071_p11 = scmp.lt.s32.totalorder %s5069_s25, %s5062_s0 }
  0x7d   : > { %p5066_p9 = pneg %p5065_p8  ;;  %p5072_p12 = por %p5071_p11, %p5070_p10 }
  0x7f   : > { %p5073_p13 = pnand %p5072_p12, %p5066_p9 }
  0x81   : > { %5076 = shalt.err (!%p5073_p13)
}
  0x82   : > { %4736 = dma.hbm_to_vmem [thread:$0]  (!%p5618_p6), %s967_s19, 16, %s970_s23, %s6478_s22  }
  0x83   : > { %s5696_s9 = sadd.s32 4294967295, %s5405_s1   ;;  %p187_p0 = scmp.ne.s32.totalorder %s5389_s30, %s5385_s4 }
  0x84   : > { %p6480_p1 = scmp.eq.s32.totalorder %s5696_s9, 0  ;;  %p4211_p2 = scmp.ge.s32.totalorder %s5405_s1, 1 }
  0x85   : > { %p692_p3 = scmp.lt.s32.totalorder %s5405_s1, 3  ;;  %s5413_s11 = smov [#allocation3]  }
  0x86   : > { %p5705_p4 = por %p6480_p1, %p187_p0  ;;  %s707_s24 = sshll.u32 %s5413_s11, 4  ;;  %s708_s24 = int_to_ptr.vmem [resolvable:$true] %s707_s24 }
  0x87   : > { %p5709_p5 = pnand %p4211_p2, %p692_p3  ;;  %s6519_s23 = sld [smem:[#allocation47_spill]] }
  0x88   : > { %s6516_s25 = scalar_select %p5705_p4, 1, 0 }
  0x89   : > { %p4699_p8 = pneg %p5709_p5  ;;  %s769_s17 = scalar_lea.vmem [#allocation8], %s5605_s7 }
  0x8a   : > { %s776_s3 = sshll.u32 %s769_s17, 4  ;;  %s5088_s22 = scalar_lea.vmem %s708_s24, 256  ;;  %s777_s3 = int_to_ptr.vmem [resolvable:$true] %s776_s3 }
  0x8b   : > { %p5717_p9 = pnand %p4699_p8, %p6480_p1  ;;  %p5089_p11 = scmp.ne.s32.totalorder %s708_s24, %s5088_s22 }
  0x8c   : > { %p5096_p0 = scmp.lt.s32.totalorder %s708_s24, %s708_s24  ;;  %p5097_p2 = scmp.lt.s32.totalorder %s5088_s22, %s5088_s22 }
  0x8d   : > { %p5079_p10 = pneg %p5717_p9 }
  0x8e   : > { %p5098_p3 = por %p5097_p2, %p5096_p0 }
  0x8f   : > { %p5091_p12 = pnand %p5089_p11, %p5079_p10 }
  0x91   : > { %p5092_p13 = pneg %p5091_p12 }
  0x93   : > { %p5099_p8 = pnand %p5098_p3, %p5092_p13 }
  0x95   : > { %5102 = shalt.err (!%p5099_p8)
}
  0x96   : > { %s5414_s11 = smov 128   ;;  %s5415_s19 = smov 8  }
  0x97   : > { %s6520_s17 = sld [smem:[#allocation41_spill]]  ;;  %s5116_s0 = scalar_lea.vmem %s777_s3, 16 }
  0x98   : > { %p5117_p1 = scmp.ne.s32.totalorder %s777_s3, %s5116_s0  ;;  %s5416_s6 = smov [#allocation8]  }
  0x99   : > { %s5121_s10 = sshll.u32 %s5416_s6, 4  ;;  %s5122_s10 = int_to_ptr.vmem [resolvable:$false] %s5121_s10 }
  0x9a   : > { %p5119_p4 = pnand %p5117_p1, %p5625_p7  ;;  %s5123_s22 = scalar_lea.vmem %s5122_s10, 32 }
  0x9b   : > { %p5124_p11 = scmp.lt.s32.totalorder %s777_s3, %s5122_s10  ;;  %p5125_p12 = scmp.lt.s32.totalorder %s5123_s22, %s5116_s0 }
  0x9c   : > { %p5120_p10 = pneg %p5119_p4 }
  0x9d   : > { %4702 = dma.hbm_to_vmem [thread:$0]  (!%p5717_p9), %s6520_s17, 256, %s708_s24, [#allocation4], %s5414_s11, %s5414_s11, %s5415_s19  }
  0x9e   : > { %p5126_p13 = por %p5125_p12, %p5124_p11 }
  0xa0   : > { %p5127_p0 = pnand %p5126_p13, %p5120_p10 }
  0xa2   : > { %5130 = shalt.err (!%p5127_p0)
}
  0xa3   : > { %s6521_s4 = scalar_lea.sflag [#allocation7], %s5602_s27  ;;  %s6522_s11 = scalar_lea.hbm %s6519_s23, %s5608_s28 }
  0xa4   : > { %4709 = dma.hbm_to_vmem [thread:$0]  (!%p5618_p6), %s6522_s11, 16, %s777_s3, %s6521_s4  }
  0xa5   : > { %s6523_s8 = sld [smem:[#allocation49_spill]]  ;;  %s803_s0 = scalar_lea.vmem [#allocation11], %s5605_s7 }
  0xa6   : > { %s810_s29 = sshll.u32 %s803_s0, 4  ;;  %s5417_s22 = smov [#allocation11]   ;;  %s811_s29 = int_to_ptr.vmem [resolvable:$true] %s810_s29 }
  0xa7   : > { %s5144_s17 = scalar_lea.vmem %s811_s29, 16  ;;  %s5149_s2 = sshll.u32 %s5417_s22, 4  ;;  %s5150_s2 = int_to_ptr.vmem [resolvable:$false] %s5149_s2 }
  0xa8   : > { %p5145_p1 = scmp.ne.s32.totalorder %s811_s29, %s5144_s17  ;;  %s5151_s24 = scalar_lea.vmem %s5150_s2, 32 }
  0xa9   : > { %p5152_p2 = scmp.lt.s32.totalorder %s811_s29, %s5150_s2  ;;  %p5153_p3 = scmp.lt.s32.totalorder %s5151_s24, %s5144_s17 }
  0xaa   : > { %p5147_p4 = pnand %p5145_p1, %p5625_p7 }
  0xab   : > { %s808_s10 = scalar_lea.hbm %s6523_s8, %s5608_s28  ;;  %p5154_p8 = por %p5153_p3, %p5152_p2 }
  0xac   : > { %p5148_p9 = pneg %p5147_p4 }
  0xae   : > { %p5155_p10 = pnand %p5154_p8, %p5148_p9 }
  0xb0   : > { %5158 = shalt.err (!%p5155_p10)
}
  0xb1   : > { %s6524_s3 = scalar_lea.sflag [#allocation10], %s5602_s27  ;;  %s6525_s12 = sld [smem:[#allocation53_spill]] }
  0xb2   : > { %4715 = dma.hbm_to_vmem [thread:$0]  (!%p5618_p6), %s808_s10, 16, %s811_s29, %s6524_s3  }
  0xb3   : > { %s853_s19 = scalar_lea.vmem [#allocation14], %s5605_s7  ;;  %s5418_s17 = smov [#allocation14]  }
  0xb4   : > { %s860_s0 = sshll.u32 %s853_s19, 4  ;;  %s5177_s2 = sshll.u32 %s5418_s17, 4  ;;  %s861_s0 = int_to_ptr.vmem [resolvable:$true] %s860_s0  ;;  %s5178_s2 = int_to_ptr.vmem [resolvable:$false] %s5177_s2 }
  0xb5   : > { %s5172_s22 = scalar_lea.vmem %s861_s0, 16  ;;  %s5179_s24 = scalar_lea.vmem %s5178_s2, 32 }
  0xb6   : > { %p5173_p11 = scmp.ne.s32.totalorder %s861_s0, %s5172_s22  ;;  %p5180_p0 = scmp.lt.s32.totalorder %s861_s0, %s5178_s2 }
  0xb7   : > { %s858_s6 = scalar_lea.hbm %s6525_s12, %s5608_s28  ;;  %p5181_p1 = scmp.lt.s32.totalorder %s5179_s24, %s5172_s22 }
  0xb8   : > { %p5175_p12 = pnand %p5173_p11, %p5625_p7 }
  0xb9   : > { %p5182_p4 = por %p5181_p1, %p5180_p0 }
  0xba   : > { %p5176_p13 = pneg %p5175_p12 }
  0xbc   : > { %p5183_p9 = pnand %p5182_p4, %p5176_p13 }
  0xbe   : > { %5186 = shalt.err (!%p5183_p9)
}
  0xbf   : > { %s6526_s10 = scalar_lea.sflag [#allocation13], %s5602_s27  ;;  %s6527_s15 = sld [smem:[#allocation56_spill]] }
  0xc0   : > { %4721 = dma.hbm_to_vmem [thread:$0]  (!%p5618_p6), %s858_s6, 16, %s861_s0, %s6526_s10  }
  0xc1   : > { %s895_s11 = scalar_lea.vmem [#allocation17], %s5605_s7  ;;  %s5419_s22 = smov [#allocation17]  }
  0xc2   : > { %s902_s19 = sshll.u32 %s895_s11, 4  ;;  %s5205_s2 = sshll.u32 %s5419_s22, 4  ;;  %s903_s19 = int_to_ptr.vmem [resolvable:$true] %s902_s19  ;;  %s5206_s2 = int_to_ptr.vmem [resolvable:$false] %s5205_s2 }
  0xc3   : > { %s5200_s17 = scalar_lea.vmem %s903_s19, 16  ;;  %s5207_s24 = scalar_lea.vmem %s5206_s2, 32 }
  0xc4   : > { %p5201_p2 = scmp.ne.s32.totalorder %s903_s19, %s5200_s17  ;;  %p5208_p10 = scmp.lt.s32.totalorder %s903_s19, %s5206_s2 }
  0xc5   : > { %s900_s4 = scalar_lea.hbm %s6527_s15, %s5608_s28  ;;  %p5209_p11 = scmp.lt.s32.totalorder %s5207_s24, %s5200_s17 }
  0xc6   : > { %p5203_p3 = pnand %p5201_p2, %p5625_p7 }
  0xc7   : > { %p5210_p12 = por %p5209_p11, %p5208_p10 }
  0xc8   : > { %p5204_p8 = pneg %p5203_p3 }
  0xca   : > { %p5211_p13 = pnand %p5210_p12, %p5204_p8 }
  0xcc   : > { %5214 = shalt.err (!%p5211_p13)
}
  0xcd   : > { %s6528_s6 = scalar_lea.sflag [#allocation16], %s5602_s27  ;;  %s942_s29 = scalar_lea.hbm %s6463_s18, %s5608_s28 }
  0xce   : > { %4727 = dma.hbm_to_vmem [thread:$0]  (!%p5618_p6), %s900_s4, 16, %s903_s19, %s6528_s6  }
  0xcf   : > { %s937_s3 = scalar_lea.vmem [#allocation20], %s5605_s7  ;;  %s5420_s17 = smov [#allocation20]  }
  0xd0   : > { %s944_s11 = sshll.u32 %s937_s3, 4  ;;  %s5233_s2 = sshll.u32 %s5420_s17, 4  ;;  %s945_s11 = int_to_ptr.vmem [resolvable:$true] %s944_s11  ;;  %s5234_s2 = int_to_ptr.vmem [resolvable:$false] %s5233_s2 }
  0xd1   : > { %s5228_s22 = scalar_lea.vmem %s945_s11, 16  ;;  %s5235_s24 = scalar_lea.vmem %s5234_s2, 32 }
  0xd2   : > { %p5229_p0 = scmp.ne.s32.totalorder %s945_s11, %s5228_s22  ;;  %p5236_p9 = scmp.lt.s32.totalorder %s945_s11, %s5234_s2 }
  0xd3   : > { %p5237_p2 = scmp.lt.s32.totalorder %s5235_s24, %s5228_s22 }
  0xd4   : > { %p5231_p1 = pnand %p5229_p0, %p5625_p7 }
  0xd5   : > { %p5238_p3 = por %p5237_p2, %p5236_p9 }
  0xd6   : > { %p5232_p4 = pneg %p5231_p1 }
  0xd8   : > { %p5239_p8 = pnand %p5238_p3, %p5232_p4 }
  0xda   : > { %5242 = shalt.err (!%p5239_p8)
}
  0xdb   : > { %s6529_s4 = scalar_lea.sflag [#allocation19], %s5602_s27  ;;  %s984_s0 = scalar_lea.hbm %s6466_s21, %s5608_s28 }
  0xdc   : > { %4733 = dma.hbm_to_vmem [thread:$0]  (!%p5618_p6), %s942_s29, 16, %s945_s11, %s6529_s4  }
  0xdd   : > { %s979_s10 = scalar_lea.vmem [#allocation23], %s5605_s7  ;;  %s5421_s22 = smov [#allocation23]  }
  0xde   : > { %s986_s3 = sshll.u32 %s979_s10, 4  ;;  %s5261_s2 = sshll.u32 %s5421_s22, 4  ;;  %s987_s3 = int_to_ptr.vmem [resolvable:$true] %s986_s3  ;;  %s5262_s2 = int_to_ptr.vmem [resolvable:$false] %s5261_s2 }
  0xdf   : > { %s5256_s17 = scalar_lea.vmem %s987_s3, 16  ;;  %s5263_s24 = scalar_lea.vmem %s5262_s2, 32 }
  0xe0   : > { %p5257_p10 = scmp.ne.s32.totalorder %s987_s3, %s5256_s17  ;;  %p5264_p13 = scmp.lt.s32.totalorder %s987_s3, %s5262_s2 }
  0xe1   : > { %p5265_p0 = scmp.lt.s32.totalorder %s5263_s24, %s5256_s17 }
  0xe2   : > { %p5259_p11 = pnand %p5257_p10, %p5625_p7 }
  0xe3   : > { %p5266_p1 = por %p5265_p0, %p5264_p13 }
  0xe4   : > { %p5260_p12 = pneg %p5259_p11 }
  0xe6   : > { %p5267_p4 = pnand %p5266_p1, %p5260_p12 }
  0xe8   : > { %5270 = shalt.err (!%p5267_p4)
}
  0xe9   : > { %s6530_s29 = scalar_lea.sflag [#allocation22], %s5602_s27  ;;  %s6531_s19 = sld [smem:[#allocation60_spill]] }
  0xea   : > { %4739 = dma.hbm_to_vmem [thread:$0]  (!%p5618_p6), %s984_s0, 16, %s987_s3, %s6530_s29  }
  0xeb   : > { %s996_s10 = scalar_lea.vmem [#allocation24], %s5605_s7  ;;  %s994_s17 = scalar_lea.sflag [#allocation25], %s5605_s7 }
  0xec   : > { %s1003_s22 = sshll.u32 %s996_s10, 4  ;;  %s5422_s24 = smov [#allocation24]   ;;  %s1004_s22 = int_to_ptr.vmem [resolvable:$true] %s1003_s22 }
  0xed   : > { %s5284_s2 = scalar_lea.vmem %s1004_s22, 16  ;;  %s5289_s27 = sshll.u32 %s5422_s24, 4  ;;  %s5290_s27 = int_to_ptr.vmem [resolvable:$false] %s5289_s27 }
  0xee   : > { %p5285_p9 = scmp.ne.s32.totalorder %s1004_s22, %s5284_s2  ;;  %s5291_s8 = scalar_lea.vmem %s5290_s27, 32 }
  0xef   : > { %s1001_s6 = scalar_lea.hbm %s6531_s19, %s5608_s28  ;;  %p5292_p8 = scmp.lt.s32.totalorder %s1004_s22, %s5290_s27 }
  0xf0   : > { %p5287_p2 = pnand %p5285_p9, %p5625_p7  ;;  %p5293_p10 = scmp.lt.s32.totalorder %s5291_s8, %s5284_s2 }
  0xf2   : > { %p5288_p3 = pneg %p5287_p2  ;;  %p5294_p11 = por %p5293_p10, %p5292_p8 }
  0xf4   : > { %p5295_p12 = pnand %p5294_p11, %p5288_p3 }
  0xf6   : > { %5298 = shalt.err (!%p5295_p12)
}
  0xf7   : > { %4742 = dma.hbm_to_vmem [thread:$0]  (!%p5618_p6), %s1001_s6, 16, %s1004_s22, %s994_s17  }
  0xf8   : > { %1012 = sbr.rel (%p5709_p5) target bundleno = 4535 (0x11b7), region = 112  ;;  %p6532_p13 = scmp.eq.s32.totalorder (!%p5709_p5), %s5696_s9, 0 }
  0xfd   : > { %5348 = dma.done.wait (%p6532_p13), [#allocation4], 256   ;;  %p6533_p7 = pmov %p6532_p13 }
  0xfe   : > { %s5816_s5 = sand.u32 1, %s5696_s9   ;;  %s5819_s8 = sand.u32 1, %s5389_s30  }
  0xff   : > { %5350 = vsyncadd (%p6533_p7), [#allocation4], 4294967040  ;;  %s1019_s26 = scalar_lea.sflag [#allocation7], %s5816_s5  ;;  %p6534_p6 = scmp.ne.s32.totalorder %s6516_s25, 0 }
 0x101   : > { %5352 = dma.done.wait (%p6534_p6), %s1019_s26, 32  }
 0x102   : > { %5354 = vsyncadd (%p6534_p6), %s1019_s26, 4294967264  ;;  %s1035_s13 = scalar_lea.sflag [#allocation10], %s5816_s5 }
 0x103   : > { %5356 = dma.done.wait (%p6534_p6), %s1035_s13, 32  }
 0x104   : > { %5358 = vsyncadd (%p6534_p6), %s1035_s13, 4294967264  ;;  %s1051_s29 = scalar_lea.sflag [#allocation13], %s5816_s5 }
 0x105   : > { %5360 = dma.done.wait (%p6534_p6), %s1051_s29, 32  }
 0x106   : > { %5362 = vsyncadd (%p6534_p6), %s1051_s29, 4294967264  ;;  %s1067_s19 = scalar_lea.sflag [#allocation16], %s5816_s5 }
 0x107   : > { %5364 = dma.done.wait (%p6534_p6), %s1067_s19, 32  }
 0x108   : > { %5366 = vsyncadd (%p6534_p6), %s1067_s19, 4294967264  ;;  %s1083_s22 = scalar_lea.sflag [#allocation19], %s5816_s5 }
 0x109   : > { %5368 = dma.done.wait (%p6534_p6), %s1083_s22, 32  }
 0x10a   : > { %5370 = vsyncadd (%p6534_p6), %s1083_s22, 4294967264  ;;  %s1099_s24 = scalar_lea.sflag [#allocation22], %s5816_s5 }
 0x10b   : > { %5372 = dma.done.wait (%p6534_p6), %s1099_s24, 32  }
 0x10c   : > { %5374 = vsyncadd (%p6534_p6), %s1099_s24, 4294967264  ;;  %s1115_s13 = scalar_lea.sflag [#allocation25], %s5819_s8 }
 0x10d   : > { %5376 = dma.done.wait (%p6534_p6), %s1115_s13, 16  }
 0x10e   : > { %5378 = vsyncadd (%p6534_p6), %s1115_s13, 4294967280  ;;  %s6535_s19 = sld [smem:[#allocation37_spill]] }
 0x10f   : > { %s6536_s17 = sld [smem:[#allocation44_spill]] }
 0x110   : > { %s6537_s26 = sld [smem:[#allocation46_spill]] }
 0x111   : > { %s6538_s0 = sld [smem:[#allocation50_spill]] }
 0x112   : > { %s6539_s7 = sld [smem:[#allocation52_spill]] }
 0x113   : > { %s6540_s15 = sld [smem:[#allocation54_spill]] }
 0x114   : > { %p1269_p5 = scmp.lt.s32.totalorder %s6535_s19, 1  ;;  %s6541_s11 = sld [smem:[#allocation58_spill]] }
 0x115   : > { %s6542_s3 = sld [smem:[#allocation59_spill]]  ;;  %p4244_p0 = scmp.ne.s32.totalorder %s6535_s19, 0 }
 0x116   : > { %s1270_s5 = scalar_select %p1269_p5, %s6535_s19, 1 }
 0x118   : > { %s4318_s22 = sshll.u32 %s1270_s5, 4  ;;  %s4324_s27 = sshll.u32 %s1270_s5, 5 }
 0x119   : > { %s1273_s10 = scalar_lea.vmem %s6536_s17, %s4318_s22  ;;  %s5877_s4 = scalar_lea.vmem %s6537_s26, %s4318_s22 }
 0x11a   : > { %s5882_s25 = scalar_lea.vmem %s6538_s0, %s4318_s22  ;;  %s5887_s12 = scalar_lea.vmem %s6539_s7, %s4318_s22 }
 0x11b   : > { %s5892_s2 = scalar_lea.vmem %s6540_s15, %s4318_s22  ;;  %s5897_s6 = scalar_lea.vmem %s6541_s11, %s4318_s22 }
 0x11c   : > { %s5902_s0 = scalar_lea.vmem %s6542_s3, %s4324_s27  ;;  %1309 = sbr.rel (%p4244_p0) target bundleno = 291 (0x123), region = 172 }
 0x121   : > { %v1310_v0 = vld [vmem:[#allocation3] sm:$0xff]  ;;  %vm1312_vm0 = vcmask 261120   ;;  %v1311_v1 = vld [vmem:[#allocation3 + $0x8] sm:$0xff] }
 0x122   : > { %1313 = vst.msk [vmem:[#allocation26] sm:$0xff] %vm1312_vm0, %v1310_v0  ;;  %1314 = vst.msk [vmem:[#allocation26 + $0x8] sm:$0xff] %vm1312_vm0, %v1311_v1 }
 0x123 PF: > { %v4817_v2 = vld [vmem:[%s1273_s10 + $0x8] sm:$0xff]   ;;  %v5423_v3 = vmov 0.0   ;;  %v4818_v4 = vld [vmem:[%s1273_s10] sm:$0xff]   ;;  %vm5424_vm1 = vmmov 0   ;;  %vm1341_vm2 = vcmask 261120   ;;  %s6543_s14 = scalar_lea.vmem [#allocation6], %s5819_s8 }
 0x124   : > { %4413 = vmatprep.subr.bf16.mxu1 %v5423_v3  ;;  %4427 = vmatprep.subr.bf16.mxu0 %v5423_v3  ;;  %v4245_v8 = vld [vmem:[%s6543_s14] ss:$0 sm:$0xff]  ;;  %s5425_s15 = smov 120   ;;  %s5426_s16 = smov 96   ;;  %vm1391_vm3 = vcmask 64512   ;;  %vm1455_vm4 = vcmask 1043456  }
 0x125   : > { %4414 = vmatpush3.bf16.msra.mxu1 %v4817_v2  ;;  %4417 = vmatprep.mubr.msk.bf16.mxu1 %vm5424_vm1, %v5423_v3  ;;  %s5427_s7 = smov 80   ;;  %s5428_s28 = smov 88   ;;  %vm1614_vm5 = vcmask 130112   ;;  %vm1730_vm6 = vcmask 195712   ;;  %vm1846_vm7 = vcmask 261312   ;;  %vm2619_vm8 = vcmask 80896  }
 0x126   : > { %4415 = vmatprep.subr.bf16.mxu1 %v5423_v3  ;;  %4429 = vmatprep.mubr.msk.bf16.mxu0 %vm5424_vm1, %v5423_v3  ;;  %s5429_s10 = smov 72   ;;  %s5430_s27 = smov 112   ;;  %vm2638_vm9 = vcmask 1044480   ;;  %vm3712_vm10 = vcmask 523264  }
 0x127   : > { %s5431_s29 = smov 104   ;;  %s6544_s13 = sld [smem:[#allocation43_spill]] }
 0x128   : > { %s5432_s5 = smov 56   ;;  %s5433_s17 = smov 64  }
 0x129   : > { %v5909_v5 = vld [vmem:[#allocation26] sm:$0xff]  ;;  %v5911_v6 = vld [vmem:[#allocation26 + $0x8] sm:$0xff]  ;;  %4416 = vmatpush3.bf16.msra.mxu1 %v4818_v4  ;;  %s5434_s24 = smov 48   ;;  %s5435_s11 = smov 40  }
 0x12a   : > { %v1317_v7 = vpack.c.bf16 %v5911_v6, %v5909_v5  ;;  %4421 = vmatprep.subr.bf16.mxu1 %v5423_v3  ;;  %s5436_s26 = smov 8   ;;  %s5437_s3 = smov 16  }
 0x12b   : > { %s5438_s14 = smov 24   ;;  %s6550_s19 = scalar_lea.vmem [#allocation12], %s5819_s8 }
 0x12c   : > { %4418 = vmatmul.mubr.msk.bf16.vlgmr.msra.gmra.mxu1 %vm1341_vm2, %v1317_v7  ;;  %p4746_p1 = scmp.eq.s32.totalorder %s5696_s9, 1 }
 0x12d   : > { %4423 = vmatprep.mubr.msk.bf16.mxu1 %vm5424_vm1, %v5423_v3  ;;  %v1386_v39 = vld [vmem:[%s6544_s13] sm:$0xff]  ;;  %s6546_s13 = sld [smem:[#allocation42_spill]] }
 0x1ec   : > { %v1379_v9 = vpop.f32.mrf.mxu1 }
 0x1ed   : > { %v1380_v10 = vadd.f32 %v4245_v8, %v1379_v9 }
 0x1ee   : > { %v4419_v11 = vpop.f32.mrf.mxu1 }
 0x1ef   : > { %v5924_v12 = vpack.c.bf16 %v1380_v10, %v1380_v10 }
 0x1f0   : > { %v1382_v13 = vpop.f32.mrf.mxu1 }
 0x1f1   : > { %1500 = vrot.lane.b32.xlu1 %v5924_v12, %s5425_s15  ;;  %1389 = vrot.lane.b32.xlu0 %v5924_v12, %s5426_s16  ;;  %v1383_v15 = vadd.f32 %v4245_v8, %v1382_v13 }
 0x1f2   : > { %v4420_v14 = vpop.f32.mrf.mxu1 }
 0x1f3   : > { %v5938_v16 = vpack.c.bf16 %v1383_v15, %v1383_v15 }
 0x1f5   : > { %1618 = vrot.lane.b32.xlu1 %v5924_v12, %s5427_s7  ;;  %1502 = vrot.lane.b32.xlu0 %v5924_v12, %s5428_s28 }
 0x1f9   : > { %1734 = vrot.lane.b32.xlu1 %v5924_v12, %s5429_s10  ;;  %1616 = vrot.lane.b32.xlu0 %v5924_v12, %s5430_s27 }
 0x1fd   : > { %1732 = vrot.lane.b32.xlu0 %v5924_v12, %s5431_s29  ;;  %1850 = vrot.lane.b32.xlu1 %v5938_v16, %s5426_s16 }
 0x201   : > { %1961 = vrot.lane.b32.xlu0 %v5938_v16, %s5428_s28  ;;  %1959 = vrot.lane.b32.xlu1 %v5938_v16, %s5425_s15 }
 0x205   : > { %2076 = vrot.lane.b32.xlu0 %v5938_v16, %s5427_s7  ;;  %2074 = vrot.lane.b32.xlu1 %v5938_v16, %s5430_s27 }
 0x209   : > { %2191 = vrot.lane.b32.xlu0 %v5938_v16, %s5429_s10  ;;  %2189 = vrot.lane.b32.xlu1 %v5938_v16, %s5431_s29 }
 0x263   : > { %v1390_v17 = vpop.permute.xlu0 %1389  ;;  %v1501_v20 = vpop.permute.xlu1 %1500 }
 0x264   : > { %v1396_v18 = vsel %vm1391_vm3, %v1390_v17, 0 }
 0x265   : > { %4422 = vmatpush3.bf16.xpose.msra.mxu1 %v1396_v18 }
 0x266   : > { %4433 = vmatprep.subr.bf16.mxu1 %v5423_v3 }
 0x267   : > { %v1503_v19 = vpop.permute.xlu0 %1502  ;;  %v1619_v22 = vpop.permute.xlu1 %1618 }
 0x268   : > { %v1508_v21 = vsel %vm1391_vm3, %v1503_v19, 0  ;;  %v1624_v23 = vsel %vm1391_vm3, %v1619_v22, 0 }
 0x26b   : > { %v1735_v24 = vpop.permute.xlu1 %1734  ;;  %v1617_v25 = vpop.permute.xlu0 %1616 }
 0x26c   : > { %4424 = vmatmul.mubr.msk.bf16.vlgmr.msra.gmra.mxu1 %vm1391_vm3, %v5924_v12  ;;  %v1740_v26 = vsel %vm1391_vm3, %v1735_v24, 0 }
 0x26d   : > { %4434 = vmatpush3.bf16.xpose.msra.mxu1 %v1508_v21  ;;  %4435 = vmatprep.mubr.msk.bf16.mxu1 %vm5424_vm1, %v5423_v3 }
 0x26e   : > { %4445 = vmatprep.subr.bf16.mxu1 %v5423_v3 }
 0x26f   : > { %v1851_v27 = vpop.permute.xlu1 %1850  ;;  %v1733_v28 = vpop.permute.xlu0 %1732 }
 0x270   : > { %v1856_v29 = vsel %vm1391_vm3, %v1851_v27, 0 }
 0x273   : > { %v1962_v30 = vpop.permute.xlu0 %1961  ;;  %v1960_v33 = vpop.permute.xlu1 %1959 }
 0x274   : > { %4436 = vmatmul.mubr.msk.bf16.vlgmr.msra.gmra.mxu1 %vm1391_vm3, %v1501_v20  ;;  %v1967_v31 = vsel %vm1391_vm3, %v1962_v30, 0 }
 0x275   : > { %4446 = vmatpush3.bf16.xpose.msra.mxu1 %v1624_v23  ;;  %4447 = vmatprep.mubr.msk.bf16.mxu1 %vm5424_vm1, %v5423_v3 }
 0x276   : > { %4457 = vmatprep.subr.bf16.mxu1 %v5423_v3 }
 0x277   : > { %v2077_v32 = vpop.permute.xlu0 %2076  ;;  %v2075_v36 = vpop.permute.xlu1 %2074 }
 0x278   : > { %v2082_v34 = vsel %vm1391_vm3, %v2077_v32, 0 }
 0x27b   : > { %v2192_v35 = vpop.permute.xlu0 %2191  ;;  %v2190_v38 = vpop.permute.xlu1 %2189 }
 0x27c   : > { %4448 = vmatmul.mubr.msk.bf16.vlgmr.msra.gmra.mxu1 %vm1391_vm3, %v1617_v25  ;;  %v2197_v37 = vsel %vm1391_vm3, %v2192_v35, 0 }
 0x27d   : > { %4458 = vmatpush3.bf16.xpose.msra.mxu1 %v1740_v26  ;;  %4459 = vmatprep.mubr.msk.bf16.mxu1 %vm5424_vm1, %v5423_v3 }
 0x27e   : > { %4469 = vmatprep.subr.bf16.mxu1 %v5423_v3 }
 0x284   : > { %4460 = vmatmul.mubr.msk.bf16.vlgmr.msra.gmra.mxu1 %vm1391_vm3, %v1733_v28 }
 0x285   : > { %4470 = vmatpush3.bf16.xpose.msra.mxu1 %v1856_v29  ;;  %4471 = vmatprep.mubr.msk.bf16.mxu1 %vm5424_vm1, %v5423_v3 }
 0x286   : > { %4481 = vmatprep.subr.bf16.mxu1 %v5423_v3 }
 0x28c   : > { %4472 = vmatmul.mubr.msk.bf16.vlgmr.msra.gmra.mxu1 %vm1391_vm3, %v5938_v16 }
 0x28d   : > { %4482 = vmatpush3.bf16.xpose.msra.mxu1 %v1967_v31  ;;  %4483 = vmatprep.mubr.msk.bf16.mxu1 %vm5424_vm1, %v5423_v3 }
 0x28e   : > { %4493 = vmatprep.subr.bf16.mxu1 %v5423_v3 }
 0x294   : > { %4484 = vmatmul.mubr.msk.bf16.vlgmr.msra.gmra.mxu1 %vm1391_vm3, %v1960_v33 }
 0x295   : > { %4494 = vmatpush3.bf16.xpose.msra.mxu1 %v2082_v34  ;;  %4495 = vmatprep.mubr.msk.bf16.mxu1 %vm5424_vm1, %v5423_v3 }
 0x296   : > { %4505 = vmatprep.subr.bf16.mxu1 %v5423_v3 }
 0x29c   : > { %4496 = vmatmul.mubr.msk.bf16.vlgmr.msra.gmra.mxu1 %vm1391_vm3, %v2075_v36 }
 0x29d   : > { %4506 = vmatpush3.bf16.xpose.msra.mxu1 %v2197_v37  ;;  %4507 = vmatprep.mubr.msk.bf16.mxu1 %vm5424_vm1, %v5423_v3 }
 0x29e   : > { %4517 = vmatprep.subr.bf16.mxu1 %v5423_v3 }
 0x2a4   : > { %4508 = vmatmul.mubr.msk.bf16.vlgmr.msra.gmra.mxu1 %vm1391_vm3, %v2190_v38 }
 0x2a5   : > { %4521 = vmatprep.mubr.msk.bf16.mxu1 %vm5424_vm1, %v5423_v3 }
 0x32c   : > { %v1432_v40 = vpop.f32.mrf.mxu1 }
 0x32d   : > { %v1433_v41 = vadd.f32 %v1432_v40, %v1386_v39 }
 0x32e   : > { %v4425_v42 = vpop.f32.mrf.mxu1 }
 0x32f   : > { %v1438_v43 = vsel %vm1391_vm3, %v1433_v41, -inf }
 0x330   : > { %1439 = vmax.xlane.f32.xlu0 %v1438_v43  ;;  %v1435_v44 = vpop.f32.mrf.mxu1 }
 0x332   : > { %v4426_v45 = vpop.f32.mrf.mxu1 }
 0x334   : > { %v1544_v46 = vpop.f32.mrf.mxu1 }
 0x335   : > { %v1545_v47 = vadd.f32 %v1544_v46, %v1386_v39 }
 0x336   : > { %v4437_v48 = vpop.f32.mrf.mxu1 }
 0x337   : > { %v1550_v49 = vsel %vm1391_vm3, %v1545_v47, -inf }
 0x338   : > { %1551 = vmax.xlane.f32.xlu1 %v1550_v49  ;;  %v1547_v50 = vpop.f32.mrf.mxu1 }
 0x33a   : > { %v4438_v51 = vpop.f32.mrf.mxu1 }
 0x33c   : > { %v1660_v52 = vpop.f32.mrf.mxu1 }
 0x33d   : > { %v1661_v53 = vadd.f32 %v1660_v52, %v1386_v39 }
 0x33e   : > { %v4449_v54 = vpop.f32.mrf.mxu1 }
 0x33f   : > { %v1666_v55 = vsel %vm1391_vm3, %v1661_v53, -inf }
 0x340   : > { %1667 = vmax.xlane.f32.xlu0 %v1666_v55  ;;  %v1663_v56 = vpop.f32.mrf.mxu1 }
 0x342   : > { %v4450_v57 = vpop.f32.mrf.mxu1 }
 0x344   : > { %v1776_v58 = vpop.f32.mrf.mxu1 }
 0x345   : > { %v6004_v59 = vadd.f32 %v1776_v58, %v1386_v39 }
 0x346   : > { %v4461_v60 = vpop.f32.mrf.mxu1 }
 0x347   : > { %v1782_v61 = vsel %vm1391_vm3, %v6004_v59, -inf }
 0x348   : > { %1783 = vmax.xlane.f32.xlu0 %v1782_v61  ;;  %v1779_v62 = vpop.f32.mrf.mxu1 }
 0x34a   : > { %v4462_v63 = vpop.f32.mrf.mxu1 }
 0x34c   : > { %v1892_v0 = vpop.f32.mrf.mxu1 }
 0x34d   : > { %v6008_v1 = vadd.f32 %v1892_v0, %v1386_v39 }
 0x34e   : > { %v4473_v2 = vpop.f32.mrf.mxu1 }
 0x34f   : > { %v1898_v4 = vsel %vm1391_vm3, %v6008_v1, -inf }
 0x350   : > { %1899 = vmax.xlane.f32.xlu1 %v1898_v4  ;;  %v1895_v7 = vpop.f32.mrf.mxu1 }
 0x352   : > { %v4474_v8 = vpop.f32.mrf.mxu1 }
 0x354   : > { %v2003_v9 = vpop.f32.mrf.mxu1 }
 0x355   : > { %v6012_v10 = vadd.f32 %v2003_v9, %v1386_v39 }
 0x356   : > { %v4485_v11 = vpop.f32.mrf.mxu1 }
 0x357   : > { %v2009_v13 = vsel %vm1391_vm3, %v6012_v10, -inf }
 0x358   : > { %2010 = vmax.xlane.f32.xlu0 %v2009_v13  ;;  %v2006_v14 = vpop.f32.mrf.mxu1 }
 0x35a   : > { %v4486_v15 = vpop.f32.mrf.mxu1 }
 0x35c   : > { %v2118_v17 = vpop.f32.mrf.mxu1 }
 0x35d   : > { %v2119_v18 = vadd.f32 %v2118_v17, %v1386_v39 }
 0x35e   : > { %v4497_v19 = vpop.f32.mrf.mxu1 }
 0x35f   : > { %v2124_v20 = vsel %vm1391_vm3, %v2119_v18, -inf }
 0x360   : > { %2125 = vmax.xlane.f32.xlu1 %v2124_v20  ;;  %v2121_v21 = vpop.f32.mrf.mxu1 }
 0x362   : > { %v4498_v22 = vpop.f32.mrf.mxu1 }
 0x364   : > { %v2233_v23 = vpop.f32.mrf.mxu1 }
 0x365   : > { %v6021_v27 = vadd.f32 %v2233_v23, %v1386_v39 }
 0x366   : > { %v4509_v24 = vpop.f32.mrf.mxu1 }
 0x367   : > { %v2239_v28 = vsel %vm1391_vm3, %v6021_v27, -inf }
 0x368   : > { %v2236_v25 = vpop.f32.mrf.mxu1 }
 0x36a   : > { %v4510_v26 = vpop.f32.mrf.mxu1 }
 0x36e   : > { %1562 = vrot.lane.b32.xlu0 %v5924_v12, %s5432_s5 }
 0x371   : > { %1450 = vrot.lane.b32.xlu1 %v5924_v12, %s5433_s17 }
 0x38d   : > { %2240 = vmax.xlane.f32.xlu0 %v2239_v28 }
 0x3b9   : > { %v1440_v29 = vpop.xlane.xlu0 %1439 }
 0x3ba   : > { %v1441_v30 = vsub.f32 %v1433_v41, %v1440_v29 }
 0x3bc   : > { %v1442_v31 = vmul.f32 1.442695, %v1441_v30 }
 0x3be   : > { %4833 = vpow2.f32 %v1442_v31 }
 0x3c1   : > { %v1552_v32 = vpop.xlane.xlu1 %1551 }
 0x3c2   : > { %v1553_v33 = vsub.f32 %v1545_v47, %v1552_v32 }
 0x3c4   : > { %v1554_v34 = vmul.f32 1.442695, %v1553_v33 }
 0x3c6   : > { %4835 = vpow2.f32 %v1554_v34 }
 0x3c9   : > { %v1668_v35 = vpop.xlane.xlu0 %1667 }
 0x3ca   : > { %v1669_v36 = vsub.f32 %v1661_v53, %v1668_v35 }
 0x3cb   : > { %v6025_v37 = vpop.eup %4833 }
 0x3cc   : > { %v1670_v38 = vmul.f32 1.442695, %v1669_v36  ;;  %v1444_v39 = vsel %vm1391_vm3, %v6025_v37, 0.0 }
 0x3cd   : > { %1445 = vadd.xlane.f32.xlu1 %v1444_v39 }
 0x3ce   : > { %4837 = vpow2.f32 %v1670_v38 }
 0x3d1   : > { %v1784_v47 = vpop.xlane.xlu0 %1783 }
 0x3d2   : > { %v1785_v49 = vsub.f32 %v6004_v59, %v1784_v47 }
 0x3d3   : > { %v6029_v40 = vpop.eup %4835 }
 0x3d4   : > { %v1556_v41 = vsel %vm1391_vm3, %v6029_v40, 0.0  ;;  %v1786_v50 = vmul.f32 1.442695, %v1785_v49 }
 0x3d5   : > { %1557 = vadd.xlane.f32.xlu0 %v1556_v41 }
 0x3d6   : > { %4839 = vpow2.f32 %v1786_v50 }
 0x3d9   : > { %v1900_v44 = vpop.xlane.xlu1 %1899 }
 0x3da   : > { %v1901_v51 = vsub.f32 %v6008_v1, %v1900_v44 }
 0x3db   : > { %v6033_v42 = vpop.eup %4837 }
 0x3dc   : > { %v1672_v43 = vsel %vm1391_vm3, %v6033_v42, 0.0  ;;  %v1902_v54 = vmul.f32 1.442695, %v1901_v51 }
 0x3dd   : > { %1673 = vadd.xlane.f32.xlu1 %v1672_v43 }
 0x3de   : > { %4841 = vpow2.f32 %v1902_v54 }
 0x3e1   : > { %v2011_v52 = vpop.xlane.xlu0 %2010 }
 0x3e2   : > { %v2012_v53 = vsub.f32 %v6012_v10, %v2011_v52 }
 0x3e4   : > { %v2013_v56 = vmul.f32 1.442695, %v2012_v53 }
 0x3e5   : > { %v1563_v1 = vpop.permute.xlu0 %1562 }
 0x3e6   : > { %4843 = vpow2.f32 %v2013_v56 }
 0x3e9   : > { %v2126_v45 = vpop.xlane.xlu1 %2125 }
 0x3ea   : > { %v2127_v55 = vsub.f32 %v2119_v18, %v2126_v45  ;;  %v1568_v18 = vsel %vm1455_vm4, %v1563_v1, 0 }
 0x3eb   : > { %1678 = vrot.lane.b32.xlu0 %v5924_v12, %s5434_s24 }
 0x3ec   : > { %v2128_v57 = vmul.f32 1.442695, %v2127_v55 }
 0x3ed   : > { %v1451_v46 = vpop.permute.xlu1 %1450 }
 0x3ee   : > { %1794 = vrot.lane.b32.xlu1 %v5924_v12, %s5435_s11  ;;  %v1457_v48 = vsel %vm1455_vm4, %v1451_v46, 0  ;;  %4845 = vpow2.f32 %v2128_v57  ;;  %v4840_v12 = vpop.eup %4839 }
 0x3ef   : > { %4428 = vmatpush3.bf16.msra.mxu0 %v1457_v48  ;;  %v1788_v58 = vsel %vm1391_vm3, %v4840_v12, 0.0  ;;  %v6047_v60 = vpop.eup %4841 }
 0x3f0   : > { %4439 = vmatprep.subr.bf16.mxu0 %v5423_v3  ;;  %v1904_v61 = vsel %vm1391_vm3, %v6047_v60, 0.0 }
 0x3f3   : > { %v6049_v59 = vpop.eup %4843 }
 0x3f4   : > { %v2015_v63 = vsel %vm1391_vm3, %v6049_v59, 0.0 }
 0x3fb   : > { %v6053_v62 = vpop.eup %4845 }
 0x3fc   : > { %v2130_v0 = vsel %vm1391_vm3, %v6053_v62, 0.0 }
 0x40a   : > { %1789 = vadd.xlane.f32.xlu0 %v1788_v58 }
 0x40e   : > { %1905 = vadd.xlane.f32.xlu0 %v1904_v61 }
 0x412   : > { %2016 = vadd.xlane.f32.xlu1 %v2015_v63  ;;  %2131 = vadd.xlane.f32.xlu0 %v2130_v0 }
 0x416   : > { %v2241_v2 = vpop.xlane.xlu0 %2240 }
 0x417   : > { %v2242_v4 = vsub.f32 %v6021_v27, %v2241_v2 }
 0x419   : > { %v2243_v7 = vmul.f32 1.442695, %v2242_v4 }
 0x41b   : > { %4847 = vpow2.f32 %v2243_v7 }
 0x423   : > { %2021 = vrot.lane.b32.xlu1 %v5938_v16, %s5432_s5 }
 0x427   : > { %2136 = vrot.lane.b32.xlu1 %v5938_v16, %s5434_s24 }
 0x428   : > { %v6064_v8 = vpop.eup %4847 }
 0x429   : > { %v2245_v9 = vsel %vm1391_vm3, %v6064_v8, 0.0 }
 0x42a   : > { %2246 = vadd.xlane.f32.xlu0 %v2245_v9 }
 0x42b   : > { %2251 = vrot.lane.b32.xlu1 %v5938_v16, %s5435_s11 }
 0x440   : > { %1910 = vrot.lane.b32.xlu0 %v5938_v16, %s5433_s17 }
 0x456   : > { %v1446_v10 = vpop.xlane.xlu1 %1445 }
 0x457   : > { %4849 = vrcp.f32 %v1446_v10 }
 0x45e   : > { %v1558_v11 = vpop.xlane.xlu0 %1557 }
 0x45f   : > { %4851 = vrcp.f32 %v1558_v11 }
 0x462   : > { %v1679_v20 = vpop.permute.xlu0 %1678 }
 0x463   : > { %v1684_v22 = vsel %vm1455_vm4, %v1679_v20, 0  ;;  %v4820_v20 = vld [vmem:[%s5877_s4] sm:$0xff]  }
 0x464   : > { %v4850_v13 = vpop.eup %4849 }
 0x465   : > { %v1448_v14 = vmul.f32 %v4850_v13, %v6025_v37 }
 0x466   : > { %v1674_v15 = vpop.xlane.xlu1 %1673 }
 0x467   : > { %4853 = vrcp.f32 %v1674_v15  ;;  %v1449_v17 = vpack.c.bf16 %v1448_v14, %v1448_v14 }
 0x469   : > { %4430 = vmatmul.mubr.msk.bf16.vlgmr.msra.gmra.mxu0 %vm1391_vm3, %v1449_v17 }
 0x46a   : > { %4440 = vmatpush3.bf16.msra.mxu0 %v1568_v18  ;;  %4441 = vmatprep.mubr.msk.bf16.mxu0 %vm5424_vm1, %v5423_v3  ;;  %v1795_v25 = vpop.permute.xlu1 %1794 }
 0x46b   : > { %4451 = vmatprep.subr.bf16.mxu0 %v5423_v3  ;;  %v1800_v27 = vsel %vm1455_vm4, %v1795_v25, 0 }
 0x46c   : > { %v4852_v16 = vpop.eup %4851 }
 0x46d   : > { %v1560_v19 = vmul.f32 %v4852_v16, %v6029_v40  ;;  %v4819_v16 = vld [vmem:[%s5877_s4 + $0x8] sm:$0xff]   ;;  %s6545_s4 = scalar_lea.vmem [#allocation8], %s5819_s8 }
 0x46e   : > { %4518 = vmatpush3.bf16.msra.mxu1 %v4819_v16 }
 0x46f   : > { %v1561_v21 = vpack.c.bf16 %v1560_v19, %v1560_v19  ;;  %4519 = vmatprep.subr.bf16.mxu1 %v5423_v3 }
 0x471   : > { %4442 = vmatmul.mubr.msk.bf16.vlgmr.msra.gmra.mxu0 %vm1391_vm3, %v1561_v21 }
 0x472   : > { %4452 = vmatpush3.bf16.msra.mxu0 %v1684_v22  ;;  %4453 = vmatprep.mubr.msk.bf16.mxu0 %vm5424_vm1, %v5423_v3 }
 0x473   : > { %4463 = vmatprep.subr.bf16.mxu0 %v5423_v3  ;;  %4520 = vmatpush3.bf16.msra.mxu1 %v4820_v20 }
 0x474   : > { %v4854_v23 = vpop.eup %4853 }
 0x475   : > { %v1676_v24 = vmul.f32 %v4854_v23, %v6033_v42 }
 0x477   : > { %v1677_v26 = vpack.c.bf16 %v1676_v24, %v1676_v24 }
 0x479   : > { %4454 = vmatmul.mubr.msk.bf16.vlgmr.msra.gmra.mxu0 %vm1391_vm3, %v1677_v26 }
 0x47a   : > { %4464 = vmatpush3.bf16.msra.mxu0 %v1800_v27  ;;  %4465 = vmatprep.mubr.msk.bf16.mxu0 %vm5424_vm1, %v5423_v3 }
 0x47b   : > { %4475 = vmatprep.subr.bf16.mxu0 %v5423_v3 }
 0x493   : > { %v1790_v28 = vpop.xlane.xlu0 %1789 }
 0x494   : > { %4855 = vrcp.f32 %v1790_v28 }
 0x497   : > { %v1906_v31 = vpop.xlane.xlu0 %1905 }
 0x498   : > { %4857 = vrcp.f32 %v1906_v31 }
 0x49b   : > { %v2017_v33 = vpop.xlane.xlu1 %2016  ;;  %v2132_v34 = vpop.xlane.xlu0 %2131 }
 0x49c   : > { %4859 = vrcp.f32 %v2017_v33 }
 0x49d   : > { %4861 = vrcp.f32 %v2132_v34 }
 0x49f   : > { %v2022_v40 = vpop.permute.xlu1 %2021 }
 0x4a0   : > { %v2027_v43 = vsel %vm1455_vm4, %v2022_v40, 0 }
 0x4a1   : > { %v4856_v29 = vpop.eup %4855 }
 0x4a2   : > { %v1792_v30 = vmul.f32 %v4856_v29, %v4840_v12 }
 0x4a3   : > { %v2137_v45 = vpop.permute.xlu1 %2136 }
 0x4a4   : > { %v1793_v32 = vpack.c.bf16 %v1792_v30, %v1792_v30  ;;  %v2142_v48 = vsel %vm1455_vm4, %v2137_v45, 0 }
 0x4a5   : > { %v4858_v35 = vpop.eup %4857 }
 0x4a6   : > { %4466 = vmatmul.mubr.msk.bf16.vlgmr.msra.gmra.mxu0 %vm1391_vm3, %v1793_v32  ;;  %v1908_v37 = vmul.f32 %v4858_v35, %v6047_v60 }
 0x4a7   : > { %4477 = vmatprep.mubr.msk.bf16.mxu0 %vm5424_vm1, %v5423_v3  ;;  %v2252_v50 = vpop.permute.xlu1 %2251 }
 0x4a8   : > { %v1909_v41 = vpack.c.bf16 %v1908_v37, %v1908_v37  ;;  %v2257_v53 = vsel %vm1455_vm4, %v2252_v50, 0 }
 0x4a9   : > { %v4860_v42 = vpop.eup %4859 }
 0x4aa   : > { %v2019_v44 = vmul.f32 %v4860_v42, %v6049_v59  ;;  %v4862_v47 = vpop.eup %4861 }
 0x4ab   : > { %v2134_v49 = vmul.f32 %v4862_v47, %v6053_v62 }
 0x4ac   : > { %v2020_v46 = vpack.c.bf16 %v2019_v44, %v2019_v44 }
 0x4ad   : > { %v2135_v51 = vpack.c.bf16 %v2134_v49, %v2134_v49  ;;  %v4821_v49 = vld [vmem:[%s5887_s12 + $0x8] sm:$0xff]  }
 0x4ae   : > { %4533 = vmatprep.subr.bf16.mxu1 %v4821_v49 }
 0x4b3   : > { %v2247_v36 = vpop.xlane.xlu0 %2246 }
 0x4b4   : > { %4863 = vrcp.f32 %v2247_v36 }
 0x4b7   : > { %v1911_v38 = vpop.permute.xlu0 %1910 }
 0x4b8   : > { %v1916_v39 = vsel %vm1455_vm4, %v1911_v38, 0  ;;  %v4265_v38 = vld [vmem:[%s6545_s4] ss:$0 sm:$0xff]  ;;  %s6549_s4 = scalar_lea.vmem [#allocation14], %s5819_s8 }
 0x4b9   : > { %4476 = vmatpush3.bf16.msra.mxu0 %v1916_v39 }
 0x4ba   : > { %4487 = vmatprep.subr.bf16.mxu0 %v5423_v3 }
 0x4bc   : > { %4478 = vmatmul.mubr.msk.bf16.vlgmr.msra.gmra.mxu0 %vm1391_vm3, %v1909_v41 }
 0x4bd   : > { %4488 = vmatpush3.bf16.msra.mxu0 %v2027_v43  ;;  %4489 = vmatprep.mubr.msk.bf16.mxu0 %vm5424_vm1, %v5423_v3 }
 0x4be   : > { %4499 = vmatprep.subr.bf16.mxu0 %v5423_v3 }
 0x4c1   : > { %v4864_v52 = vpop.eup %4863 }
 0x4c2   : > { %v2249_v54 = vmul.f32 %v4864_v52, %v6064_v8 }
 0x4c4   : > { %4490 = vmatmul.mubr.msk.bf16.vlgmr.msra.gmra.mxu0 %vm1391_vm3, %v2020_v46  ;;  %v2250_v55 = vpack.c.bf16 %v2249_v54, %v2249_v54 }
 0x4c5   : > { %4500 = vmatpush3.bf16.msra.mxu0 %v2142_v48  ;;  %4501 = vmatprep.mubr.msk.bf16.mxu0 %vm5424_vm1, %v5423_v3 }
 0x4c6   : > { %4511 = vmatprep.subr.bf16.mxu0 %v5423_v3 }
 0x4cc   : > { %4502 = vmatmul.mubr.msk.bf16.vlgmr.msra.gmra.mxu0 %vm1391_vm3, %v2135_v51 }
 0x4cd   : > { %4512 = vmatpush3.bf16.msra.mxu0 %v2257_v53  ;;  %4513 = vmatprep.mubr.msk.bf16.mxu0 %vm5424_vm1, %v5423_v3 }
 0x4ce   : > { %4525 = vmatprep.subr.bf16.mxu0 %v5423_v3 }
 0x4d4   : > { %4514 = vmatmul.mubr.msk.bf16.vlgmr.msra.gmra.mxu0 %vm1391_vm3, %v2250_v55 }
 0x4d5   : > { %4529 = vmatprep.mubr.msk.bf16.mxu0 %vm5424_vm1, %v5423_v3 }
 0x529   : > { %v1493_v56 = vpop.f32.mrf.mxu0 }
 0x52a   : > { %1499 = vst.msk [vmem:[#allocation2] sm:$0xff] %vm1391_vm3, %v1493_v56 }
 0x52b   : > { %v4431_v57 = vpop.f32.mrf.mxu0 }
 0x52d   : > { %v1496_v12 = vpop.f32.mrf.mxu0 }
 0x52e   : > { %v4822_v12 = vld [vmem:[%s5887_s12] sm:$0xff]   ;;  %s6547_s12 = scalar_lea.vmem [#allocation9], %s5819_s8 }
 0x52f   : > { %v4432_v58 = vpop.f32.mrf.mxu0 }
 0x530   : > { %v2489_v58 = vld [vmem:[%s6546_s13] sm:$0xff] }
 0x531   : > { %v1604_v60 = vpop.f32.mrf.mxu0 }
 0x532   : > { %1611 = vrot.lane.b32.xlu1 %v1604_v60, %s5436_s26  ;;  %v2490_v60 = vld [vmem:[%s6546_s13 + $0x8] sm:$0xff] }
 0x533   : > { %v4443_v59 = vpop.f32.mrf.mxu0 }
 0x534   : > { %v2492_v59 = vpack.c.bf16 %v2490_v60, %v2489_v58 }
 0x535   : > { %v1607_v61 = vpop.f32.mrf.mxu0 }
 0x536   : > { %v2491_v61 = vld [vmem:[%s6546_s13 + $0x10] sm:$0xf] }
 0x537   : > { %v4444_v62 = vpop.f32.mrf.mxu0 }
 0x538   : > { %v2493_v62 = vpack.c.bf16 %v2491_v61, %v2491_v61 }
 0x539   : > { %v1720_v63 = vpop.f32.mrf.mxu0 }
 0x53a   : > { %1727 = vrot.lane.b32.xlu0 %v1720_v63, %s5437_s3  ;;  %v4823_v63 = vld [vmem:[%s5882_s25 + $0x8] sm:$0xff]  }
 0x53b   : > { %v4455_v0 = vpop.f32.mrf.mxu0  ;;  %4526 = vmatpush3.bf16.msra.mxu0 %v4823_v63 }
 0x53c   : > { %v4824_v0 = vld [vmem:[%s5882_s25] sm:$0xff]   ;;  %4527 = vmatprep.subr.bf16.mxu0 %v5423_v3  ;;  %s6548_s25 = scalar_lea.vmem [#allocation11], %s5819_s8 }
 0x53d   : > { %v1723_v1 = vpop.f32.mrf.mxu0 }
 0x53f   : > { %v4456_v2 = vpop.f32.mrf.mxu0  ;;  %4528 = vmatpush3.bf16.msra.mxu0 %v4824_v0 }
 0x540   : > { %4541 = vmatprep.subr.bf16.mxu0 %v5423_v3 }
 0x566   : > { %v1836_v4 = vpop.f32.mrf.mxu0 }
 0x567   : > { %1843 = vrot.lane.b32.xlu0 %v1836_v4, %s5438_s14 }
 0x568   : > { %v4467_v7 = vpop.f32.mrf.mxu0 }
 0x56a   : > { %v1839_v8 = vpop.f32.mrf.mxu0 }
 0x56c   : > { %v4468_v9 = vpop.f32.mrf.mxu0 }
 0x57c   : > { %v1952_v10 = vpop.f32.mrf.mxu0 }
 0x57d   : > { %1958 = vst.msk [vmem:[#allocation2 + $0x8] sm:$0xff] %vm1391_vm3, %v1952_v10 }
 0x57e   : > { %v4479_v11 = vpop.f32.mrf.mxu0 }
 0x580   : > { %v1955_v13 = vpop.f32.mrf.mxu0 }
 0x581   : > { %v4269_v13 = vld [vmem:[%s6547_s12] ss:$0 sm:$0xff] }
 0x582   : > { %v4480_v14 = vpop.f32.mrf.mxu0 }
 0x584   : > { %v2063_v15 = vpop.f32.mrf.mxu0 }
 0x585   : > { %2070 = vrot.lane.b32.xlu1 %v2063_v15, %s5436_s26 }
 0x586   : > { %v4491_v17 = vpop.f32.mrf.mxu0 }
 0x588   : > { %v2066_v18 = vpop.f32.mrf.mxu0 }
 0x589   : > { %v4270_v18 = vld [vmem:[%s6548_s25] ss:$0 sm:$0xff] }
 0x58a   : > { %v4492_v19 = vpop.f32.mrf.mxu0 }
 0x58c   : > { %v2178_v21 = vpop.f32.mrf.mxu0 }
 0x58d   : > { %2185 = vrot.lane.b32.xlu1 %v2178_v21, %s5437_s3 }
 0x58e   : > { %v4503_v22 = vpop.f32.mrf.mxu0 }
 0x590   : > { %v2181_v23 = vpop.f32.mrf.mxu0 }
 0x591   : > { %v4275_v23 = vld [vmem:[%s6549_s4] ss:$0 sm:$0xff] }
 0x592   : > { %v4504_v24 = vpop.f32.mrf.mxu0 }
 0x594   : > { %v2293_v25 = vpop.f32.mrf.mxu0 }
 0x595   : > { %2300 = vrot.lane.b32.xlu1 %v2293_v25, %s5438_s14 }
 0x596   : > { %v4515_v26 = vpop.f32.mrf.mxu0 }
 0x598   : > { %v2296_v27 = vpop.f32.mrf.mxu0 }
 0x59a   : > { %v4516_v28 = vpop.f32.mrf.mxu0 }
 0x5a4   : > { %v1612_v29 = vpop.permute.xlu1 %1611 }
 0x5a5   : > { %1615 = vst.msk [vmem:[#allocation2] sm:$0xff] %vm1614_vm5, %v1612_v29 }
 0x5ac   : > { %v1728_v30 = vpop.permute.xlu0 %1727 }
 0x5ad   : > { %1731 = vst.msk [vmem:[#allocation2] sm:$0xff] %vm1730_vm6, %v1728_v30 }
 0x5d9   : > { %v1844_v31 = vpop.permute.xlu0 %1843 }
 0x5da   : > { %1847 = vst.msk [vmem:[#allocation2] sm:$0xff] %vm1846_vm7, %v1844_v31 }
 0x5e1   : > { %v2304_v35 = vld [vmem:[#allocation2] sm:$0xff] }
 0x5f7   : > { %v2071_v32 = vpop.permute.xlu1 %2070 }
 0x5f8   : > { %2073 = vst.msk [vmem:[#allocation2 + $0x8] sm:$0xff] %vm1614_vm5, %v2071_v32 }
 0x5ff   : > { %v2186_v33 = vpop.permute.xlu1 %2185 }
 0x600   : > { %2188 = vst.msk [vmem:[#allocation2 + $0x8] sm:$0xff] %vm1730_vm6, %v2186_v33  ;;  %v4271_v33 = vld [vmem:[%s6550_s19] ss:$0 sm:$0xff] }
 0x607   : > { %v2301_v34 = vpop.permute.xlu1 %2300 }
 0x608   : > { %2303 = vst.msk [vmem:[#allocation2 + $0x8] sm:$0xff] %vm1846_vm7, %v2301_v34 }
 0x60f   : > { %v2305_v36 = vld [vmem:[#allocation2 + $0x8] sm:$0xff] }
 0x610   : > { %v2306_v37 = vpack.c.bf16 %v2305_v36, %v2304_v35 }
 0x612   : > { %4522 = vmatmul.mubr.msk.bf16.vlgmr.msra.gmra.mxu1 %vm1341_vm2, %v2306_v37 }
 0x613   : > { %4534 = vmatpush3.bf16.msra.mxu1 %v4821_v49  ;;  %4537 = vmatprep.mubr.msk.bf16.mxu1 %vm1341_vm2, %v2492_v59 }
 0x614   : > { %4535 = vmatprep.subr.bf16.mxu1 %v4822_v12 }
 0x617   : > { %4536 = vmatpush3.bf16.msra.mxu1 %v4822_v12 }
 0x618   : > { %4547 = vmatprep.subr.bf16.mxu1 %v5423_v3 }
 0x61a   : > { %4538 = vmatmul.mubr.msk.bf16.vlgmr.msra.gmra.mxu1 %vm1341_vm2, %v2493_v62 }
 0x61b   : > { %4549 = vmatprep.mubr.msk.bf16.mxu1 %vm5424_vm1, %v5423_v3 }
 0x6d2   : > { %v2367_v39 = vpop.f32.mrf.mxu1 }
 0x6d3   : > { %v2368_v40 = vadd.f32 %v4265_v38, %v2367_v39 }
 0x6d4   : > { %v4523_v41 = vpop.f32.mrf.mxu1 }
 0x6d5   : > { %v2376_v42 = vadd.f32 %v2368_v40, %v5909_v5 }
 0x6d6   : > { %v2370_v43 = vpop.f32.mrf.mxu1 }
 0x6d7   : > { %v2371_v44 = vadd.f32 %v4265_v38, %v2370_v43  ;;  %v2378_v45 = vsel %vm1341_vm2, %v2376_v42, 0.0 }
 0x6d8   : > { %2379 = vadd.xlane.f32.xlu0 %v2378_v45  ;;  %v4524_v46 = vpop.f32.mrf.mxu1 }
 0x6d9   : > { %v2377_v47 = vadd.f32 %v2371_v44, %v5911_v6 }
 0x6da   : > { %v4539_v22 = vpop.f32.mrf.mxu1 }
 0x6db   : > { %v2381_v48 = vsel %vm1341_vm2, %v2377_v47, 0.0  ;;  %v2566_v24 = vadd.f32 %v4539_v22, %v4275_v23 }
 0x6dc   : > { %2382 = vadd.xlane.f32.xlu1 %v2381_v48  ;;  %v2557_v25 = vpop.f32.mrf.mxu1 }
 0x6dd   : > { %v2558_v27 = vadd.f32 %v4275_v23, %v2557_v25 }
 0x6de   : > { %v4540_v26 = vpop.f32.mrf.mxu1 }
 0x6e0   : > { %v2560_v28 = vpop.f32.mrf.mxu1 }
 0x6e1   : > { %v2561_v29 = vadd.f32 %v4275_v23, %v2560_v28 }
 0x6e3   : > { %v6178_v30 = vpack.c.bf16 %v2561_v29, %v2558_v27  ;;  %v3030_v31 = vpack.c.bf16 %v2566_v24, %v2561_v29 }
 0x6e5   : > { %v2577_v32 = vsel %vm1391_vm3, %v6178_v30, 0  ;;  %v6199_v43 = vrot.slane %v3030_v31, 1 }
 0x6ed   : > { %2686 = vrot.lane.b32.xlu1 %v6178_v30, %s5425_s15 }
 0x6f1   : > { %2801 = vrot.lane.b32.xlu1 %v6178_v30, %s5430_s27 }
 0x761   : > { %v2380_v50 = vpop.xlane.xlu0 %2379 }
 0x762   : > { %v2385_v51 = vmul.f32 0.03125, %v2380_v50 }
 0x764   : > { %v2387_v52 = vsub.f32 %v2376_v42, %v2385_v51 }
 0x765   : > { %v2383_v53 = vpop.xlane.xlu1 %2382 }
 0x766   : > { %v2386_v5 = vmul.f32 0.03125, %v2383_v53  ;;  %v2389_v54 = vmul.f32 %v2387_v52, %v2387_v52 }
 0x768   : > { %v2388_v55 = vsub.f32 %v2377_v47, %v2386_v5  ;;  %v2391_v56 = vsel %vm1341_vm2, %v2389_v54, 0.0 }
 0x769   : > { %2392 = vadd.xlane.f32.xlu0 %v2391_v56  ;;  %v2687_v38 = vpop.permute.xlu1 %2686 }
 0x76a   : > { %v2390_v57 = vmul.f32 %v2388_v55, %v2388_v55  ;;  %v2692_v40 = vsel %vm1391_vm3, %v2687_v38, 0 }
 0x76c   : > { %v2394_v6 = vsel %vm1341_vm2, %v2390_v57, 0.0 }
 0x76d   : > { %2395 = vadd.xlane.f32.xlu0 %v2394_v6  ;;  %v2802_v45 = vpop.permute.xlu1 %2801 }
 0x76e   : > { %v2807_v47 = vsel %vm1391_vm3, %v2802_v45, 0 }
 0x7f2   : > { %v2393_v1 = vpop.xlane.xlu0 %2392 }
 0x7f3   : > { %v2397_v2 = vmul.f32 0.03125, %v2393_v1 }
 0x7f5   : > { %v2399_v4 = vadd.f32 1e-05, %v2397_v2 }
 0x7f6   : > { %v2396_v7 = vpop.xlane.xlu0 %2395 }
 0x7f7   : > { %4865 = vrsqrt.f32 %v2399_v4  ;;  %v2398_v8 = vmul.f32 0.03125, %v2396_v7 }
 0x7f9   : > { %v2400_v9 = vadd.f32 1e-05, %v2398_v8 }
 0x7fb   : > { %4867 = vrsqrt.f32 %v2400_v9 }
 0x804   : > { %v4866_v10 = vpop.eup %4865 }
 0x805   : > { %v2403_v11 = vmul.f32 %v4866_v10, %v2387_v52  ;;  %v3037_v52 = vsel %vm1391_vm3, %v6199_v43, 0 }
 0x807   : > { %v2411_v17 = vmul.f32 %v4269_v13, %v2403_v11 }
 0x808   : > { %v4868_v14 = vpop.eup %4867 }
 0x809   : > { %v2404_v15 = vmul.f32 %v4868_v14, %v2388_v55  ;;  %v6167_v19 = vadd.f32 %v4270_v18, %v2411_v17 }
 0x80b   : > { %v2412_v16 = vmul.f32 %v4269_v13, %v2404_v15 }
 0x80d   : > { %v6169_v20 = vadd.f32 %v4270_v18, %v2412_v16 }
 0x80f   : > { %v2421_v21 = vpack.c.bf16 %v6169_v20, %v6167_v19 }
 0x811   : > { %4530 = vmatmul.mubr.msk.bf16.vlgmr.msra.gmra.mxu0 %vm1341_vm2, %v2421_v21 }
 0x812   : > { %4543 = vmatprep.mubr.msk.bf16.mxu0 %vm5424_vm1, %v5423_v3  ;;  %4542 = vmatpush3.bf16.xpose.msra.mxu0 %v2577_v32 }
 0x813   : > { %4553 = vmatprep.subr.bf16.mxu0 %v5423_v3 }
 0x8d1   : > { %v2482_v34 = vpop.f32.mrf.mxu0 }
 0x8d2   : > { %v2483_v35 = vadd.f32 %v4271_v33, %v2482_v34 }
 0x8d3   : > { %v4531_v36 = vpop.f32.mrf.mxu0 }
 0x8d4   : > { %v2571_v37 = vpack.c.bf16 %v2483_v35, %v2483_v35 }
 0x8d5   : > { %v2485_v39 = vpop.f32.mrf.mxu0 }
 0x8d6   : > { %2684 = vrot.lane.b32.xlu0 %v2571_v37, %s5425_s15  ;;  %2799 = vrot.lane.b32.xlu1 %v2571_v37, %s5430_s27  ;;  %v2486_v42 = vadd.f32 %v4271_v33, %v2485_v39 }
 0x8d7   : > { %4544 = vmatmul.mubr.msk.bf16.vlgmr.msra.gmra.mxu0 %vm1391_vm3, %v2571_v37  ;;  %v4532_v41 = vpop.f32.mrf.mxu0 }
 0x8d8   : > { %4554 = vmatpush3.bf16.xpose.msra.mxu0 %v2692_v40  ;;  %4555 = vmatprep.mubr.msk.bf16.mxu0 %vm5424_vm1, %v5423_v3  ;;  %v3029_v44 = vpack.c.bf16 %v2486_v42, %v2486_v42 }
 0x8d9   : > { %4565 = vmatprep.subr.bf16.mxu0 %v5423_v3 }
 0x8da   : > { %2916 = vrot.lane.b32.xlu0 %v6178_v30, %s5431_s29  ;;  %2914 = vrot.lane.b32.xlu1 %v2571_v37, %s5431_s29 }
 0x8de   : > { %3143 = vrot.lane.b32.xlu0 %v6199_v43, %s5425_s15  ;;  %3141 = vrot.lane.b32.xlu1 %v3029_v44, %s5425_s15  ;;  %s6553_s15 = scalar_lea.vmem [#allocation18], %s5819_s8 }
 0x8e2   : > { %3258 = vrot.lane.b32.xlu0 %v6199_v43, %s5430_s27  ;;  %3256 = vrot.lane.b32.xlu1 %v3029_v44, %s5430_s27 }
 0x8e6   : > { %3373 = vrot.lane.b32.xlu0 %v6199_v43, %s5431_s29  ;;  %3371 = vrot.lane.b32.xlu1 %v3029_v44, %s5431_s29 }
 0x948   : > { %v2685_v46 = vpop.permute.xlu0 %2684  ;;  %v2800_v49 = vpop.permute.xlu1 %2799 }
 0x949   : > { %4556 = vmatmul.mubr.msk.bf16.vlgmr.msra.gmra.mxu0 %vm1391_vm3, %v2685_v46 }
 0x94a   : > { %4566 = vmatpush3.bf16.xpose.msra.mxu0 %v2807_v47  ;;  %4567 = vmatprep.mubr.msk.bf16.mxu0 %vm5424_vm1, %v5423_v3 }
 0x94b   : > { %4577 = vmatprep.subr.bf16.mxu0 %v5423_v3 }
 0x94c   : > { %v2917_v48 = vpop.permute.xlu0 %2916  ;;  %v2915_v51 = vpop.permute.xlu1 %2914 }
 0x94d   : > { %v2922_v50 = vsel %vm1391_vm3, %v2917_v48, 0 }
 0x950   : > { %v3144_v53 = vpop.permute.xlu0 %3143  ;;  %v3142_v55 = vpop.permute.xlu1 %3141 }
 0x951   : > { %4568 = vmatmul.mubr.msk.bf16.vlgmr.msra.gmra.mxu0 %vm1391_vm3, %v2800_v49  ;;  %v3149_v5 = vsel %vm1391_vm3, %v3144_v53, 0 }
 0x952   : > { %4578 = vmatpush3.bf16.xpose.msra.mxu0 %v2922_v50  ;;  %4579 = vmatprep.mubr.msk.bf16.mxu0 %vm5424_vm1, %v5423_v3 }
 0x953   : > { %4589 = vmatprep.subr.bf16.mxu0 %v5423_v3 }
 0x954   : > { %v3259_v54 = vpop.permute.xlu0 %3258  ;;  %v3257_v6 = vpop.permute.xlu1 %3256 }
 0x955   : > { %v3264_v56 = vsel %vm1391_vm3, %v3259_v54, 0 }
 0x958   : > { %v3374_v57 = vpop.permute.xlu0 %3373  ;;  %v3372_v58 = vpop.permute.xlu1 %3371 }
 0x959   : > { %4580 = vmatmul.mubr.msk.bf16.vlgmr.msra.gmra.mxu0 %vm1391_vm3, %v2915_v51  ;;  %v3379_v12 = vsel %vm1391_vm3, %v3374_v57, 0 }
 0x95a   : > { %4590 = vmatpush3.bf16.xpose.msra.mxu0 %v3037_v52  ;;  %4591 = vmatprep.mubr.msk.bf16.mxu0 %vm5424_vm1, %v5423_v3 }
 0x95b   : > { %4601 = vmatprep.subr.bf16.mxu0 %v5423_v3 }
 0x961   : > { %4592 = vmatmul.mubr.msk.bf16.vlgmr.msra.gmra.mxu0 %vm1391_vm3, %v3029_v44 }
 0x962   : > { %4602 = vmatpush3.bf16.xpose.msra.mxu0 %v3149_v5  ;;  %4603 = vmatprep.mubr.msk.bf16.mxu0 %vm5424_vm1, %v5423_v3 }
 0x963   : > { %4613 = vmatprep.subr.bf16.mxu0 %v5423_v3 }
 0x969   : > { %4604 = vmatmul.mubr.msk.bf16.vlgmr.msra.gmra.mxu0 %vm1391_vm3, %v3142_v55 }
 0x96a   : > { %4614 = vmatpush3.bf16.xpose.msra.mxu0 %v3264_v56  ;;  %4615 = vmatprep.mubr.msk.bf16.mxu0 %vm5424_vm1, %v5423_v3 }
 0x96b   : > { %4625 = vmatprep.subr.bf16.mxu0 %v5423_v3 }
 0x971   : > { %4616 = vmatmul.mubr.msk.bf16.vlgmr.msra.gmra.mxu0 %vm1391_vm3, %v3257_v6 }
 0x972   : > { %4626 = vmatpush3.bf16.xpose.msra.mxu0 %v3379_v12  ;;  %4627 = vmatprep.mubr.msk.bf16.mxu0 %vm5424_vm1, %v5423_v3 }
 0x973   : > { %4637 = vmatprep.subr.bf16.mxu0 %v5423_v3 }
 0x979   : > { %4628 = vmatmul.mubr.msk.bf16.vlgmr.msra.gmra.mxu0 %vm1391_vm3, %v3372_v58 }
 0x97a   : > { %4641 = vmatprep.mubr.msk.bf16.mxu0 %vm5424_vm1, %v5423_v3 }
 0x997   : > { %v2613_v60 = vpop.f32.mrf.mxu0 }
 0x998   : > { %v2620_v59 = vsel %vm2619_vm8, %v2613_v60, -inf }
 0x999   : > { %2621 = vmax.xlane.f32.xlu0 %v2620_v59  ;;  %v4545_v61 = vpop.f32.mrf.mxu0 }
 0x99b   : > { %v2616_v62 = vpop.f32.mrf.mxu0 }
 0x99d   : > { %v4546_v63 = vpop.f32.mrf.mxu0 }
 0xa09   : > { %v2728_v0 = vpop.f32.mrf.mxu0 }
 0xa0a   : > { %v2734_v1 = vsel %vm2619_vm8, %v2728_v0, -inf }
 0xa0b   : > { %2735 = vmax.xlane.f32.xlu1 %v2734_v1  ;;  %v4557_v2 = vpop.f32.mrf.mxu0 }
 0xa0d   : > { %v2731_v4 = vpop.f32.mrf.mxu0 }
 0xa0f   : > { %v4558_v7 = vpop.f32.mrf.mxu0 }
 0xa11   : > { %v2843_v8 = vpop.f32.mrf.mxu0 }
 0xa12   : > { %v2849_v9 = vsel %vm2619_vm8, %v2843_v8, -inf }
 0xa13   : > { %2850 = vmax.xlane.f32.xlu0 %v2849_v9  ;;  %v4569_v10 = vpop.f32.mrf.mxu0 }
 0xa15   : > { %v2846_v11 = vpop.f32.mrf.mxu0 }
 0xa17   : > { %v4570_v13 = vpop.f32.mrf.mxu0 }
 0xa19   : > { %v6247_v14 = vpop.f32.mrf.mxu0 }
 0xa1a   : > { %v2964_v15 = vsel %vm2619_vm8, %v6247_v14, -inf }
 0xa1b   : > { %2965 = vmax.xlane.f32.xlu0 %v2964_v15  ;;  %v4581_v17 = vpop.f32.mrf.mxu0 }
 0xa1d   : > { %v2961_v18 = vpop.f32.mrf.mxu0 }
 0xa1f   : > { %v4582_v16 = vpop.f32.mrf.mxu0 }
 0xa21   : > { %v6251_v21 = vpop.f32.mrf.mxu0 }
 0xa22   : > { %v3079_v22 = vsel %vm2619_vm8, %v6251_v21, -inf  ;;  %v2622_v41 = vpop.xlane.xlu0 %2621 }
 0xa23   : > { %3080 = vmax.xlane.f32.xlu1 %v3079_v22  ;;  %v4593_v23 = vpop.f32.mrf.mxu0  ;;  %v2623_v42 = vsub.f32 %v2613_v60, %v2622_v41 }
 0xa25   : > { %v3076_v24 = vpop.f32.mrf.mxu0  ;;  %v2624_v44 = vmul.f32 1.442695, %v2623_v42 }
 0xa27   : > { %v4594_v25 = vpop.f32.mrf.mxu0  ;;  %4869 = vpow2.f32 %v2624_v44 }
 0xa29   : > { %v3185_v26 = vpop.f32.mrf.mxu0 }
 0xa2a   : > { %v3191_v27 = vsel %vm2619_vm8, %v3185_v26, -inf }
 0xa2b   : > { %3192 = vmax.xlane.f32.xlu0 %v3191_v27  ;;  %v4605_v28 = vpop.f32.mrf.mxu0 }
 0xa2d   : > { %v3188_v29 = vpop.f32.mrf.mxu0 }
 0xa2f   : > { %v4606_v31 = vpop.f32.mrf.mxu0 }
 0xa31   : > { %v3300_v32 = vpop.f32.mrf.mxu0 }
 0xa32   : > { %v3306_v33 = vsel %vm2619_vm8, %v3300_v32, -inf }
 0xa33   : > { %3307 = vmax.xlane.f32.xlu1 %v3306_v33  ;;  %v4617_v34 = vpop.f32.mrf.mxu0 }
 0xa34   : > { %v6265_v46 = vpop.eup %4869 }
 0xa35   : > { %v3303_v35 = vpop.f32.mrf.mxu0  ;;  %v2626_v47 = vsel %vm2619_vm8, %v6265_v46, 0.0 }
 0xa37   : > { %v4618_v36 = vpop.f32.mrf.mxu0 }
 0xa39   : > { %v6257_v37 = vpop.f32.mrf.mxu0 }
 0xa3a   : > { %v3421_v45 = vsel %vm2619_vm8, %v6257_v37, -inf }
 0xa3b   : > { %v4629_v38 = vpop.f32.mrf.mxu0 }
 0xa3d   : > { %v3418_v39 = vpop.f32.mrf.mxu0 }
 0xa3f   : > { %v4630_v40 = vpop.f32.mrf.mxu0 }
 0xa41   : > { %2746 = vrot.lane.b32.xlu0 %v6178_v30, %s5428_s28 }
 0xa44   : > { %2633 = vrot.lane.b32.xlu1 %v6178_v30, %s5426_s16 }
 0xa60   : > { %3422 = vmax.xlane.f32.xlu0 %v3421_v45 }
 0xa68   : > { %2627 = vadd.xlane.f32.xlu1 %v2626_v47 }
 0xa94   : > { %v2736_v48 = vpop.xlane.xlu1 %2735 }
 0xa95   : > { %v2737_v49 = vsub.f32 %v2728_v0, %v2736_v48 }
 0xa97   : > { %v2738_v50 = vmul.f32 1.442695, %v2737_v49 }
 0xa99   : > { %4871 = vpow2.f32 %v2738_v50 }
 0xa9c   : > { %v2851_v51 = vpop.xlane.xlu0 %2850 }
 0xa9d   : > { %v2852_v52 = vsub.f32 %v2843_v8, %v2851_v51 }
 0xa9f   : > { %v2853_v53 = vmul.f32 1.442695, %v2852_v52 }
 0xaa1   : > { %4873 = vpow2.f32 %v2853_v53 }
 0xaa4   : > { %v2966_v58 = vpop.xlane.xlu0 %2965 }
 0xaa5   : > { %v2967_v59 = vsub.f32 %v6247_v14, %v2966_v58 }
 0xaa6   : > { %v6269_v5 = vpop.eup %4871 }
 0xaa7   : > { %v2740_v54 = vsel %vm2619_vm8, %v6269_v5, 0.0  ;;  %v2968_v61 = vmul.f32 1.442695, %v2967_v59 }
 0xaa8   : > { %2741 = vadd.xlane.f32.xlu0 %v2740_v54 }
 0xaa9   : > { %4875 = vpow2.f32 %v2968_v61 }
 0xaac   : > { %v3081_v57 = vpop.xlane.xlu1 %3080 }
 0xaad   : > { %v3082_v62 = vsub.f32 %v6251_v21, %v3081_v57 }
 0xaae   : > { %v6273_v55 = vpop.eup %4873 }
 0xaaf   : > { %v2855_v56 = vsel %vm2619_vm8, %v6273_v55, 0.0  ;;  %v3083_v1 = vmul.f32 1.442695, %v3082_v62 }
 0xab0   : > { %2856 = vadd.xlane.f32.xlu1 %v2855_v56 }
 0xab1   : > { %4877 = vpow2.f32 %v3083_v1 }
 0xab4   : > { %v3193_v63 = vpop.xlane.xlu0 %3192 }
 0xab5   : > { %v3194_v0 = vsub.f32 %v3185_v26, %v3193_v63 }
 0xab6   : > { %v4876_v8 = vpop.eup %4875 }
 0xab7   : > { %v3195_v4 = vmul.f32 1.442695, %v3194_v0 }
 0xab8   : > { %v2747_v17 = vpop.permute.xlu0 %2746 }
 0xab9   : > { %4879 = vpow2.f32 %v3195_v4  ;;  %v2752_v28 = vsel %vm2638_vm9, %v2747_v17, 0 }
 0xabc   : > { %v3308_v6 = vpop.xlane.xlu1 %3307 }
 0xabd   : > { %v3309_v2 = vsub.f32 %v3300_v32, %v3308_v6 }
 0xabe   : > { %2861 = vrot.lane.b32.xlu0 %v6178_v30, %s5427_s7  ;;  %v6286_v9 = vpop.eup %4877 }
 0xabf   : > { %v3310_v7 = vmul.f32 1.442695, %v3309_v2  ;;  %v3085_v11 = vsel %vm2619_vm8, %v6286_v9, 0.0 }
 0xac0   : > { %v2634_v12 = vpop.permute.xlu1 %2633 }
 0xac1   : > { %v2640_v60 = vsel %vm2638_vm9, %v2634_v12, 0  ;;  %2976 = vrot.lane.b32.xlu1 %v6178_v30, %s5429_s10  ;;  %4881 = vpow2.f32 %v3310_v7  ;;  %v2970_v30 = vsel %vm2619_vm8, %v4876_v8, 0.0 }
 0xac2   : > { %4548 = vmatpush3.bf16.msra.mxu1 %v2640_v60 }
 0xac3   : > { %4559 = vmatprep.subr.bf16.mxu1 %v5423_v3 }
 0xac6   : > { %v6288_v10 = vpop.eup %4879 }
 0xac7   : > { %v3197_v14 = vsel %vm2619_vm8, %v6288_v10, 0.0 }
 0xace   : > { %v6292_v13 = vpop.eup %4881 }
 0xacf   : > { %v3312_v15 = vsel %vm2619_vm8, %v6292_v13, 0.0 }
 0xadd   : > { %2971 = vadd.xlane.f32.xlu0 %v2970_v30 }
 0xae1   : > { %3086 = vadd.xlane.f32.xlu0 %v3085_v11 }
 0xae5   : > { %3198 = vadd.xlane.f32.xlu1 %v3197_v14  ;;  %3313 = vadd.xlane.f32.xlu0 %v3312_v15 }
 0xae9   : > { %v3423_v18 = vpop.xlane.xlu0 %3422 }
 0xaea   : > { %v3424_v16 = vsub.f32 %v6257_v37, %v3423_v18 }
 0xaec   : > { %v3425_v21 = vmul.f32 1.442695, %v3424_v16 }
 0xaee   : > { %4883 = vpow2.f32 %v3425_v21 }
 0xaf1   : > { %v2628_v22 = vpop.xlane.xlu1 %2627 }
 0xaf2   : > { %4885 = vrcp.f32 %v2628_v22 }
 0xaf6   : > { %3203 = vrot.lane.b32.xlu1 %v6199_v43, %s5428_s28  ;;  %s6557_s28 = scalar_lea.vmem [#allocation24], %s5819_s8 }
 0xafa   : > { %3318 = vrot.lane.b32.xlu1 %v6199_v43, %s5427_s7  ;;  %s6555_s7 = scalar_lea.vmem [#allocation21], %s5819_s8 }
 0xafb   : > { %v6303_v23 = vpop.eup %4883 }
 0xafc   : > { %v3427_v24 = vsel %vm2619_vm8, %v6303_v23, 0.0 }
 0xafd   : > { %3428 = vadd.xlane.f32.xlu0 %v3427_v24 }
 0xafe   : > { %3433 = vrot.lane.b32.xlu1 %v6199_v43, %s5429_s10  ;;  %s5439_s10 = smov [#allocation26]  }
 0xaff   : > { %v4886_v25 = vpop.eup %4885  ;;  %s3814_s27 = sshll.u32 %s5439_s10, 4  ;;  %s3815_s27 = int_to_ptr.vmem [resolvable:$true] %s3814_s27 }
 0xb00   : > { %v2630_v26 = vmul.f32 %v4886_v25, %v6265_v46  ;;  %s5299_s29 = scalar_lea.vmem %s3815_s27, 256  ;;  %p5306_p3 = scmp.lt.s32.totalorder %s3815_s27, %s3815_s27 }
 0xb01   : > { %p5300_p4 = scmp.ne.s32.totalorder %s3815_s27, %s5299_s29  ;;  %p5307_p8 = scmp.lt.s32.totalorder %s5299_s29, %s5299_s29 }
 0xb02   : > { %v2631_v27 = vpack.c.bf16 %v2630_v26, %v2630_v26 }
 0xb03   : > { %p5301_p9 = pnand %p5300_p4, %p4746_p1  ;;  %p5308_p10 = por %p5307_p8, %p5306_p3 }
 0xb04   : > { %4550 = vmatmul.mubr.msk.bf16.vlgmr.msra.gmra.mxu1 %vm2619_vm8, %v2631_v27 }
 0xb05   : > { %4560 = vmatpush3.bf16.msra.mxu1 %v2752_v28  ;;  %4561 = vmatprep.mubr.msk.bf16.mxu1 %vm5424_vm1, %v5423_v3  ;;  %p5302_p2 = pneg %p5301_p9 }
 0xb06   : > { %4571 = vmatprep.subr.bf16.mxu1 %v5423_v3 }
 0xb07   : > { %p5309_p11 = pnand %p5308_p10, %p5302_p2 }
 0xb13   : > { %3091 = vrot.lane.b32.xlu0 %v6199_v43, %s5426_s16  ;;  %s6554_s16 = scalar_lea.vmem [#allocation20], %s5819_s8 }
 0xb31   : > { %v2742_v29 = vpop.xlane.xlu0 %2741 }
 0xb32   : > { %4887 = vrcp.f32 %v2742_v29 }
 0xb35   : > { %v2862_v34 = vpop.permute.xlu0 %2861 }
 0xb36   : > { %v2867_v36 = vsel %vm2638_vm9, %v2862_v34, 0  ;;  %v4826_v34 = vld [vmem:[%s5892_s2] sm:$0xff]  }
 0xb39   : > { %v2857_v31 = vpop.xlane.xlu1 %2856 }
 0xb3a   : > { %4889 = vrcp.f32 %v2857_v31 }
 0xb3d   : > { %v2977_v38 = vpop.permute.xlu1 %2976 }
 0xb3e   : > { %v2982_v40 = vsel %vm2638_vm9, %v2977_v38, 0 }
 0xb3f   : > { %v4888_v32 = vpop.eup %4887 }
 0xb40   : > { %v2744_v33 = vmul.f32 %v4888_v32, %v6269_v5  ;;  %v4825_v32 = vld [vmem:[%s5892_s2 + $0x8] sm:$0xff]   ;;  %s6551_s2 = scalar_lea.vmem [#allocation15], %s5819_s8 }
 0xb41   : > { %4638 = vmatpush3.bf16.msra.mxu0 %v4825_v32  ;;  %v4832_v32 = vld [vmem:[%s5902_s0] sm:$0xff]  }
 0xb42   : > { %v2745_v35 = vpack.c.bf16 %v2744_v33, %v2744_v33  ;;  %4639 = vmatprep.subr.bf16.mxu0 %v5423_v3 }
 0xb44   : > { %4562 = vmatmul.mubr.msk.bf16.vlgmr.msra.gmra.mxu1 %vm2619_vm8, %v2745_v35 }
 0xb45   : > { %4572 = vmatpush3.bf16.msra.mxu1 %v2867_v36  ;;  %4573 = vmatprep.mubr.msk.bf16.mxu1 %vm5424_vm1, %v5423_v3 }
 0xb46   : > { %4583 = vmatprep.subr.bf16.mxu1 %v5423_v3  ;;  %4640 = vmatpush3.bf16.msra.mxu0 %v4826_v34 }
 0xb47   : > { %v4890_v43 = vpop.eup %4889  ;;  %4653 = vmatprep.subr.bf16.mxu0 %v5423_v3 }
 0xb48   : > { %v2859_v37 = vmul.f32 %v4890_v43, %v6273_v55 }
 0xb4a   : > { %v2860_v39 = vpack.c.bf16 %v2859_v37, %v2859_v37 }
 0xb4c   : > { %4574 = vmatmul.mubr.msk.bf16.vlgmr.msra.gmra.mxu1 %vm2619_vm8, %v2860_v39 }
 0xb4d   : > { %4584 = vmatpush3.bf16.msra.mxu1 %v2982_v40  ;;  %4585 = vmatprep.mubr.msk.bf16.mxu1 %vm5424_vm1, %v5423_v3 }
 0xb4e   : > { %4595 = vmatprep.subr.bf16.mxu1 %v5423_v3 }
 0xb66   : > { %v2972_v41 = vpop.xlane.xlu0 %2971 }
 0xb67   : > { %4891 = vrcp.f32 %v2972_v41 }
 0xb6a   : > { %v3087_v45 = vpop.xlane.xlu0 %3086 }
 0xb6b   : > { %4893 = vrcp.f32 %v3087_v45 }
 0xb6e   : > { %v3199_v47 = vpop.xlane.xlu1 %3198  ;;  %v3314_v48 = vpop.xlane.xlu0 %3313 }
 0xb6f   : > { %4895 = vrcp.f32 %v3199_v47 }
 0xb70   : > { %4897 = vrcp.f32 %v3314_v48 }
 0xb72   : > { %v3204_v5 = vpop.permute.xlu1 %3203 }
 0xb73   : > { %v3209_v56 = vsel %vm2638_vm9, %v3204_v5, 0 }
 0xb74   : > { %v4892_v42 = vpop.eup %4891 }
 0xb75   : > { %v2974_v44 = vmul.f32 %v4892_v42, %v4876_v8 }
 0xb76   : > { %v3319_v6 = vpop.permute.xlu1 %3318 }
 0xb77   : > { %v2975_v46 = vpack.c.bf16 %v2974_v44, %v2974_v44  ;;  %v3324_v60 = vsel %vm2638_vm9, %v3319_v6, 0 }
 0xb78   : > { %v4894_v49 = vpop.eup %4893 }
 0xb79   : > { %4586 = vmatmul.mubr.msk.bf16.vlgmr.msra.gmra.mxu1 %vm2619_vm8, %v2975_v46  ;;  %v3089_v51 = vmul.f32 %v4894_v49, %v6286_v9 }
 0xb7a   : > { %4597 = vmatprep.mubr.msk.bf16.mxu1 %vm5424_vm1, %v5423_v3  ;;  %v3434_v61 = vpop.permute.xlu1 %3433 }
 0xb7b   : > { %v3090_v54 = vpack.c.bf16 %v3089_v51, %v3089_v51  ;;  %v3439_v0 = vsel %vm2638_vm9, %v3434_v61, 0 }
 0xb7c   : > { %v4896_v55 = vpop.eup %4895 }
 0xb7d   : > { %v3201_v57 = vmul.f32 %v4896_v55, %v6288_v10  ;;  %v4898_v58 = vpop.eup %4897 }
 0xb7e   : > { %v3316_v59 = vmul.f32 %v4898_v58, %v6292_v13 }
 0xb7f   : > { %v3202_v12 = vpack.c.bf16 %v3201_v57, %v3201_v57 }
 0xb80   : > { %v3317_v62 = vpack.c.bf16 %v3316_v59, %v3316_v59 }
 0xb86   : > { %v3429_v50 = vpop.xlane.xlu0 %3428 }
 0xb87   : > { %4899 = vrcp.f32 %v3429_v50 }
 0xb8a   : > { %v3092_v52 = vpop.permute.xlu0 %3091 }
 0xb8b   : > { %v3097_v53 = vsel %vm2638_vm9, %v3092_v52, 0  ;;  %v4296_v52 = vld [vmem:[%s6551_s2] ss:$0 sm:$0xff] }
 0xb8c   : > { %4596 = vmatpush3.bf16.msra.mxu1 %v3097_v53 }
 0xb8d   : > { %4607 = vmatprep.subr.bf16.mxu1 %v5423_v3 }
 0xb8f   : > { %4598 = vmatmul.mubr.msk.bf16.vlgmr.msra.gmra.mxu1 %vm2619_vm8, %v3090_v54 }
 0xb90   : > { %4608 = vmatpush3.bf16.msra.mxu1 %v3209_v56  ;;  %4609 = vmatprep.mubr.msk.bf16.mxu1 %vm5424_vm1, %v5423_v3 }
 0xb91   : > { %4619 = vmatprep.subr.bf16.mxu1 %v5423_v3 }
 0xb94   : > { %v4900_v63 = vpop.eup %4899 }
 0xb95   : > { %v3431_v1 = vmul.f32 %v4900_v63, %v6303_v23 }
 0xb97   : > { %4610 = vmatmul.mubr.msk.bf16.vlgmr.msra.gmra.mxu1 %vm2619_vm8, %v3202_v12  ;;  %v3432_v2 = vpack.c.bf16 %v3431_v1, %v3431_v1 }
 0xb98   : > { %4620 = vmatpush3.bf16.msra.mxu1 %v3324_v60  ;;  %4621 = vmatprep.mubr.msk.bf16.mxu1 %vm5424_vm1, %v5423_v3 }
 0xb99   : > { %4631 = vmatprep.subr.bf16.mxu1 %v5423_v3 }
 0xb9f   : > { %4622 = vmatmul.mubr.msk.bf16.vlgmr.msra.gmra.mxu1 %vm2619_vm8, %v3317_v62 }
 0xba0   : > { %4632 = vmatpush3.bf16.msra.mxu1 %v3439_v0  ;;  %4633 = vmatprep.mubr.msk.bf16.mxu1 %vm5424_vm1, %v5423_v3 }
 0xba1   : > { %4645 = vmatprep.subr.bf16.mxu1 %v5423_v3 }
 0xba7   : > { %4634 = vmatmul.mubr.msk.bf16.vlgmr.msra.gmra.mxu1 %vm2619_vm8, %v3432_v2 }
 0xba8   : > { %4649 = vmatprep.mubr.msk.bf16.mxu1 %vm5424_vm1, %v5423_v3 }
 0xbc4   : > { %v2676_v4 = vpop.f32.mrf.mxu1 }
 0xbc5   : > { %2682 = vst.msk [vmem:[#allocation2] sm:$0xff] %vm1391_vm3, %v2676_v4 }
 0xbc6   : > { %v4551_v7 = vpop.f32.mrf.mxu1 }
 0xbc8   : > { %v2679_v8 = vpop.f32.mrf.mxu1 }
 0xbc9   : > { %v4828_v8 = vld [vmem:[%s5897_s6] sm:$0xff]  }
 0xbca   : > { %v4552_v30 = vpop.f32.mrf.mxu1 }
 0xbcb   : > { %v4829_v30 = vld [vmem:[%s5902_s0 + $0x18] sm:$0xff]  }
 0xc04   : > { %v2788_v9 = vpop.f32.mrf.mxu1 }
 0xc05   : > { %2795 = vrot.lane.b32.xlu1 %v2788_v9, %s5436_s26 }
 0xc06   : > { %v4563_v10 = vpop.f32.mrf.mxu1 }
 0xc08   : > { %v2791_v11 = vpop.f32.mrf.mxu1 }
 0xc0a   : > { %v4564_v13 = vpop.f32.mrf.mxu1 }
 0xc0c   : > { %v2903_v14 = vpop.f32.mrf.mxu1 }
 0xc0d   : > { %2910 = vrot.lane.b32.xlu0 %v2903_v14, %s5437_s3 }
 0xc0e   : > { %v4575_v15 = vpop.f32.mrf.mxu1 }
 0xc10   : > { %v2906_v17 = vpop.f32.mrf.mxu1 }
 0xc12   : > { %v4576_v18 = vpop.f32.mrf.mxu1 }
 0xc39   : > { %v3018_v16 = vpop.f32.mrf.mxu1 }
 0xc3a   : > { %3025 = vrot.lane.b32.xlu0 %v3018_v16, %s5438_s14 }
 0xc3b   : > { %v4587_v21 = vpop.f32.mrf.mxu1 }
 0xc3d   : > { %v3021_v22 = vpop.f32.mrf.mxu1 }
 0xc3f   : > { %v4588_v23 = vpop.f32.mrf.mxu1 }
 0xc4f   : > { %v3133_v24 = vpop.f32.mrf.mxu1 }
 0xc50   : > { %3139 = vst.msk [vmem:[#allocation2 + $0x8] sm:$0xff] %vm1391_vm3, %v3133_v24  ;;  %v4301_v24 = vld [vmem:[%s6553_s15] ss:$0 sm:$0xff] }
 0xc51   : > { %v4599_v25 = vpop.f32.mrf.mxu1 }
 0xc53   : > { %v3136_v26 = vpop.f32.mrf.mxu1 }
 0xc55   : > { %v4600_v27 = vpop.f32.mrf.mxu1 }
 0xc57   : > { %v3245_v28 = vpop.f32.mrf.mxu1 }
 0xc58   : > { %3252 = vrot.lane.b32.xlu1 %v3245_v28, %s5436_s26 }
 0xc59   : > { %v4611_v29 = vpop.f32.mrf.mxu1 }
 0xc5a   : > { %v4830_v29 = vld [vmem:[%s5902_s0 + $0x10] sm:$0xff]  }
 0xc5b   : > { %v3248_v31 = vpop.f32.mrf.mxu1 }
 0xc5c   : > { %v4831_v31 = vld [vmem:[%s5902_s0 + $0x8] sm:$0xff]   ;;  %s6556_s0 = scalar_lea.vmem [#allocation23], %s5819_s8 }
 0xc5d   : > { %v4612_v33 = vpop.f32.mrf.mxu1 }
 0xc5e   : > { %v4302_v33 = vld [vmem:[%s6554_s16] ss:$0 sm:$0xff] }
 0xc5f   : > { %v3360_v35 = vpop.f32.mrf.mxu1 }
 0xc60   : > { %3367 = vrot.lane.b32.xlu1 %v3360_v35, %s5437_s3 }
 0xc61   : > { %v4623_v36 = vpop.f32.mrf.mxu1 }
 0xc63   : > { %v3363_v43 = vpop.f32.mrf.mxu1 }
 0xc65   : > { %v4624_v37 = vpop.f32.mrf.mxu1 }
 0xc67   : > { %v3475_v38 = vpop.f32.mrf.mxu1 }
 0xc68   : > { %3482 = vrot.lane.b32.xlu1 %v3475_v38, %s5438_s14 }
 0xc69   : > { %v4635_v39 = vpop.f32.mrf.mxu1 }
 0xc6b   : > { %v3478_v40 = vpop.f32.mrf.mxu1 }
 0xc6d   : > { %v4636_v41 = vpop.f32.mrf.mxu1 }
 0xc77   : > { %v2796_v42 = vpop.permute.xlu1 %2795 }
 0xc78   : > { %2798 = vst.msk [vmem:[#allocation2] sm:$0xff] %vm1614_vm5, %v2796_v42  ;;  %v4306_v42 = vld [vmem:[%s6555_s7] ss:$0 sm:$0xff] }
 0xc7f   : > { %v2911_v44 = vpop.permute.xlu0 %2910 }
 0xc80   : > { %2913 = vst.msk [vmem:[#allocation2] sm:$0xff] %vm1730_vm6, %v2911_v44 }
 0xcac   : > { %v3026_v45 = vpop.permute.xlu0 %3025 }
 0xcad   : > { %3028 = vst.msk [vmem:[#allocation2] sm:$0xff] %vm1846_vm7, %v3026_v45 }
 0xcb4   : > { %v3486_v49 = vld [vmem:[#allocation2] sm:$0xff] }
 0xcca   : > { %v3253_v46 = vpop.permute.xlu1 %3252 }
 0xccb   : > { %3255 = vst.msk [vmem:[#allocation2 + $0x8] sm:$0xff] %vm1614_vm5, %v3253_v46 }
 0xcd2   : > { %v3368_v47 = vpop.permute.xlu1 %3367 }
 0xcd3   : > { %3370 = vst.msk [vmem:[#allocation2 + $0x8] sm:$0xff] %vm1730_vm6, %v3368_v47 }
 0xcda   : > { %v3483_v48 = vpop.permute.xlu1 %3482 }
 0xcdb   : > { %3485 = vst.msk [vmem:[#allocation2 + $0x8] sm:$0xff] %vm1846_vm7, %v3483_v48 }
 0xce2   : > { %v3487_v50 = vld [vmem:[#allocation2 + $0x8] sm:$0xff] }
 0xce3   : > { %v3488_v51 = vpack.c.bf16 %v3487_v50, %v3486_v49 }
 0xce5   : > { %4642 = vmatmul.mubr.msk.bf16.vlgmr.msra.gmra.mxu0 %vm1341_vm2, %v3488_v51 }
 0xce6   : > { %4661 = vmatprep.mubr.msk.bf16.mxu0 %vm5424_vm1, %v5423_v3  ;;  %4654 = vmatpush3.bf16.msra.mxu0 %v4829_v30 }
 0xce7   : > { %4655 = vmatprep.subr.bf16.mxu0 %v5423_v3 }
 0xcea   : > { %4656 = vmatpush3.bf16.msra.mxu0 %v4830_v29 }
 0xceb   : > { %4657 = vmatprep.subr.bf16.mxu0 %v5423_v3 }
 0xcee   : > { %4658 = vmatpush3.bf16.msra.mxu0 %v4831_v31 }
 0xcef   : > { %4659 = vmatprep.subr.bf16.mxu0 %v5423_v3 }
 0xcf2   : > { %4660 = vmatpush3.bf16.msra.mxu0 %v4832_v32 }
 0xda5   : > { %v3549_v53 = vpop.f32.mrf.mxu0 }
 0xda6   : > { %v3550_v5 = vadd.f32 %v4296_v52, %v3549_v53 }
 0xda7   : > { %v4643_v54 = vpop.f32.mrf.mxu0 }
 0xda8   : > { %v3558_v55 = vadd.f32 %v3550_v5, %v6167_v19 }
 0xda9   : > { %v3552_v56 = vpop.f32.mrf.mxu0 }
 0xdaa   : > { %v3553_v57 = vadd.f32 %v4296_v52, %v3552_v56  ;;  %v3560_v6 = vsel %vm1341_vm2, %v3558_v55, 0.0 }
 0xdab   : > { %3561 = vadd.xlane.f32.xlu0 %v3560_v6  ;;  %v4644_v12 = vpop.f32.mrf.mxu0 }
 0xdac   : > { %v3559_v58 = vadd.f32 %v3553_v57, %v6169_v20  ;;  %v4827_v20 = vld [vmem:[%s5897_s6 + $0x8] sm:$0xff]   ;;  %s6552_s6 = scalar_lea.vmem [#allocation17], %s5819_s8 }
 0xdad   : > { %4646 = vmatpush3.bf16.msra.mxu1 %v4827_v20  ;;  %v4300_v16 = vld [vmem:[%s6552_s6] ss:$0 sm:$0xff] }
 0xdae   : > { %v3563_v60 = vsel %vm1341_vm2, %v3559_v58, 0.0  ;;  %4647 = vmatprep.subr.bf16.mxu1 %v5423_v3 }
 0xdaf   : > { %3564 = vadd.xlane.f32.xlu1 %v3563_v60 }
 0xdb1   : > { %4648 = vmatpush3.bf16.msra.mxu1 %v4828_v8 }
 0xe34   : > { %v3562_v59 = vpop.xlane.xlu0 %3561 }
 0xe35   : > { %v3566_v61 = vmul.f32 0.03125, %v3562_v59 }
 0xe37   : > { %v3568_v62 = vsub.f32 %v3558_v55, %v3566_v61 }
 0xe38   : > { %v3565_v63 = vpop.xlane.xlu1 %3564 }
 0xe39   : > { %v3567_v0 = vmul.f32 0.03125, %v3565_v63  ;;  %v3570_v19 = vmul.f32 %v3568_v62, %v3568_v62 }
 0xe3b   : > { %v3569_v1 = vsub.f32 %v3559_v58, %v3567_v0  ;;  %v3572_v2 = vsel %vm1341_vm2, %v3570_v19, 0.0 }
 0xe3c   : > { %3573 = vadd.xlane.f32.xlu0 %v3572_v2  ;;  %v4312_v2 = vld [vmem:[%s6556_s0] ss:$0 sm:$0xff] }
 0xe3d   : > { %v3571_v4 = vmul.f32 %v3569_v1, %v3569_v1 }
 0xe3f   : > { %v3575_v7 = vsel %vm1341_vm2, %v3571_v4, 0.0 }
 0xe40   : > { %3576 = vadd.xlane.f32.xlu0 %v3575_v7  ;;  %v4313_v7 = vld [vmem:[%s6557_s28] ss:$0 sm:$0xff] }
 0xec5   : > { %v3574_v9 = vpop.xlane.xlu0 %3573 }
 0xec6   : > { %v3578_v10 = vmul.f32 0.03125, %v3574_v9 }
 0xec8   : > { %v3580_v11 = vadd.f32 1e-05, %v3578_v10 }
 0xec9   : > { %v3577_v13 = vpop.xlane.xlu0 %3576 }
 0xeca   : > { %4901 = vrsqrt.f32 %v3580_v11  ;;  %v3579_v14 = vmul.f32 0.03125, %v3577_v13 }
 0xecc   : > { %v3581_v15 = vadd.f32 1e-05, %v3579_v14 }
 0xece   : > { %4903 = vrsqrt.f32 %v3581_v15 }
 0xed7   : > { %v4902_v17 = vpop.eup %4901 }
 0xed8   : > { %v3584_v18 = vmul.f32 %v4902_v17, %v3568_v62 }
 0xeda   : > { %v3592_v23 = vmul.f32 %v4300_v16, %v3584_v18 }
 0xedb   : > { %v4904_v21 = vpop.eup %4903 }
 0xedc   : > { %v3585_v22 = vmul.f32 %v4904_v21, %v3569_v1  ;;  %v3600_v26 = vadd.f32 %v4301_v24, %v3592_v23 }
 0xede   : > { %v3593_v25 = vmul.f32 %v4300_v16, %v3585_v22 }
 0xee0   : > { %v3601_v27 = vadd.f32 %v4301_v24, %v3593_v25 }
 0xee2   : > { %v3602_v28 = vpack.c.bf16 %v3601_v27, %v3600_v26 }
 0xee4   : > { %4650 = vmatmul.mubr.msk.bf16.vlgmr.msra.gmra.mxu1 %vm1341_vm2, %v3602_v28 }
 0xfa4   : > { %v3663_v34 = vpop.f32.mrf.mxu1 }
 0xfa5   : > { %v3664_v36 = vadd.f32 %v4302_v33, %v3663_v34 }
 0xfa6   : > { %v4651_v35 = vpop.f32.mrf.mxu1 }
 0xfa7   : > { %v3670_v39 = vmax.f32 %v3664_v36, 0.0 }
 0xfa8   : > { %v3666_v43 = vpop.f32.mrf.mxu1 }
 0xfa9   : > { %v3667_v37 = vadd.f32 %v4302_v33, %v3666_v43 }
 0xfaa   : > { %v4652_v38 = vpop.f32.mrf.mxu1 }
 0xfab   : > { %v3671_v40 = vmax.f32 %v3667_v37, 0.0 }
 0xfad   : > { %v3672_v41 = vpack.c.bf16 %v3671_v40, %v3670_v39 }
 0xfaf   : > { %4662 = vmatmul.mubr.msk.bf16.vlgmr.msra.gmra.mxu0 %vm3712_vm10, %v3672_v41 }
0x106f   : > { %v3750_v44 = vpop.f32.mrf.mxu0 }
0x1070   : > { %v3751_v45 = vadd.f32 %v4306_v42, %v3750_v44 }
0x1071   : > { %v4663_v3 = vpop.f32.mrf.mxu0 }
0x1072   : > { %v3759_v46 = vadd.f32 %v3751_v45, %v3600_v26 }
0x1073   : > { %v3753_v47 = vpop.f32.mrf.mxu0 }
0x1074   : > { %v3754_v48 = vadd.f32 %v4306_v42, %v3753_v47  ;;  %v3761_v49 = vsel %vm1341_vm2, %v3759_v46, 0.0 }
0x1075   : > { %3762 = vadd.xlane.f32.xlu1 %v3761_v49  ;;  %v4664_v50 = vpop.f32.mrf.mxu0 }
0x1076   : > { %v3760_v51 = vadd.f32 %v3754_v48, %v3601_v27 }
0x1078   : > { %v3764_v52 = vsel %vm1341_vm2, %v3760_v51, 0.0 }
0x1079   : > { %3765 = vadd.xlane.f32.xlu0 %v3764_v52 }
0x10fe   : > { %v3763_v53 = vpop.xlane.xlu1 %3762 }
0x10ff   : > { %v3767_v5 = vmul.f32 0.03125, %v3763_v53 }
0x1101   : > { %v3769_v54 = vsub.f32 %v3759_v46, %v3767_v5 }
0x1102   : > { %v3766_v55 = vpop.xlane.xlu0 %3765 }
0x1103   : > { %v3768_v56 = vmul.f32 0.03125, %v3766_v55  ;;  %v3771_v57 = vmul.f32 %v3769_v54, %v3769_v54 }
0x1105   : > { %v3770_v6 = vsub.f32 %v3760_v51, %v3768_v56  ;;  %v3773_v12 = vsel %vm1341_vm2, %v3771_v57, 0.0 }
0x1106   : > { %3774 = vadd.xlane.f32.xlu1 %v3773_v12 }
0x1107   : > { %v3772_v58 = vmul.f32 %v3770_v6, %v3770_v6 }
0x1109   : > { %v3776_v60 = vsel %vm1341_vm2, %v3772_v58, 0.0 }
0x110a   : > { %3777 = vadd.xlane.f32.xlu0 %v3776_v60 }
0x118f   : > { %v3775_v59 = vpop.xlane.xlu1 %3774 }
0x1190   : > { %v3779_v61 = vmul.f32 0.03125, %v3775_v59 }
0x1192   : > { %v3781_v62 = vadd.f32 1e-05, %v3779_v61 }
0x1193   : > { %v3778_v63 = vpop.xlane.xlu0 %3777 }
0x1194   : > { %4905 = vrsqrt.f32 %v3781_v62  ;;  %v3780_v0 = vmul.f32 0.03125, %v3778_v63 }
0x1196   : > { %v3782_v19 = vadd.f32 1e-05, %v3780_v0 }
0x1198   : > { %4907 = vrsqrt.f32 %v3782_v19 }
0x11a1   : > { %v4906_v1 = vpop.eup %4905 }
0x11a2   : > { %v3785_v4 = vmul.f32 %v4906_v1, %v3769_v54 }
0x11a4   : > { %v3793_v20 = vmul.f32 %v4312_v2, %v3785_v4 }
0x11a5   : > { %v4908_v8 = vpop.eup %4907 }
0x11a6   : > { %v3786_v30 = vmul.f32 %v4908_v8, %v3770_v6  ;;  %v3801_v9 = vadd.f32 %v4313_v7, %v3793_v20 }
0x11a8   : > { %v3794_v10 = vmul.f32 %v4312_v2, %v3786_v30  ;;  %3803 = vst.msk [vmem:[#allocation26] sm:$0xff] %vm1341_vm2, %v3801_v9 }
0x11aa   : > { %v3802_v11 = vadd.f32 %v4313_v7, %v3794_v10 }
0x11ac   : > { %3804 = vst.msk [vmem:[#allocation26 + $0x8] sm:$0xff] %vm1341_vm2, %v3802_v11 }
0x11ad   : > { %5312 = shalt.err (!%p5309_p11)
}
0x11ae   : > { %s5440_s8 = smov 128   ;;  %s6558_s22 = sld [smem:[#allocation61_spill]] }
0x11b4   : > { %4696 = dma.vmem_to_hbm [thread:$0]  (%p4746_p1), %s3815_s27, 256, %s6558_s22, [#allocation5], %s5440_s8, %s5440_s8, %s5436_s26  }
0x11b5   : > { %5380 = dma.done.wait (%p4746_p1), [#allocation5], 256  }
0x11b6   : > { %5382 = vsyncadd (%p4746_p1), [#allocation5], 4294967040 }
0x11b7 PF: > { %s56_s1 = sadd.s32 1, %s5405_s1   ;;  %s6559_s5 = sld [smem:[#allocation36_spill]] }
0x11b8   : > { %p53_p12 = scmp.ge.s32.totalorder %s56_s1, 4   ;;  %s6560_s24 = sld [smem:[#allocation40_spill]] }
0x11b9   : > { %s6561_s25 = sld [smem:[#allocation38_spill]]  ;;  %s6563_s4 = smov %s5389_s30 }
0x11ba   : > { %s6562_s17 = sld [smem:[#allocation39_spill]] }
0x11bc   :  { %55 = sbr.rel (!%p53_p12) target bundleno = 40 (0x28), region = 328 }
0x11bd   : > { %s6564_s30 = smov %s6559_s5 }
0x11c0   : > { %s6565_s5 = smov %s6562_s17 }
0x11c1   :  { %3830 = vsyncpa [#allocation4], 1 }
0x11c2   :  { %3832 = vsyncpa [#allocation4 + $0x1], 1 }
0x11c3   :  { %3833 = vsyncpa [#allocation7], 1 }
0x11c4   :  { %3835 = vsyncpa [#allocation7 + $0x1], 1 }
0x11c5   :  { %3836 = vsyncpa [#allocation10], 1 }
0x11c6   :  { %3838 = vsyncpa [#allocation10 + $0x1], 1 }
0x11c7   :  { %3839 = vsyncpa [#allocation13], 1 }
0x11c8   :  { %3841 = vsyncpa [#allocation13 + $0x1], 1 }
0x11c9   :  { %3842 = vsyncpa [#allocation16], 1 }
0x11ca   :  { %3844 = vsyncpa [#allocation16 + $0x1], 1 }
0x11cb   :  { %3845 = vsyncpa [#allocation19], 1 }
0x11cc   :  { %3847 = vsyncpa [#allocation19 + $0x1], 1 }
0x11cd   :  { %3848 = vsyncpa [#allocation22], 1 }
0x11ce   :  { %3850 = vsyncpa [#allocation22 + $0x1], 1 }
0x11cf   :  { %3851 = vsyncpa [#allocation25], 1 }
0x11d0   :  { %3853 = vsyncpa [#allocation25 + $0x1], 1 }
0x11d1   :  { %3854 = vsyncpa [#allocation5], 1 }
0x11d2   :  { %3856 = vsyncpa [#allocation5 + $0x1], 1 }

</bundles_post_ra>
